<compile_context>
chip_gen: v7x
topology: tpu7x:2x2x1
jax: 0.10.0
libtpu: 0.0.40
codegen_flags: <defaults>
</compile_context>

<pallas_src>
import functools

import jax
import jax.numpy as jnp
from jax.experimental import pallas as pl
from jax.experimental.pallas import tpu as pltpu


# ----------------------------------------------------------------------------
# Kernel: one (batch, H-strip) pair per grid step, everything fused.
# ----------------------------------------------------------------------------
def _ggu_kernel(x_ref, fcw_ref, fcb1_ref, sfcw_ref, sfcb1_ref,
                sfc2w_ref, sfc2b_ref, o_ref, xn_ref,
                *, n1, hs, w, eps, matmul_dtype):
    # x_ref  : (1, C, 2, Lh)   raw activations; axis 2 = [first H/2 | second H/2]
    # o_ref  : (1, n1, 2, Lh)
    # xn_ref : (C, 2*Lh) f32 scratch: LayerNorm(x) for both halves, laid out
    #          [half_a | half_b] along lanes (lane-dense matmul RHS).
    lh = hs * w

    xa = x_ref[0, :, 0, :].astype(jnp.float32)         # (C, Lh) first-half strip
    xb = x_ref[0, :, 1, :].astype(jnp.float32)         # (C, Lh) paired strip

    # --- layer_norm_process over the W axis of every (c, h) row --------------
    # Direct per-row moment reduction (no averaging matrix).  hs is small by
    # construction so a static unroll keeps every slice static.
    # TODO(synk): switch to lax.fori_loop + pl.ds(..., multiple_of) for very
    #             tall strips to avoid code bloat.
    for h in range(hs):
        lo, hi = h * w, (h + 1) * w
        for part, src in ((0, xa), (1, xb)):
            row = src[:, lo:hi]                                       # (C, W)
            mean = jnp.mean(row, axis=-1, keepdims=True)
            cen = row - mean
            var = jnp.mean(cen * cen, axis=-1, keepdims=True)         # unbiased=False
            xn_ref[:, part * lh + lo: part * lh + hi] = cen * jax.lax.rsqrt(var + eps)

    xn = xn_ref[...]                                    # (C, 2*Lh) = [LN(a)|LN(b)]

    def mm(wmat, rhs):
        if matmul_dtype is not None:
            wmat = wmat.astype(matmul_dtype)
            rhs = rhs.astype(matmul_dtype)
        return jnp.dot(wmat, rhs, preferred_element_type=jnp.float32)

    # --- channel gate: catt = u * (fc(LN(v)) + 1)   ('+1' folded into bias) --
    v1 = mm(fcw_ref[...], xn[n1:, :]) + fcb1_ref[...]   # (n1, 2*Lh)
    catt_a = xa[:n1, :] * v1[:, :lh]
    catt_b = xb[:n1, :] * v1[:, lh:]

    # --- spatial gate: ONE fused sfc matmul over both halves -----------------
    g = mm(sfcw_ref[...], xn) + sfcb1_ref[...]          # (C, 2*Lh) = sfc(LN(.)) + 1
    satt1 = xn[:, :lh] * g[:, lh:]                      # LN(su) * (sfc(LN(sv)) + 1)
    satt2 = xn[:, lh:] * g[:, :lh]                      # LN(sv) * (sfc(LN(su)) + 1)

    # --- sfc2 per half + residual, written directly into the output halves ---
    sfc2w = sfc2w_ref[...]
    sfc2b = sfc2b_ref[...]
    o_ref[0, :, 0, :] = (catt_a + mm(sfc2w, satt1) + sfc2b).astype(o_ref.dtype)
    o_ref[0, :, 1, :] = (catt_b + mm(sfc2w, satt2) + sfc2b).astype(o_ref.dtype)


# ----------------------------------------------------------------------------
# Strip chooser: largest 128-aligned strip whose per-step VMEM fits the budget.
# ----------------------------------------------------------------------------
def _choose_num_strips(c, hh, w, n1, budget_bytes=24 << 20):
    def step_bytes(hs):
        lh = hs * w
        return 4 * lh * (2 * 2 * c      # x tile, double-buffered
                         + 2 * c        # LN scratch
                         + 2 * 2 * n1)  # out tile, double-buffered

    best = 1
    for ns in sorted(d for d in range(1, hh + 1) if hh % d == 0):
        lh = (hh // ns) * w
        if ns != 1 and lh % 128 != 0:
            continue                    # keep lane-dense stores & legal BlockSpecs
        best = ns
        if step_bytes(hh // ns) <= budget_bytes:
            break
    return best


# ----------------------------------------------------------------------------
# Wrapper: accepts NCHW (PyTorch convention), returns NCHW.
# ----------------------------------------------------------------------------
def grid_gating_unit(params, x_nchw, eps=1e-5, matmul_dtype=None, num_strips=None):
    n, c, h, w = x_nchw.shape
    assert c % 2 == 0, "channel count must be 2*n1"
    assert h % 2 == 0, "GridGatingUnit requires even H (spatial split along dim 2)"
    n1 = c // 2
    hh = h // 2                                   # rows per spatial half

    if num_strips is None:
        num_strips = _choose_num_strips(c, hh, w, n1)
    assert hh % num_strips == 0
    hs = hh // num_strips                         # h-rows per grid step
    lh = hs * w

    # Layout: (N, C, 2, (H/2)*W) — axis 2 selects the spatial half; lanes are
    # the flattened (h, w) extent of one strip.  Every matmul is lane-dense.
    x4 = x_nchw.reshape(n, c, 2, hh * w)

    fcw, fcb = params["fc"]
    sfcw, sfcb = params["sfc"]
    sfc2w, sfc2b = params["sfc2"]
    # Fold the '+1.0' gate offsets into the biases (one less full-tile VPU add).
    fcb1 = (fcb + 1.0).reshape(n1, 1).astype(jnp.float32)
    sfcb1 = (sfcb + 1.0).reshape(c, 1).astype(jnp.float32)
    sfc2b2 = sfc2b.reshape(n1, 1).astype(jnp.float32)

    # Explicit scoped-VMEM limit derived from the per-step tile footprint.
    step_bytes = 4 * lh * (2 * 2 * c + 2 * c + 2 * 2 * n1) + 4096
    vmem_limit = int(min(64 << 20, max(32 << 20, 2 * step_bytes)))

    const = lambda i, s: (0, 0)
    kernel = functools.partial(_ggu_kernel, n1=n1, hs=hs, w=w, eps=eps,
                               matmul_dtype=matmul_dtype)
    out = pl.pallas_call(
        kernel,
        out_shape=jax.ShapeDtypeStruct((n, n1, 2, hh * w), x_nchw.dtype),
        grid=(n, num_strips),
        in_specs=[
            pl.BlockSpec((1, c, 2, lh), lambda i, s: (i, 0, 0, s)),  # activations
            pl.BlockSpec((n1, n1), const),       # fc weight
            pl.BlockSpec((n1, 1), const),        # fc bias (+1 folded)
            pl.BlockSpec((c, c), const),         # sfc weight
            pl.BlockSpec((c, 1), const),         # sfc bias (+1 folded)
            pl.BlockSpec((n1, c), const),        # sfc2 weight
            pl.BlockSpec((n1, 1), const),        # sfc2 bias
        ],
        out_specs=pl.BlockSpec((1, n1, 2, lh), lambda i, s: (i, 0, 0, s)),
        scratch_shapes=[pltpu.VMEM((c, 2 * lh), jnp.float32)],
        compiler_params=pltpu.CompilerParams(
            dimension_semantics=("parallel", "parallel"),
            vmem_limit_bytes=vmem_limit),
    )(x4, fcw.astype(jnp.float32), fcb1, sfcw.astype(jnp.float32), sfcb1,
      sfc2w.astype(jnp.float32), sfc2b2)

    return out.reshape(n, n1, h, w)


# ----------------------------------------------------------------------------
# Deterministic parameter construction (Conv2d 1x1 weights as (Cout, Cin)).
# ----------------------------------------------------------------------------
def init_ggu_params(key, n1):
    ks = jax.random.split(key, 6)

    def lin(kw, kb, cin, cout):
        wm = jax.random.normal(kw, (cout, cin), jnp.float32) / jnp.sqrt(float(cin))
        b = jax.random.normal(kb, (cout,), jnp.float32) * 0.1
        return wm, b

    return {
        "n1": n1,
        "fc": lin(ks[0], ks[1], n1, n1),            # Conv2d(n1, n1, 1)
        "sfc": lin(ks[2], ks[3], 2 * n1, 2 * n1),   # Conv2d(2*n1, 2*n1, 1)
        "sfc2": lin(ks[4], ks[5], 2 * n1, n1),      # Conv2d(2*n1, n1, 1)
    }


# ----------------------------------------------------------------------------
# Pure-JAX reference mirroring the PyTorch forward (correctness check).
# ----------------------------------------------------------------------------
def _ln_ref(t, eps=1e-5):
    mean = jnp.mean(t, axis=-1, keepdims=True)
    var = jnp.mean((t - mean) ** 2, axis=-1, keepdims=True)   # unbiased=False
    return (t - mean) / jnp.sqrt(var + eps)


def _conv1x1_ref(t, wm, b):
    return (jnp.einsum("oc,nchw->nohw", wm, t,
                       precision=jax.lax.Precision.HIGHEST)
            + b[None, :, None, None])


def ggu_reference(params, x):
    C, H = x.shape[1], x.shape[2]
    c, h2 = C // 2, H // 2
    fcw, fcb = params["fc"]
    sfcw, sfcb = params["sfc"]
    sfc2w, sfc2b = params["sfc2"]

    u, v = x[:, :c], x[:, c:]
    v = _ln_ref(v)
    v = _conv1x1_ref(v, fcw, fcb)
    catt = u * (v + 1.0)

    su, sv = x[:, :, :h2], x[:, :, h2:]
    su = _ln_ref(su)
    sv = _ln_ref(sv)
    su1 = _conv1x1_ref(su, sfcw, sfcb)
    sv1 = _conv1x1_ref(sv, sfcw, sfcb)
    satt1 = su * (sv1 + 1.0)
    satt2 = sv * (su1 + 1.0)
    satt = jnp.concatenate([satt1, satt2], axis=2)
    satt = _conv1x1_ref(satt, sfc2w, sfc2b)
    return catt + satt


# ----------------------------------------------------------------------------
if __name__ == "__main__":
    key = jax.random.PRNGKey(0)
    k_x, k_p = jax.random.split(key)

    # GridGatingUnit(n1=4): input has 2*n1 = 8 channels, H must be even.
    N, n1, H, W = 2, 4, 16, 16
    C = 2 * n1

    x = jax.random.normal(k_x, (N, C, H, W), jnp.float32)
    params = init_ggu_params(k_p, n1)

    out = jax.block_until_ready(grid_gating_unit(params, x))
    assert out.shape == (N, n1, H, W), out.shape

    ref = jax.block_until_ready(ggu_reference(params, x))
    max_err = float(jnp.max(jnp.abs(out - ref)))
    # Direct-reduction LN removed the big averaging matmuls, so the remaining
    # error is only the three small f32 MXU convs (typically ~1e-5).
    assert jnp.allclose(out, ref, atol=1e-3, rtol=1e-3), max_err

    print("KERNEL_OK")
</pallas_src>

<mosaic_0001>
module attributes {stable_mosaic.version = 11 : i64} {
  func.func @_ggu_kernel(%arg0: i32, %arg1: i32, %arg2: memref<1x8x2x128xf32, #tpu.memory_space<vmem>>, %arg3: memref<4x4xf32, #tpu.memory_space<vmem>>, %arg4: memref<4x1xf32, #tpu.memory_space<vmem>>, %arg5: memref<8x8xf32, #tpu.memory_space<vmem>>, %arg6: memref<8x1xf32, #tpu.memory_space<vmem>>, %arg7: memref<4x8xf32, #tpu.memory_space<vmem>>, %arg8: memref<4x1xf32, #tpu.memory_space<vmem>>, %arg9: memref<1x4x2x128xf32, #tpu.memory_space<vmem>>, %arg10: memref<8x256xf32, #tpu.memory_space<vmem>>) attributes {dimension_semantics = [#tpu.dimension_semantics<parallel>, #tpu.dimension_semantics<parallel>], iteration_bounds = array<i64: 2, 1>, scalar_prefetch = 0 : i64, scratch_operands = 1 : i64, tpu.core_type = #tpu.core_type<tc>, window_params = [{transform_indices = @transform_0, window_bounds = array<i64: 1, 8, 2, 128>}, {pipeline_mode = #tpu.pipeline_mode<synchronous>, transform_indices = @transform_1, window_bounds = array<i64: 4, 4>}, {pipeline_mode = #tpu.pipeline_mode<synchronous>, transform_indices = @transform_2, window_bounds = array<i64: 4, 1>}, {pipeline_mode = #tpu.pipeline_mode<synchronous>, transform_indices = @transform_3, window_bounds = array<i64: 8, 8>}, {pipeline_mode = #tpu.pipeline_mode<synchronous>, transform_indices = @transform_4, window_bounds = array<i64: 8, 1>}, {pipeline_mode = #tpu.pipeline_mode<synchronous>, transform_indices = @transform_5, window_bounds = array<i64: 4, 8>}, {pipeline_mode = #tpu.pipeline_mode<synchronous>, transform_indices = @transform_6, window_bounds = array<i64: 4, 1>}, {transform_indices = @transform_7, window_bounds = array<i64: 1, 4, 2, 128>}]} {
    %c0 = arith.constant 0 : index
    %c0_0 = arith.constant 0 : index
    %c0_1 = arith.constant 0 : index
    %c0_2 = arith.constant 0 : index
    %0 = vector.load %arg2[%c0, %c0_0, %c0_1, %c0_2] : memref<1x8x2x128xf32, #tpu.memory_space<vmem>>, vector<1x8x1x128xf32>
    %1 = vector.shape_cast %0 : vector<1x8x1x128xf32> to vector<8x128xf32>
    %c0_3 = arith.constant 0 : index
    %c0_4 = arith.constant 0 : index
    %c1 = arith.constant 1 : index
    %c0_5 = arith.constant 0 : index
    %2 = vector.load %arg2[%c0_3, %c0_4, %c1, %c0_5] : memref<1x8x2x128xf32, #tpu.memory_space<vmem>>, vector<1x8x1x128xf32>
    %3 = vector.shape_cast %2 : vector<1x8x1x128xf32> to vector<8x128xf32>
    %4 = vector.extract_strided_slice %1 {offsets = [0, 0], sizes = [8, 16], strides = [1, 1]} : vector<8x128xf32> to vector<8x16xf32>
    %cst = arith.constant dense<0.000000e+00> : vector<8xf32>
    %5 = vector.multi_reduction <add>, %4, %cst [1] : vector<8x16xf32> to vector<8xf32>
    %6 = vector.shape_cast %5 : vector<8xf32> to vector<8x1xf32>
    %cst_6 = arith.constant 1.600000e+01 : f32
    %7 = vector.broadcast %cst_6 : f32 to vector<8x1xf32>
    %8 = arith.divf %6, %7 : vector<8x1xf32>
    %9 = vector.broadcast %8 : vector<8x1xf32> to vector<8x16xf32>
    %10 = arith.subf %4, %9 : vector<8x16xf32>
    %11 = arith.mulf %10, %10 : vector<8x16xf32>
    %cst_7 = arith.constant dense<0.000000e+00> : vector<8xf32>
    %12 = vector.multi_reduction <add>, %11, %cst_7 [1] : vector<8x16xf32> to vector<8xf32>
    %13 = vector.shape_cast %12 : vector<8xf32> to vector<8x1xf32>
    %cst_8 = arith.constant 1.600000e+01 : f32
    %14 = vector.broadcast %cst_8 : f32 to vector<8x1xf32>
    %15 = arith.divf %13, %14 : vector<8x1xf32>
    %cst_9 = arith.constant 9.99999974E-6 : f32
    %16 = vector.broadcast %cst_9 : f32 to vector<8x1xf32>
    %17 = arith.addf %15, %16 : vector<8x1xf32>
    %18 = math.rsqrt %17 : vector<8x1xf32>
    %19 = vector.broadcast %18 : vector<8x1xf32> to vector<8x16xf32>
    %20 = arith.mulf %10, %19 : vector<8x16xf32>
    %c0_10 = arith.constant 0 : index
    %c0_11 = arith.constant 0 : index
    %21 = vector.load %arg10[%c0_10, %c0_11] : memref<8x256xf32, #tpu.memory_space<vmem>>, vector<8x16xf32>
    tpu.vector_store %arg10[%c0_10, %c0_11], %20 {strides = array<i32>} : memref<8x256xf32, #tpu.memory_space<vmem>>, vector<8x16xf32>,
    %22 = vector.extract_strided_slice %3 {offsets = [0, 0], sizes = [8, 16], strides = [1, 1]} : vector<8x128xf32> to vector<8x16xf32>
    %cst_12 = arith.constant dense<0.000000e+00> : vector<8xf32>
    %23 = vector.multi_reduction <add>, %22, %cst_12 [1] : vector<8x16xf32> to vector<8xf32>
    %24 = vector.shape_cast %23 : vector<8xf32> to vector<8x1xf32>
    %cst_13 = arith.constant 1.600000e+01 : f32
    %25 = vector.broadcast %cst_13 : f32 to vector<8x1xf32>
    %26 = arith.divf %24, %25 : vector<8x1xf32>
    %27 = vector.broadcast %26 : vector<8x1xf32> to vector<8x16xf32>
    %28 = arith.subf %22, %27 : vector<8x16xf32>
    %29 = arith.mulf %28, %28 : vector<8x16xf32>
    %cst_14 = arith.constant dense<0.000000e+00> : vector<8xf32>
    %30 = vector.multi_reduction <add>, %29, %cst_14 [1] : vector<8x16xf32> to vector<8xf32>
    %31 = vector.shape_cast %30 : vector<8xf32> to vector<8x1xf32>
    %cst_15 = arith.constant 1.600000e+01 : f32
    %32 = vector.broadcast %cst_15 : f32 to vector<8x1xf32>
    %33 = arith.divf %31, %32 : vector<8x1xf32>
    %cst_16 = arith.constant 9.99999974E-6 : f32
    %34 = vector.broadcast %cst_16 : f32 to vector<8x1xf32>
    %35 = arith.addf %33, %34 : vector<8x1xf32>
    %36 = math.rsqrt %35 : vector<8x1xf32>
    %37 = vector.broadcast %36 : vector<8x1xf32> to vector<8x16xf32>
    %38 = arith.mulf %28, %37 : vector<8x16xf32>
    %c0_17 = arith.constant 0 : index
    %c128 = arith.constant 128 : index
    %39 = vector.load %arg10[%c0_17, %c128] : memref<8x256xf32, #tpu.memory_space<vmem>>, vector<8x16xf32>
    tpu.vector_store %arg10[%c0_17, %c128], %38 {strides = array<i32>} : memref<8x256xf32, #tpu.memory_space<vmem>>, vector<8x16xf32>,
    %40 = vector.extract_strided_slice %1 {offsets = [0, 16], sizes = [8, 16], strides = [1, 1]} : vector<8x128xf32> to vector<8x16xf32>
    %cst_18 = arith.constant dense<0.000000e+00> : vector<8xf32>
    %41 = vector.multi_reduction <add>, %40, %cst_18 [1] : vector<8x16xf32> to vector<8xf32>
    %42 = vector.shape_cast %41 : vector<8xf32> to vector<8x1xf32>
    %cst_19 = arith.constant 1.600000e+01 : f32
    %43 = vector.broadcast %cst_19 : f32 to vector<8x1xf32>
    %44 = arith.divf %42, %43 : vector<8x1xf32>
    %45 = vector.broadcast %44 : vector<8x1xf32> to vector<8x16xf32>
    %46 = arith.subf %40, %45 : vector<8x16xf32>
    %47 = arith.mulf %46, %46 : vector<8x16xf32>
    %cst_20 = arith.constant dense<0.000000e+00> : vector<8xf32>
    %48 = vector.multi_reduction <add>, %47, %cst_20 [1] : vector<8x16xf32> to vector<8xf32>
    %49 = vector.shape_cast %48 : vector<8xf32> to vector<8x1xf32>
    %cst_21 = arith.constant 1.600000e+01 : f32
    %50 = vector.broadcast %cst_21 : f32 to vector<8x1xf32>
    %51 = arith.divf %49, %50 : vector<8x1xf32>
    %cst_22 = arith.constant 9.99999974E-6 : f32
    %52 = vector.broadcast %cst_22 : f32 to vector<8x1xf32>
    %53 = arith.addf %51, %52 : vector<8x1xf32>
    %54 = math.rsqrt %53 : vector<8x1xf32>
    %55 = vector.broadcast %54 : vector<8x1xf32> to vector<8x16xf32>
    %56 = arith.mulf %46, %55 : vector<8x16xf32>
    %c0_23 = arith.constant 0 : index
    %c16 = arith.constant 16 : index
    %57 = vector.load %arg10[%c0_23, %c16] : memref<8x256xf32, #tpu.memory_space<vmem>>, vector<8x16xf32>
    tpu.vector_store %arg10[%c0_23, %c16], %56 {strides = array<i32>} : memref<8x256xf32, #tpu.memory_space<vmem>>, vector<8x16xf32>,
    %58 = vector.extract_strided_slice %3 {offsets = [0, 16], sizes = [8, 16], strides = [1, 1]} : vector<8x128xf32> to vector<8x16xf32>
    %cst_24 = arith.constant dense<0.000000e+00> : vector<8xf32>
    %59 = vector.multi_reduction <add>, %58, %cst_24 [1] : vector<8x16xf32> to vector<8xf32>
    %60 = vector.shape_cast %59 : vector<8xf32> to vector<8x1xf32>
    %cst_25 = arith.constant 1.600000e+01 : f32
    %61 = vector.broadcast %cst_25 : f32 to vector<8x1xf32>
    %62 = arith.divf %60, %61 : vector<8x1xf32>
    %63 = vector.broadcast %62 : vector<8x1xf32> to vector<8x16xf32>
    %64 = arith.subf %58, %63 : vector<8x16xf32>
    %65 = arith.mulf %64, %64 : vector<8x16xf32>
    %cst_26 = arith.constant dense<0.000000e+00> : vector<8xf32>
    %66 = vector.multi_reduction <add>, %65, %cst_26 [1] : vector<8x16xf32> to vector<8xf32>
    %67 = vector.shape_cast %66 : vector<8xf32> to vector<8x1xf32>
    %cst_27 = arith.constant 1.600000e+01 : f32
    %68 = vector.broadcast %cst_27 : f32 to vector<8x1xf32>
    %69 = arith.divf %67, %68 : vector<8x1xf32>
    %cst_28 = arith.constant 9.99999974E-6 : f32
    %70 = vector.broadcast %cst_28 : f32 to vector<8x1xf32>
    %71 = arith.addf %69, %70 : vector<8x1xf32>
    %72 = math.rsqrt %71 : vector<8x1xf32>
    %73 = vector.broadcast %72 : vector<8x1xf32> to vector<8x16xf32>
    %74 = arith.mulf %64, %73 : vector<8x16xf32>
    %c0_29 = arith.constant 0 : index
    %c144 = arith.constant 144 : index
    %75 = vector.load %arg10[%c0_29, %c144] : memref<8x256xf32, #tpu.memory_space<vmem>>, vector<8x16xf32>
    tpu.vector_store %arg10[%c0_29, %c144], %74 {strides = array<i32>} : memref<8x256xf32, #tpu.memory_space<vmem>>, vector<8x16xf32>,
    %76 = vector.extract_strided_slice %1 {offsets = [0, 32], sizes = [8, 16], strides = [1, 1]} : vector<8x128xf32> to vector<8x16xf32>
    %cst_30 = arith.constant dense<0.000000e+00> : vector<8xf32>
    %77 = vector.multi_reduction <add>, %76, %cst_30 [1] : vector<8x16xf32> to vector<8xf32>
    %78 = vector.shape_cast %77 : vector<8xf32> to vector<8x1xf32>
    %cst_31 = arith.constant 1.600000e+01 : f32
    %79 = vector.broadcast %cst_31 : f32 to vector<8x1xf32>
    %80 = arith.divf %78, %79 : vector<8x1xf32>
    %81 = vector.broadcast %80 : vector<8x1xf32> to vector<8x16xf32>
    %82 = arith.subf %76, %81 : vector<8x16xf32>
    %83 = arith.mulf %82, %82 : vector<8x16xf32>
    %cst_32 = arith.constant dense<0.000000e+00> : vector<8xf32>
    %84 = vector.multi_reduction <add>, %83, %cst_32 [1] : vector<8x16xf32> to vector<8xf32>
    %85 = vector.shape_cast %84 : vector<8xf32> to vector<8x1xf32>
    %cst_33 = arith.constant 1.600000e+01 : f32
    %86 = vector.broadcast %cst_33 : f32 to vector<8x1xf32>
    %87 = arith.divf %85, %86 : vector<8x1xf32>
    %cst_34 = arith.constant 9.99999974E-6 : f32
    %88 = vector.broadcast %cst_34 : f32 to vector<8x1xf32>
    %89 = arith.addf %87, %88 : vector<8x1xf32>
    %90 = math.rsqrt %89 : vector<8x1xf32>
    %91 = vector.broadcast %90 : vector<8x1xf32> to vector<8x16xf32>
    %92 = arith.mulf %82, %91 : vector<8x16xf32>
    %c0_35 = arith.constant 0 : index
    %c32 = arith.constant 32 : index
    %93 = vector.load %arg10[%c0_35, %c32] : memref<8x256xf32, #tpu.memory_space<vmem>>, vector<8x16xf32>
    tpu.vector_store %arg10[%c0_35, %c32], %92 {strides = array<i32>} : memref<8x256xf32, #tpu.memory_space<vmem>>, vector<8x16xf32>,
    %94 = vector.extract_strided_slice %3 {offsets = [0, 32], sizes = [8, 16], strides = [1, 1]} : vector<8x128xf32> to vector<8x16xf32>
    %cst_36 = arith.constant dense<0.000000e+00> : vector<8xf32>
    %95 = vector.multi_reduction <add>, %94, %cst_36 [1] : vector<8x16xf32> to vector<8xf32>
    %96 = vector.shape_cast %95 : vector<8xf32> to vector<8x1xf32>
    %cst_37 = arith.constant 1.600000e+01 : f32
    %97 = vector.broadcast %cst_37 : f32 to vector<8x1xf32>
    %98 = arith.divf %96, %97 : vector<8x1xf32>
    %99 = vector.broadcast %98 : vector<8x1xf32> to vector<8x16xf32>
    %100 = arith.subf %94, %99 : vector<8x16xf32>
    %101 = arith.mulf %100, %100 : vector<8x16xf32>
    %cst_38 = arith.constant dense<0.000000e+00> : vector<8xf32>
    %102 = vector.multi_reduction <add>, %101, %cst_38 [1] : vector<8x16xf32> to vector<8xf32>
    %103 = vector.shape_cast %102 : vector<8xf32> to vector<8x1xf32>
    %cst_39 = arith.constant 1.600000e+01 : f32
    %104 = vector.broadcast %cst_39 : f32 to vector<8x1xf32>
    %105 = arith.divf %103, %104 : vector<8x1xf32>
    %cst_40 = arith.constant 9.99999974E-6 : f32
    %106 = vector.broadcast %cst_40 : f32 to vector<8x1xf32>
    %107 = arith.addf %105, %106 : vector<8x1xf32>
    %108 = math.rsqrt %107 : vector<8x1xf32>
    %109 = vector.broadcast %108 : vector<8x1xf32> to vector<8x16xf32>
    %110 = arith.mulf %100, %109 : vector<8x16xf32>
    %c0_41 = arith.constant 0 : index
    %c160 = arith.constant 160 : index
    %111 = vector.load %arg10[%c0_41, %c160] : memref<8x256xf32, #tpu.memory_space<vmem>>, vector<8x16xf32>
    tpu.vector_store %arg10[%c0_41, %c160], %110 {strides = array<i32>} : memref<8x256xf32, #tpu.memory_space<vmem>>, vector<8x16xf32>,
    %112 = vector.extract_strided_slice %1 {offsets = [0, 48], sizes = [8, 16], strides = [1, 1]} : vector<8x128xf32> to vector<8x16xf32>
    %cst_42 = arith.constant dense<0.000000e+00> : vector<8xf32>
    %113 = vector.multi_reduction <add>, %112, %cst_42 [1] : vector<8x16xf32> to vector<8xf32>
    %114 = vector.shape_cast %113 : vector<8xf32> to vector<8x1xf32>
    %cst_43 = arith.constant 1.600000e+01 : f32
    %115 = vector.broadcast %cst_43 : f32 to vector<8x1xf32>
    %116 = arith.divf %114, %115 : vector<8x1xf32>
    %117 = vector.broadcast %116 : vector<8x1xf32> to vector<8x16xf32>
    %118 = arith.subf %112, %117 : vector<8x16xf32>
    %119 = arith.mulf %118, %118 : vector<8x16xf32>
    %cst_44 = arith.constant dense<0.000000e+00> : vector<8xf32>
    %120 = vector.multi_reduction <add>, %119, %cst_44 [1] : vector<8x16xf32> to vector<8xf32>
    %121 = vector.shape_cast %120 : vector<8xf32> to vector<8x1xf32>
    %cst_45 = arith.constant 1.600000e+01 : f32
    %122 = vector.broadcast %cst_45 : f32 to vector<8x1xf32>
    %123 = arith.divf %121, %122 : vector<8x1xf32>
    %cst_46 = arith.constant 9.99999974E-6 : f32
    %124 = vector.broadcast %cst_46 : f32 to vector<8x1xf32>
    %125 = arith.addf %123, %124 : vector<8x1xf32>
    %126 = math.rsqrt %125 : vector<8x1xf32>
    %127 = vector.broadcast %126 : vector<8x1xf32> to vector<8x16xf32>
    %128 = arith.mulf %118, %127 : vector<8x16xf32>
    %c0_47 = arith.constant 0 : index
    %c48 = arith.constant 48 : index
    %129 = vector.load %arg10[%c0_47, %c48] : memref<8x256xf32, #tpu.memory_space<vmem>>, vector<8x16xf32>
    tpu.vector_store %arg10[%c0_47, %c48], %128 {strides = array<i32>} : memref<8x256xf32, #tpu.memory_space<vmem>>, vector<8x16xf32>,
    %130 = vector.extract_strided_slice %3 {offsets = [0, 48], sizes = [8, 16], strides = [1, 1]} : vector<8x128xf32> to vector<8x16xf32>
    %cst_48 = arith.constant dense<0.000000e+00> : vector<8xf32>
    %131 = vector.multi_reduction <add>, %130, %cst_48 [1] : vector<8x16xf32> to vector<8xf32>
    %132 = vector.shape_cast %131 : vector<8xf32> to vector<8x1xf32>
    %cst_49 = arith.constant 1.600000e+01 : f32
    %133 = vector.broadcast %cst_49 : f32 to vector<8x1xf32>
    %134 = arith.divf %132, %133 : vector<8x1xf32>
    %135 = vector.broadcast %134 : vector<8x1xf32> to vector<8x16xf32>
    %136 = arith.subf %130, %135 : vector<8x16xf32>
    %137 = arith.mulf %136, %136 : vector<8x16xf32>
    %cst_50 = arith.constant dense<0.000000e+00> : vector<8xf32>
    %138 = vector.multi_reduction <add>, %137, %cst_50 [1] : vector<8x16xf32> to vector<8xf32>
    %139 = vector.shape_cast %138 : vector<8xf32> to vector<8x1xf32>
    %cst_51 = arith.constant 1.600000e+01 : f32
    %140 = vector.broadcast %cst_51 : f32 to vector<8x1xf32>
    %141 = arith.divf %139, %140 : vector<8x1xf32>
    %cst_52 = arith.constant 9.99999974E-6 : f32
    %142 = vector.broadcast %cst_52 : f32 to vector<8x1xf32>
    %143 = arith.addf %141, %142 : vector<8x1xf32>
    %144 = math.rsqrt %143 : vector<8x1xf32>
    %145 = vector.broadcast %144 : vector<8x1xf32> to vector<8x16xf32>
    %146 = arith.mulf %136, %145 : vector<8x16xf32>
    %c0_53 = arith.constant 0 : index
    %c176 = arith.constant 176 : index
    %147 = vector.load %arg10[%c0_53, %c176] : memref<8x256xf32, #tpu.memory_space<vmem>>, vector<8x16xf32>
    tpu.vector_store %arg10[%c0_53, %c176], %146 {strides = array<i32>} : memref<8x256xf32, #tpu.memory_space<vmem>>, vector<8x16xf32>,
    %148 = vector.extract_strided_slice %1 {offsets = [0, 64], sizes = [8, 16], strides = [1, 1]} : vector<8x128xf32> to vector<8x16xf32>
    %cst_54 = arith.constant dense<0.000000e+00> : vector<8xf32>
    %149 = vector.multi_reduction <add>, %148, %cst_54 [1] : vector<8x16xf32> to vector<8xf32>
    %150 = vector.shape_cast %149 : vector<8xf32> to vector<8x1xf32>
    %cst_55 = arith.constant 1.600000e+01 : f32
    %151 = vector.broadcast %cst_55 : f32 to vector<8x1xf32>
    %152 = arith.divf %150, %151 : vector<8x1xf32>
    %153 = vector.broadcast %152 : vector<8x1xf32> to vector<8x16xf32>
    %154 = arith.subf %148, %153 : vector<8x16xf32>
    %155 = arith.mulf %154, %154 : vector<8x16xf32>
    %cst_56 = arith.constant dense<0.000000e+00> : vector<8xf32>
    %156 = vector.multi_reduction <add>, %155, %cst_56 [1] : vector<8x16xf32> to vector<8xf32>
    %157 = vector.shape_cast %156 : vector<8xf32> to vector<8x1xf32>
    %cst_57 = arith.constant 1.600000e+01 : f32
    %158 = vector.broadcast %cst_57 : f32 to vector<8x1xf32>
    %159 = arith.divf %157, %158 : vector<8x1xf32>
    %cst_58 = arith.constant 9.99999974E-6 : f32
    %160 = vector.broadcast %cst_58 : f32 to vector<8x1xf32>
    %161 = arith.addf %159, %160 : vector<8x1xf32>
    %162 = math.rsqrt %161 : vector<8x1xf32>
    %163 = vector.broadcast %162 : vector<8x1xf32> to vector<8x16xf32>
    %164 = arith.mulf %154, %163 : vector<8x16xf32>
    %c0_59 = arith.constant 0 : index
    %c64 = arith.constant 64 : index
    %165 = vector.load %arg10[%c0_59, %c64] : memref<8x256xf32, #tpu.memory_space<vmem>>, vector<8x16xf32>
    tpu.vector_store %arg10[%c0_59, %c64], %164 {strides = array<i32>} : memref<8x256xf32, #tpu.memory_space<vmem>>, vector<8x16xf32>,
    %166 = vector.extract_strided_slice %3 {offsets = [0, 64], sizes = [8, 16], strides = [1, 1]} : vector<8x128xf32> to vector<8x16xf32>
    %cst_60 = arith.constant dense<0.000000e+00> : vector<8xf32>
    %167 = vector.multi_reduction <add>, %166, %cst_60 [1] : vector<8x16xf32> to vector<8xf32>
    %168 = vector.shape_cast %167 : vector<8xf32> to vector<8x1xf32>
    %cst_61 = arith.constant 1.600000e+01 : f32
    %169 = vector.broadcast %cst_61 : f32 to vector<8x1xf32>
    %170 = arith.divf %168, %169 : vector<8x1xf32>
    %171 = vector.broadcast %170 : vector<8x1xf32> to vector<8x16xf32>
    %172 = arith.subf %166, %171 : vector<8x16xf32>
    %173 = arith.mulf %172, %172 : vector<8x16xf32>
    %cst_62 = arith.constant dense<0.000000e+00> : vector<8xf32>
    %174 = vector.multi_reduction <add>, %173, %cst_62 [1] : vector<8x16xf32> to vector<8xf32>
    %175 = vector.shape_cast %174 : vector<8xf32> to vector<8x1xf32>
    %cst_63 = arith.constant 1.600000e+01 : f32
    %176 = vector.broadcast %cst_63 : f32 to vector<8x1xf32>
    %177 = arith.divf %175, %176 : vector<8x1xf32>
    %cst_64 = arith.constant 9.99999974E-6 : f32
    %178 = vector.broadcast %cst_64 : f32 to vector<8x1xf32>
    %179 = arith.addf %177, %178 : vector<8x1xf32>
    %180 = math.rsqrt %179 : vector<8x1xf32>
    %181 = vector.broadcast %180 : vector<8x1xf32> to vector<8x16xf32>
    %182 = arith.mulf %172, %181 : vector<8x16xf32>
    %c0_65 = arith.constant 0 : index
    %c192 = arith.constant 192 : index
    %183 = vector.load %arg10[%c0_65, %c192] : memref<8x256xf32, #tpu.memory_space<vmem>>, vector<8x16xf32>
    tpu.vector_store %arg10[%c0_65, %c192], %182 {strides = array<i32>} : memref<8x256xf32, #tpu.memory_space<vmem>>, vector<8x16xf32>,
    %184 = vector.extract_strided_slice %1 {offsets = [0, 80], sizes = [8, 16], strides = [1, 1]} : vector<8x128xf32> to vector<8x16xf32>
    %cst_66 = arith.constant dense<0.000000e+00> : vector<8xf32>
    %185 = vector.multi_reduction <add>, %184, %cst_66 [1] : vector<8x16xf32> to vector<8xf32>
    %186 = vector.shape_cast %185 : vector<8xf32> to vector<8x1xf32>
    %cst_67 = arith.constant 1.600000e+01 : f32
    %187 = vector.broadcast %cst_67 : f32 to vector<8x1xf32>
    %188 = arith.divf %186, %187 : vector<8x1xf32>
    %189 = vector.broadcast %188 : vector<8x1xf32> to vector<8x16xf32>
    %190 = arith.subf %184, %189 : vector<8x16xf32>
    %191 = arith.mulf %190, %190 : vector<8x16xf32>
    %cst_68 = arith.constant dense<0.000000e+00> : vector<8xf32>
    %192 = vector.multi_reduction <add>, %191, %cst_68 [1] : vector<8x16xf32> to vector<8xf32>
    %193 = vector.shape_cast %192 : vector<8xf32> to vector<8x1xf32>
    %cst_69 = arith.constant 1.600000e+01 : f32
    %194 = vector.broadcast %cst_69 : f32 to vector<8x1xf32>
    %195 = arith.divf %193, %194 : vector<8x1xf32>
    %cst_70 = arith.constant 9.99999974E-6 : f32
    %196 = vector.broadcast %cst_70 : f32 to vector<8x1xf32>
    %197 = arith.addf %195, %196 : vector<8x1xf32>
    %198 = math.rsqrt %197 : vector<8x1xf32>
    %199 = vector.broadcast %198 : vector<8x1xf32> to vector<8x16xf32>
    %200 = arith.mulf %190, %199 : vector<8x16xf32>
    %c0_71 = arith.constant 0 : index
    %c80 = arith.constant 80 : index
    %201 = vector.load %arg10[%c0_71, %c80] : memref<8x256xf32, #tpu.memory_space<vmem>>, vector<8x16xf32>
    tpu.vector_store %arg10[%c0_71, %c80], %200 {strides = array<i32>} : memref<8x256xf32, #tpu.memory_space<vmem>>, vector<8x16xf32>,
    %202 = vector.extract_strided_slice %3 {offsets = [0, 80], sizes = [8, 16], strides = [1, 1]} : vector<8x128xf32> to vector<8x16xf32>
    %cst_72 = arith.constant dense<0.000000e+00> : vector<8xf32>
    %203 = vector.multi_reduction <add>, %202, %cst_72 [1] : vector<8x16xf32> to vector<8xf32>
    %204 = vector.shape_cast %203 : vector<8xf32> to vector<8x1xf32>
    %cst_73 = arith.constant 1.600000e+01 : f32
    %205 = vector.broadcast %cst_73 : f32 to vector<8x1xf32>
    %206 = arith.divf %204, %205 : vector<8x1xf32>
    %207 = vector.broadcast %206 : vector<8x1xf32> to vector<8x16xf32>
    %208 = arith.subf %202, %207 : vector<8x16xf32>
    %209 = arith.mulf %208, %208 : vector<8x16xf32>
    %cst_74 = arith.constant dense<0.000000e+00> : vector<8xf32>
    %210 = vector.multi_reduction <add>, %209, %cst_74 [1] : vector<8x16xf32> to vector<8xf32>
    %211 = vector.shape_cast %210 : vector<8xf32> to vector<8x1xf32>
    %cst_75 = arith.constant 1.600000e+01 : f32
    %212 = vector.broadcast %cst_75 : f32 to vector<8x1xf32>
    %213 = arith.divf %211, %212 : vector<8x1xf32>
    %cst_76 = arith.constant 9.99999974E-6 : f32
    %214 = vector.broadcast %cst_76 : f32 to vector<8x1xf32>
    %215 = arith.addf %213, %214 : vector<8x1xf32>
    %216 = math.rsqrt %215 : vector<8x1xf32>
    %217 = vector.broadcast %216 : vector<8x1xf32> to vector<8x16xf32>
    %218 = arith.mulf %208, %217 : vector<8x16xf32>
    %c0_77 = arith.constant 0 : index
    %c208 = arith.constant 208 : index
    %219 = vector.load %arg10[%c0_77, %c208] : memref<8x256xf32, #tpu.memory_space<vmem>>, vector<8x16xf32>
    tpu.vector_store %arg10[%c0_77, %c208], %218 {strides = array<i32>} : memref<8x256xf32, #tpu.memory_space<vmem>>, vector<8x16xf32>,
    %220 = vector.extract_strided_slice %1 {offsets = [0, 96], sizes = [8, 16], strides = [1, 1]} : vector<8x128xf32> to vector<8x16xf32>
    %cst_78 = arith.constant dense<0.000000e+00> : vector<8xf32>
    %221 = vector.multi_reduction <add>, %220, %cst_78 [1] : vector<8x16xf32> to vector<8xf32>
    %222 = vector.shape_cast %221 : vector<8xf32> to vector<8x1xf32>
    %cst_79 = arith.constant 1.600000e+01 : f32
    %223 = vector.broadcast %cst_79 : f32 to vector<8x1xf32>
    %224 = arith.divf %222, %223 : vector<8x1xf32>
    %225 = vector.broadcast %224 : vector<8x1xf32> to vector<8x16xf32>
    %226 = arith.subf %220, %225 : vector<8x16xf32>
    %227 = arith.mulf %226, %226 : vector<8x16xf32>
    %cst_80 = arith.constant dense<0.000000e+00> : vector<8xf32>
    %228 = vector.multi_reduction <add>, %227, %cst_80 [1] : vector<8x16xf32> to vector<8xf32>
    %229 = vector.shape_cast %228 : vector<8xf32> to vector<8x1xf32>
    %cst_81 = arith.constant 1.600000e+01 : f32
    %230 = vector.broadcast %cst_81 : f32 to vector<8x1xf32>
    %231 = arith.divf %229, %230 : vector<8x1xf32>
    %cst_82 = arith.constant 9.99999974E-6 : f32
    %232 = vector.broadcast %cst_82 : f32 to vector<8x1xf32>
    %233 = arith.addf %231, %232 : vector<8x1xf32>
    %234 = math.rsqrt %233 : vector<8x1xf32>
    %235 = vector.broadcast %234 : vector<8x1xf32> to vector<8x16xf32>
    %236 = arith.mulf %226, %235 : vector<8x16xf32>
    %c0_83 = arith.constant 0 : index
    %c96 = arith.constant 96 : index
    %237 = vector.load %arg10[%c0_83, %c96] : memref<8x256xf32, #tpu.memory_space<vmem>>, vector<8x16xf32>
    tpu.vector_store %arg10[%c0_83, %c96], %236 {strides = array<i32>} : memref<8x256xf32, #tpu.memory_space<vmem>>, vector<8x16xf32>,
    %238 = vector.extract_strided_slice %3 {offsets = [0, 96], sizes = [8, 16], strides = [1, 1]} : vector<8x128xf32> to vector<8x16xf32>
    %cst_84 = arith.constant dense<0.000000e+00> : vector<8xf32>
    %239 = vector.multi_reduction <add>, %238, %cst_84 [1] : vector<8x16xf32> to vector<8xf32>
    %240 = vector.shape_cast %239 : vector<8xf32> to vector<8x1xf32>
    %cst_85 = arith.constant 1.600000e+01 : f32
    %241 = vector.broadcast %cst_85 : f32 to vector<8x1xf32>
    %242 = arith.divf %240, %241 : vector<8x1xf32>
    %243 = vector.broadcast %242 : vector<8x1xf32> to vector<8x16xf32>
    %244 = arith.subf %238, %243 : vector<8x16xf32>
    %245 = arith.mulf %244, %244 : vector<8x16xf32>
    %cst_86 = arith.constant dense<0.000000e+00> : vector<8xf32>
    %246 = vector.multi_reduction <add>, %245, %cst_86 [1] : vector<8x16xf32> to vector<8xf32>
    %247 = vector.shape_cast %246 : vector<8xf32> to vector<8x1xf32>
    %cst_87 = arith.constant 1.600000e+01 : f32
    %248 = vector.broadcast %cst_87 : f32 to vector<8x1xf32>
    %249 = arith.divf %247, %248 : vector<8x1xf32>
    %cst_88 = arith.constant 9.99999974E-6 : f32
    %250 = vector.broadcast %cst_88 : f32 to vector<8x1xf32>
    %251 = arith.addf %249, %250 : vector<8x1xf32>
    %252 = math.rsqrt %251 : vector<8x1xf32>
    %253 = vector.broadcast %252 : vector<8x1xf32> to vector<8x16xf32>
    %254 = arith.mulf %244, %253 : vector<8x16xf32>
    %c0_89 = arith.constant 0 : index
    %c224 = arith.constant 224 : index
    %255 = vector.load %arg10[%c0_89, %c224] : memref<8x256xf32, #tpu.memory_space<vmem>>, vector<8x16xf32>
    tpu.vector_store %arg10[%c0_89, %c224], %254 {strides = array<i32>} : memref<8x256xf32, #tpu.memory_space<vmem>>, vector<8x16xf32>,
    %256 = vector.extract_strided_slice %1 {offsets = [0, 112], sizes = [8, 16], strides = [1, 1]} : vector<8x128xf32> to vector<8x16xf32>
    %cst_90 = arith.constant dense<0.000000e+00> : vector<8xf32>
    %257 = vector.multi_reduction <add>, %256, %cst_90 [1] : vector<8x16xf32> to vector<8xf32>
    %258 = vector.shape_cast %257 : vector<8xf32> to vector<8x1xf32>
    %cst_91 = arith.constant 1.600000e+01 : f32
    %259 = vector.broadcast %cst_91 : f32 to vector<8x1xf32>
    %260 = arith.divf %258, %259 : vector<8x1xf32>
    %261 = vector.broadcast %260 : vector<8x1xf32> to vector<8x16xf32>
    %262 = arith.subf %256, %261 : vector<8x16xf32>
    %263 = arith.mulf %262, %262 : vector<8x16xf32>
    %cst_92 = arith.constant dense<0.000000e+00> : vector<8xf32>
    %264 = vector.multi_reduction <add>, %263, %cst_92 [1] : vector<8x16xf32> to vector<8xf32>
    %265 = vector.shape_cast %264 : vector<8xf32> to vector<8x1xf32>
    %cst_93 = arith.constant 1.600000e+01 : f32
    %266 = vector.broadcast %cst_93 : f32 to vector<8x1xf32>
    %267 = arith.divf %265, %266 : vector<8x1xf32>
    %cst_94 = arith.constant 9.99999974E-6 : f32
    %268 = vector.broadcast %cst_94 : f32 to vector<8x1xf32>
    %269 = arith.addf %267, %268 : vector<8x1xf32>
    %270 = math.rsqrt %269 : vector<8x1xf32>
    %271 = vector.broadcast %270 : vector<8x1xf32> to vector<8x16xf32>
    %272 = arith.mulf %262, %271 : vector<8x16xf32>
    %c0_95 = arith.constant 0 : index
    %c112 = arith.constant 112 : index
    %273 = vector.load %arg10[%c0_95, %c112] : memref<8x256xf32, #tpu.memory_space<vmem>>, vector<8x16xf32>
    tpu.vector_store %arg10[%c0_95, %c112], %272 {strides = array<i32>} : memref<8x256xf32, #tpu.memory_space<vmem>>, vector<8x16xf32>,
    %274 = vector.extract_strided_slice %3 {offsets = [0, 112], sizes = [8, 16], strides = [1, 1]} : vector<8x128xf32> to vector<8x16xf32>
    %cst_96 = arith.constant dense<0.000000e+00> : vector<8xf32>
    %275 = vector.multi_reduction <add>, %274, %cst_96 [1] : vector<8x16xf32> to vector<8xf32>
    %276 = vector.shape_cast %275 : vector<8xf32> to vector<8x1xf32>
    %cst_97 = arith.constant 1.600000e+01 : f32
    %277 = vector.broadcast %cst_97 : f32 to vector<8x1xf32>
    %278 = arith.divf %276, %277 : vector<8x1xf32>
    %279 = vector.broadcast %278 : vector<8x1xf32> to vector<8x16xf32>
    %280 = arith.subf %274, %279 : vector<8x16xf32>
    %281 = arith.mulf %280, %280 : vector<8x16xf32>
    %cst_98 = arith.constant dense<0.000000e+00> : vector<8xf32>
    %282 = vector.multi_reduction <add>, %281, %cst_98 [1] : vector<8x16xf32> to vector<8xf32>
    %283 = vector.shape_cast %282 : vector<8xf32> to vector<8x1xf32>
    %cst_99 = arith.constant 1.600000e+01 : f32
    %284 = vector.broadcast %cst_99 : f32 to vector<8x1xf32>
    %285 = arith.divf %283, %284 : vector<8x1xf32>
    %cst_100 = arith.constant 9.99999974E-6 : f32
    %286 = vector.broadcast %cst_100 : f32 to vector<8x1xf32>
    %287 = arith.addf %285, %286 : vector<8x1xf32>
    %288 = math.rsqrt %287 : vector<8x1xf32>
    %289 = vector.broadcast %288 : vector<8x1xf32> to vector<8x16xf32>
    %290 = arith.mulf %280, %289 : vector<8x16xf32>
    %c0_101 = arith.constant 0 : index
    %c240 = arith.constant 240 : index
    %291 = vector.load %arg10[%c0_101, %c240] : memref<8x256xf32, #tpu.memory_space<vmem>>, vector<8x16xf32>
    tpu.vector_store %arg10[%c0_101, %c240], %290 {strides = array<i32>} : memref<8x256xf32, #tpu.memory_space<vmem>>, vector<8x16xf32>,
    %c0_102 = arith.constant 0 : index
    %c0_103 = arith.constant 0 : index
    %292 = vector.load %arg10[%c0_102, %c0_103] : memref<8x256xf32, #tpu.memory_space<vmem>>, vector<8x256xf32>
    %c0_104 = arith.constant 0 : index
    %c0_105 = arith.constant 0 : index
    %293 = vector.load %arg3[%c0_104, %c0_105] : memref<4x4xf32, #tpu.memory_space<vmem>>, vector<4x4xf32>
    %294 = vector.extract_strided_slice %292 {offsets = [4, 0], sizes = [4, 256], strides = [1, 1]} : vector<8x256xf32> to vector<4x256xf32>
    %cst_106 = arith.constant dense<0.000000e+00> : vector<4x256xf32>
    %295 = tpu.matmul %293, %294, %cst_106 {dimension_numbers = #tpu.dot_dimension_numbers<[1], [0], [0], [1], [0, 0, 1, 1], [], []>} : vector<4x4xf32>, vector<4x256xf32>, vector<4x256xf32> -> vector<4x256xf32>
    %c0_107 = arith.constant 0 : index
    %c0_108 = arith.constant 0 : index
    %296 = vector.load %arg4[%c0_107, %c0_108] : memref<4x1xf32, #tpu.memory_space<vmem>>, vector<4x1xf32>
    %297 = vector.broadcast %296 : vector<4x1xf32> to vector<4x256xf32>
    %298 = arith.addf %295, %297 : vector<4x256xf32>
    %299 = vector.extract_strided_slice %1 {offsets = [0, 0], sizes = [4, 128], strides = [1, 1]} : vector<8x128xf32> to vector<4x128xf32>
    %300 = vector.extract_strided_slice %298 {offsets = [0, 0], sizes = [4, 128], strides = [1, 1]} : vector<4x256xf32> to vector<4x128xf32>
    %301 = arith.mulf %299, %300 : vector<4x128xf32>
    %302 = vector.extract_strided_slice %3 {offsets = [0, 0], sizes = [4, 128], strides = [1, 1]} : vector<8x128xf32> to vector<4x128xf32>
    %303 = vector.extract_strided_slice %298 {offsets = [0, 128], sizes = [4, 128], strides = [1, 1]} : vector<4x256xf32> to vector<4x128xf32>
    %304 = arith.mulf %302, %303 : vector<4x128xf32>
    %c0_109 = arith.constant 0 : index
    %c0_110 = arith.constant 0 : index
    %305 = vector.load %arg5[%c0_109, %c0_110] : memref<8x8xf32, #tpu.memory_space<vmem>>, vector<8x8xf32>
    %cst_111 = arith.constant dense<0.000000e+00> : vector<8x256xf32>
    %306 = tpu.matmul %305, %292, %cst_111 {dimension_numbers = #tpu.dot_dimension_numbers<[1], [0], [0], [1], [0, 0, 1, 1], [], []>} : vector<8x8xf32>, vector<8x256xf32>, vector<8x256xf32> -> vector<8x256xf32>
    %c0_112 = arith.constant 0 : index
    %c0_113 = arith.constant 0 : index
    %307 = vector.load %arg6[%c0_112, %c0_113] : memref<8x1xf32, #tpu.memory_space<vmem>>, vector<8x1xf32>
    %308 = vector.broadcast %307 : vector<8x1xf32> to vector<8x256xf32>
    %309 = arith.addf %306, %308 : vector<8x256xf32>
    %310 = vector.extract_strided_slice %292 {offsets = [0, 0], sizes = [8, 128], strides = [1, 1]} : vector<8x256xf32> to vector<8x128xf32>
    %311 = vector.extract_strided_slice %309 {offsets = [0, 128], sizes = [8, 128], strides = [1, 1]} : vector<8x256xf32> to vector<8x128xf32>
    %312 = arith.mulf %310, %311 : vector<8x128xf32>
    %313 = vector.extract_strided_slice %292 {offsets = [0, 128], sizes = [8, 128], strides = [1, 1]} : vector<8x256xf32> to vector<8x128xf32>
    %314 = vector.extract_strided_slice %309 {offsets = [0, 0], sizes = [8, 128], strides = [1, 1]} : vector<8x256xf32> to vector<8x128xf32>
    %315 = arith.mulf %313, %314 : vector<8x128xf32>
    %c0_114 = arith.constant 0 : index
    %c0_115 = arith.constant 0 : index
    %316 = vector.load %arg7[%c0_114, %c0_115] : memref<4x8xf32, #tpu.memory_space<vmem>>, vector<4x8xf32>
    %c0_116 = arith.constant 0 : index
    %c0_117 = arith.constant 0 : index
    %317 = vector.load %arg8[%c0_116, %c0_117] : memref<4x1xf32, #tpu.memory_space<vmem>>, vector<4x1xf32>
    %cst_118 = arith.constant dense<0.000000e+00> : vector<4x128xf32>
    %318 = tpu.matmul %316, %312, %cst_118 {dimension_numbers = #tpu.dot_dimension_numbers<[1], [0], [0], [1], [0, 0, 1, 1], [], []>} : vector<4x8xf32>, vector<8x128xf32>, vector<4x128xf32> -> vector<4x128xf32>
    %319 = arith.addf %301, %318 : vector<4x128xf32>
    %320 = vector.broadcast %317 : vector<4x1xf32> to vector<4x128xf32>
    %321 = arith.addf %319, %320 : vector<4x128xf32>
    %c0_119 = arith.constant 0 : index
    %c0_120 = arith.constant 0 : index
    %c0_121 = arith.constant 0 : index
    %c0_122 = arith.constant 0 : index
    %322 = vector.load %arg9[%c0_119, %c0_120, %c0_121, %c0_122] : memref<1x4x2x128xf32, #tpu.memory_space<vmem>>, vector<1x4x1x128xf32>
    %323 = vector.shape_cast %322 : vector<1x4x1x128xf32> to vector<4x128xf32>
    %324 = vector.shape_cast %321 : vector<4x128xf32> to vector<1x4x1x128xf32>
    tpu.vector_store %arg9[%c0_119, %c0_120, %c0_121, %c0_122], %324 {strides = array<i32>} : memref<1x4x2x128xf32, #tpu.memory_space<vmem>>, vector<1x4x1x128xf32>,
    %cst_123 = arith.constant dense<0.000000e+00> : vector<4x128xf32>
    %325 = tpu.matmul %316, %315, %cst_123 {dimension_numbers = #tpu.dot_dimension_numbers<[1], [0], [0], [1], [0, 0, 1, 1], [], []>} : vector<4x8xf32>, vector<8x128xf32>, vector<4x128xf32> -> vector<4x128xf32>
    %326 = arith.addf %304, %325 : vector<4x128xf32>
    %327 = vector.broadcast %317 : vector<4x1xf32> to vector<4x128xf32>
    %328 = arith.addf %326, %327 : vector<4x128xf32>
    %c0_124 = arith.constant 0 : index
    %c0_125 = arith.constant 0 : index
    %c1_126 = arith.constant 1 : index
    %c0_127 = arith.constant 0 : index
    %329 = vector.load %arg9[%c0_124, %c0_125, %c1_126, %c0_127] : memref<1x4x2x128xf32, #tpu.memory_space<vmem>>, vector<1x4x1x128xf32>
    %330 = vector.shape_cast %329 : vector<1x4x1x128xf32> to vector<4x128xf32>
    %331 = vector.shape_cast %328 : vector<4x128xf32> to vector<1x4x1x128xf32>
    tpu.vector_store %arg9[%c0_124, %c0_125, %c1_126, %c0_127], %331 {strides = array<i32>} : memref<1x4x2x128xf32, #tpu.memory_space<vmem>>, vector<1x4x1x128xf32>,
    return
  }
  func.func @transform_0(%arg0: i32, %arg1: i32) -> (i32, i32, i32, i32) {
    %c0_i32 = arith.constant 0 : i32
    %c0_i32_0 = arith.constant 0 : i32
    %c0_i32_1 = arith.constant 0 : i32
    return %arg0, %c0_i32, %c0_i32_0, %arg1 : i32, i32, i32, i32
  }
  func.func @transform_1(%arg0: i32, %arg1: i32) -> (i32, i32) {
    %c0_i32 = arith.constant 0 : i32
    %c0_i32_0 = arith.constant 0 : i32
    %c0_i32_1 = arith.constant 0 : i32
    return %c0_i32, %c0_i32_0 : i32, i32
  }
  func.func @transform_2(%arg0: i32, %arg1: i32) -> (i32, i32) {
    %c0_i32 = arith.constant 0 : i32
    %c0_i32_0 = arith.constant 0 : i32
    %c0_i32_1 = arith.constant 0 : i32
    return %c0_i32, %c0_i32_0 : i32, i32
  }
  func.func @transform_3(%arg0: i32, %arg1: i32) -> (i32, i32) {
    %c0_i32 = arith.constant 0 : i32
    %c0_i32_0 = arith.constant 0 : i32
    %c0_i32_1 = arith.constant 0 : i32
    return %c0_i32, %c0_i32_0 : i32, i32
  }
  func.func @transform_4(%arg0: i32, %arg1: i32) -> (i32, i32) {
    %c0_i32 = arith.constant 0 : i32
    %c0_i32_0 = arith.constant 0 : i32
    %c0_i32_1 = arith.constant 0 : i32
    return %c0_i32, %c0_i32_0 : i32, i32
  }
  func.func @transform_5(%arg0: i32, %arg1: i32) -> (i32, i32) {
    %c0_i32 = arith.constant 0 : i32
    %c0_i32_0 = arith.constant 0 : i32
    %c0_i32_1 = arith.constant 0 : i32
    return %c0_i32, %c0_i32_0 : i32, i32
  }
  func.func @transform_6(%arg0: i32, %arg1: i32) -> (i32, i32) {
    %c0_i32 = arith.constant 0 : i32
    %c0_i32_0 = arith.constant 0 : i32
    %c0_i32_1 = arith.constant 0 : i32
    return %c0_i32, %c0_i32_0 : i32, i32
  }
  func.func @transform_7(%arg0: i32, %arg1: i32) -> (i32, i32, i32, i32) {
    %c0_i32 = arith.constant 0 : i32
    %c0_i32_0 = arith.constant 0 : i32
    %c0_i32_1 = arith.constant 0 : i32
    return %arg0, %c0_i32, %c0_i32_0, %arg1 : i32, i32, i32, i32
  }
}

</mosaic_0001>

<bundles_post_ra>
// kernel: tpu_custom_call.1
= control target key start
LH: loop header
LB: loop body
LE: loop exit
PB: predicated region body
PF: predicated region fallthrough
CT: control target
= control target key end

     0   :  { %12 = vsyncpa [#allocation4], 0  ;;  %s4727_s0 = inlined_call_operand.hbm [shape: f32[2,8,2,128], index: 0, kind: input, shape index: {}]   ;;  %s4728_s1 = inlined_call_operand.vmem [shape: f32[4,4], index: 1, kind: input, shape index: {}]   ;;  %s4729_s2 = inlined_call_operand.vmem [shape: f32[4,1], index: 2, kind: input, shape index: {}]   ;;  %s4730_s3 = inlined_call_operand.vmem [shape: f32[8,8], index: 3, kind: input, shape index: {}]   ;;  %s4731_s4 = inlined_call_operand.vmem [shape: f32[8,1], index: 4, kind: input, shape index: {}]   ;;  %s4732_s5 = inlined_call_operand.vmem [shape: f32[4,8], index: 5, kind: input, shape index: {}]   ;;  %s4733_s6 = inlined_call_operand.vmem [shape: f32[4,1], index: 6, kind: input, shape index: {}]   ;;  %s4734_s7 = inlined_call_operand.hbm [shape: f32[2,4,2,128], index: 7, kind: output, shape index: {}]  }
   0x1   :  { %14 = vsyncpa [#allocation4 + $0x1], 0 }
   0x2   :  { %15 = vsyncpa [#allocation5], 0 }
   0x3   :  { %17 = vsyncpa [#allocation5 + $0x1], 0  ;;  %s3106_s24 = smov 0   ;;  %s3108_s25 = smov 0  }
   0x4   :  { %s3110_s26 = smov 0   ;;  %s3112_s27 = smov 0  }
   0x5   :  { %s3114_s28 = smov 0   ;;  %s3116_s29 = smov 0  }
   0x6 LB: > { %s2767_s30 = sadd.s32 4294967295, %s3049_s29   ;;  %s2768_s8 = sadd.s32 4294967294, %s3049_s29   ;;  %s3049_s29 = sphi %s3116_s29, %s23_s29   ;;  %s3045_s28 = sphi %s3114_s28, %s5021_s28   ;;  %s3041_s27 = sphi %s3112_s27, %s5020_s27   ;;  %s3037_s26 = sphi %s3110_s26, %s5019_s26   ;;  %s3033_s25 = sphi %s3108_s25, %s5018_s25   ;;  %s3029_s24 = sphi %s3106_s24, %s5017_s24  }
   0x7   : > { %s35_s9 = sadd.s32 1, %s3045_s28  ;;  %s44_s10 = sadd.s32 1, %s3037_s26 }
   0x8   : > { %p37_p0 = scmp.ge.s32.totalorder %s35_s9, 2  ;;  %p51_p1 = scmp.ne.s32.totalorder %s3037_s26, %s3033_s25 }
   0x9   : > { %p52_p2 = scmp.eq.s32.totalorder %s3049_s29, 0  ;;  %p57_p3 = scmp.ne.s32.totalorder %s3033_s25, %s3029_s24 }
   0xa   : > { %s5023_s9 = smov (%p37_p0, %s35_s9), 0  ;;  %p58_p5 = scmp.eq.s32.totalorder %s2767_s30, 0 }
   0xb   : > { %p3147_p4 = por %p52_p2, %p51_p1  ;;  %s39_s12 = ssub.s32 %s3045_s28, %s5023_s9 }
   0xc   : > { %p209_p6 = scmp.eq.s32.totalorder %s2767_s30, 1  ;;  %p42_p7 = scmp.eq.s32.totalorder %s39_s12, 0 }
   0xd   : > { %p3153_p8 = por %p58_p5, %p57_p3  ;;  %p215_p10 = scmp.eq.s32.totalorder %s2768_s8, 1 }
   0xe   : > { %p3157_p9 = por %p209_p6, %p51_p1  ;;  %p2816_p13 = scmp.lt.s32.totalorder %s3049_s29, 2 }
   0xf   : > { %s3162_s15 = scalar_select %p42_p7, %s3037_s26, %s44_s10  }
  0x10   : > { %s4828_s14 = scalar_select %p3157_p9, 1, 0 }
  0x11   : > { %p3164_p11 = por %p215_p10, %p57_p3  ;;  %s253_s17 = sand.u32 1, %s3037_s26  }
  0x12   : > { %s2771_s18 = sshll.u32 %s253_s17, 4  ;;  %s2788_s19 = sshll.u32 %s3045_s28, 8 }
  0x13   : > { %s4829_s16 = scalar_select %p3164_p11, 1, 0 }
  0x14   : > { %s3175_s22 = scalar_lea.hbm %s4727_s0, %s2788_s19  ;;  %s257_s23 = scalar_lea.vmem [#allocation3], %s2771_s18 }
  0x15   : > { %s265_s30 = sshll.u32 %s257_s23, 4  ;;  %p3181_p0 = pnand %p2816_p13, %p3147_p4  ;;  %s3177_s30 = int_to_ptr.vmem [resolvable:$true] %s265_s30 }
  0x16   : > { %s3186_s10 = scalar_lea.sflag [#allocation4], %s253_s17  ;;  %s2937_s12 = scalar_lea.hbm %s3175_s22, 256 }
  0x17   : > { %p2938_p2 = scmp.ne.s32.totalorder %s3175_s22, %s2937_s12  ;;  %p2939_p3 = pneg %p3181_p0 }
  0x18   : > { %s2942_s11 = scalar_lea.hbm %s4727_s0, 512  ;;  %p2943_p4 = scmp.lt.u32.totalorder %s3175_s22, %s4727_s0 }
  0x19   : > { %p2940_p5 = pnand %p2939_p3, %p2938_p2  ;;  %p2944_p7 = scmp.lt.u32.totalorder %s2942_s11, %s2937_s12 }
  0x1a   : > { %p2946_p13 = scmp.lt.u32.totalorder %s2937_s12, %s3175_s22 }
  0x1b   : > { %p2941_p6 = pneg %p2940_p5  ;;  %p2945_p10 = por %p2944_p7, %p2943_p4 }
  0x1d   : > { %p2947_p12 = por %p2946_p13, %p2945_p10 }
  0x1f   : > { %p2948_p1 = pnand %p2947_p12, %p2941_p6 }
  0x21   : > { %2951 = shalt.err (!%p2948_p1)
}
  0x22   : > { %s2952_s17 = scalar_lea.vmem %s3177_s30, 256  ;;  %s3051_s23 = smov [#allocation3]  }
  0x23   : > { %p2953_p2 = scmp.ne.s32.totalorder %s3177_s30, %s2952_s17  ;;  %s2957_s18 = sshll.u32 %s3051_s23, 4  ;;  %s2958_s18 = int_to_ptr.vmem [resolvable:$false] %s2957_s18 }
  0x24   : > { %s2959_s19 = scalar_lea.vmem %s2958_s18, 512  ;;  %p2960_p9 = scmp.lt.s32.totalorder %s3177_s30, %s2958_s18 }
  0x25   : > { %p2955_p5 = pnand %p2953_p2, %p2939_p3  ;;  %p2961_p4 = scmp.lt.s32.totalorder %s2959_s19, %s2952_s17 }
  0x27   : > { %p2956_p11 = pneg %p2955_p5  ;;  %p2962_p7 = por %p2961_p4, %p2960_p9 }
  0x29   : > { %p2963_p10 = pnand %p2962_p7, %p2956_p11 }
  0x2b   : > { %2966 = shalt.err (!%p2963_p10)
}
  0x2c   : > { %s3052_s12 = smov 32   ;;  %s3053_s11 = smov 2  }
  0x2d   : > { %2811 = dma.hbm_to_vmem [thread:$0]  (!%p3181_p0), %s3175_s22, 256, %s3177_s30, %s3186_s10, %s3052_s12, %s3052_s12, %s3053_s11  }
  0x2e   : > { %p273_p12 = scmp.lt.s32.totalorder %s3049_s29, 3  ;;  %p4831_p1 = scmp.ge.s32.totalorder %s3049_s29, 1 }
  0x30   : > { %p274_p3 = pnand %p4831_p1, %p273_p12 }
  0x32   : > { %277 = sbr.rel (%p274_p3) target bundleno = 1272 (0x4f8), region = 48 }
  0x39   : > { %s3218_s20 = sand.u32 1, %s3033_s25  }
  0x3a   : > { %s2775_s21 = sshll.u32 %s3218_s20, 4  ;;  %s280_s17 = scalar_lea.sflag [#allocation4], %s3218_s20 }
  0x3b   : > { %s3222_s23 = scalar_lea.vmem [#allocation3], %s2775_s21 }
  0x3c   : > { %3020 = dma.done.wait (%p3153_p8), %s280_s17, 256  }
  0x3d   : > { %3022 = vsyncadd (%p3153_p8), %s280_s17, 4294967040  ;;  %vm339_vm0 = vcmask 1041409   ;;  %vm342_vm1 = vcmask 1042434   ;;  %vm345_vm2 = vcmask 1043459   ;;  %vm348_vm3 = vcmask 1044484   ;;  %s3054_s13 = smov 112  }
  0x3e   : > { %v3229_v0 = vld [vmem:[%s3222_s23 + $0x1] sm:$0x1]  ;;  %v3232_v1 = vld [vmem:[%s3222_s23 + $0x3] sm:$0x1]  ;;  %v3235_v2 = vld [vmem:[%s3222_s23 + $0x5] sm:$0x1] }
  0x3f   : > { %v3238_v3 = vld [vmem:[%s3222_s23 + $0x7] sm:$0x1]  ;;  %v3241_v4 = vld [vmem:[%s3222_s23 + $0x9] sm:$0x1]  ;;  %v3244_v5 = vld [vmem:[%s3222_s23 + $0xb] sm:$0x1] }
  0x40   : > { %v3247_v6 = vld [vmem:[%s3222_s23 + $0xd] sm:$0x1]  ;;  %vm351_vm4 = vcmask 1045509   ;;  %vm354_vm5 = vcmask 1046534   ;;  %v483_v7 = vrot.slane %v3232_v1, 7  ;;  %v485_v8 = vrot.slane %v3235_v2, 6 }
  0x41   : > { %v3252_v9 = vld [vmem:[%s3222_s23 + $0xf] sm:$0x1]  ;;  %v487_v10 = vrot.slane %v3238_v3, 5  ;;  %v489_v11 = vrot.slane %v3241_v4, 4  ;;  %v491_v12 = vrot.slane %v3244_v5, 3  ;;  %v493_v13 = vrot.slane %v3247_v6, 2 }
  0x42   : > { %v484_v14 = vsel %vm339_vm0, %v483_v7, %v3229_v0  ;;  %v3261_v15 = vld [vmem:[%s3222_s23] sm:$0x1]  ;;  %v3264_v16 = vld [vmem:[%s3222_s23 + $0x2] sm:$0x1]  ;;  %v3267_v17 = vld [vmem:[%s3222_s23 + $0x4] sm:$0x1] }
  0x43   : > { %v486_v18 = vsel %vm342_vm1, %v485_v8, %v484_v14  ;;  %v3271_v19 = vld [vmem:[%s3222_s23 + $0x6] sm:$0x1]  ;;  %v3274_v20 = vld [vmem:[%s3222_s23 + $0x8] sm:$0x1]  ;;  %v3277_v21 = vld [vmem:[%s3222_s23 + $0xa] sm:$0x1] }
  0x44   : > { %v488_v22 = vsel %vm345_vm2, %v487_v10, %v486_v18  ;;  %v495_v23 = vrot.slane %v3252_v9, 1  ;;  %v3282_v24 = vld [vmem:[%s3222_s23 + $0xc] sm:$0x1]  ;;  %v338_v25 = vrot.slane %v3264_v16, 7  ;;  %v341_v26 = vrot.slane %v3267_v17, 6  ;;  %s3055_s22 = smov 96  }
  0x45   : > { %vm357_vm6 = vcmask 1047559   ;;  %v490_v27 = vsel %vm348_vm3, %v489_v11, %v488_v22  ;;  %v3288_v28 = vld [vmem:[%s3222_s23 + $0xe] sm:$0x1]  ;;  %v344_v29 = vrot.slane %v3271_v19, 5  ;;  %v347_v30 = vrot.slane %v3274_v20, 4  ;;  %s3056_s30 = smov 80  }
  0x46   : > { %v492_v31 = vsel %vm351_vm4, %v491_v12, %v490_v27  ;;  %v340_v32 = vsel %vm339_vm0, %v338_v25, %v3261_v15  ;;  %v350_v33 = vrot.slane %v3277_v21, 3  ;;  %v353_v36 = vrot.slane %v3282_v24, 2  ;;  %s3057_s8 = smov 64   ;;  %s3058_s10 = smov 48  }
  0x47   : > { %v494_v34 = vsel %vm354_vm5, %v493_v13, %v492_v31  ;;  %v343_v35 = vsel %vm342_vm1, %v341_v26, %v340_v32  ;;  %v356_v39 = vrot.slane %v3288_v28, 1  ;;  %vm360_vm7 = vcmask 130048   ;;  %s3059_s18 = smov 32   ;;  %s3060_s19 = smov 16  }
  0x48   : > { %v496_v37 = vsel %vm357_vm6, %v495_v23, %v494_v34  ;;  %v346_v38 = vsel %vm345_vm2, %v344_v29, %v343_v35  ;;  %vm728_vm8 = vcmask 261248   ;;  %vm965_vm9 = vcmask 392448   ;;  %s2776_s21 = sshll.u32 %s3218_s20, 3  ;;  %s2789_s17 = sshll.u32 %s3041_s27, 7 }
  0x49   : > { %730 = vrot.lane.b32.xlu1 %v496_v37, %s3054_s13  ;;  %v349_v40 = vsel %vm348_vm3, %v347_v30, %v346_v38  ;;  %v498_v45 = vsel %vm360_vm7, %v496_v37, 0.0  ;;  %vm1202_vm10 = vcmask 523648   ;;  %vm1439_vm11 = vcmask 654848   ;;  %s4674_s27 = scalar_lea.hbm %s4734_s7, %s2789_s17  ;;  %p5014_p9 = scmp.ne.s32.totalorder %s4828_s14, 0 }
  0x4a   : > { %v352_v41 = vsel %vm351_vm4, %v350_v33, %v349_v40  ;;  %vm1676_vm12 = vcmask 786048   ;;  %vm1913_vm13 = vcmask 917248   ;;  %vm2150_vm14 = vcmask 1048448  }
  0x4b   : > { %v355_v42 = vsel %vm354_vm5, %v353_v36, %v352_v41  ;;  %vm2287_vm15 = vcmask 1043456  }
  0x4c   : > { %v358_v43 = vsel %vm357_vm6, %v356_v39, %v355_v42 }
  0x4d   : > { %v361_v44 = vsel %vm360_vm7, %v358_v43, 0.0 }
  0x4e   : > { %362 = vadd.xlane.f32.xlu0 %v361_v44 }
  0x64   : > { %611 = vrot.lane.b32.xlu0 %v358_v43, %s3054_s13 }
  0x68   : > { %848 = vrot.lane.b32.xlu0 %v358_v43, %s3055_s22 }
  0x6c   : > { %1085 = vrot.lane.b32.xlu0 %v358_v43, %s3056_s30 }
  0x6d   : > { %499 = vadd.xlane.f32.xlu1 %v498_v45 }
  0x70   : > { %1322 = vrot.lane.b32.xlu0 %v358_v43, %s3057_s8 }
  0x74   : > { %1559 = vrot.lane.b32.xlu0 %v358_v43, %s3058_s10 }
  0x78   : > { %1796 = vrot.lane.b32.xlu0 %v358_v43, %s3059_s18 }
  0x7c   : > { %2033 = vrot.lane.b32.xlu0 %v358_v43, %s3060_s19 }
  0x7e   : > { %967 = vrot.lane.b32.xlu1 %v496_v37, %s3055_s22 }
  0x82   : > { %1204 = vrot.lane.b32.xlu1 %v496_v37, %s3056_s30 }
  0x86   : > { %1441 = vrot.lane.b32.xlu1 %v496_v37, %s3057_s8 }
  0x8a   : > { %1678 = vrot.lane.b32.xlu1 %v496_v37, %s3058_s10 }
  0x8e   : > { %1915 = vrot.lane.b32.xlu1 %v496_v37, %s3059_s18 }
  0x92   : > { %2152 = vrot.lane.b32.xlu1 %v496_v37, %s3060_s19 }
  0xbb   : > { %v731_v49 = vpop.permute.xlu1 %730 }
  0xbc   : > { %v733_v51 = vsel %vm360_vm7, %v731_v49, 0.0 }
  0xdb   : > { %v363_v46 = vpop.xlane.xlu0 %362 }
  0xdc   : > { %v365_v50 = vmul.f32 0.0625, %v363_v46 }
  0xde   : > { %v367_v52 = vrot.slane %v365_v50, 1  ;;  %v368_v53 = vrot.slane %v365_v50, 2  ;;  %v369_v55 = vrot.slane %v365_v50, 3  ;;  %v3331_v57 = vsub.f32 %v3261_v15, %v365_v50 }
  0xdf   : > { %v612_v47 = vpop.permute.xlu0 %611  ;;  %v370_v59 = vrot.slane %v365_v50, 4  ;;  %v371_v62 = vrot.slane %v365_v50, 5  ;;  %v372_v11 = vrot.slane %v365_v50, 6  ;;  %v373_v22 = vrot.slane %v365_v50, 7 }
  0xe0   : > { %v614_v48 = vsel %vm360_vm7, %v612_v47, 0.0  ;;  %v3325_v54 = vsub.f32 %v3264_v16, %v367_v52  ;;  %v3328_v56 = vsub.f32 %v3267_v17, %v368_v53  ;;  %v3336_v60 = vsub.f32 %v3271_v19, %v369_v55 }
  0xe1   : > { %615 = vadd.xlane.f32.xlu1 %v614_v48  ;;  %v390_v63 = vmul.f32 %v3331_v57, %v3331_v57  ;;  %v3343_v8 = vsub.f32 %v3274_v20, %v370_v59  ;;  %v3348_v13 = vsub.f32 %v3277_v21, %v371_v62  ;;  %v3354_v25 = vsub.f32 %v3282_v24, %v372_v11 }
  0xe2   : > { %v391_v58 = vmul.f32 %v3325_v54, %v3325_v54  ;;  %v392_v61 = vmul.f32 %v3328_v56, %v3328_v56  ;;  %v393_v10 = vmul.f32 %v3336_v60, %v3336_v60  ;;  %v3360_v31 = vsub.f32 %v3288_v28, %v373_v22 }
  0xe3   : > { %v394_v18 = vmul.f32 %v3343_v8, %v3343_v8  ;;  %v395_v29 = vmul.f32 %v3348_v13, %v3348_v13  ;;  %v396_v33 = vmul.f32 %v3354_v25, %v3354_v25  ;;  %v849_v35 = vpop.permute.xlu0 %848 }
  0xe4   : > { %v406_v7 = vrot.slane %v391_v58, 7  ;;  %v408_v12 = vrot.slane %v392_v61, 6  ;;  %v410_v23 = vrot.slane %v393_v10, 5  ;;  %v397_v39 = vmul.f32 %v3360_v31, %v3360_v31 }
  0xe5   : > { %734 = vadd.xlane.f32.xlu1 %v733_v51  ;;  %v412_v30 = vrot.slane %v394_v18, 4  ;;  %v414_v36 = vrot.slane %v395_v29, 3  ;;  %v851_v40 = vsel %vm360_vm7, %v849_v35, 0.0  ;;  %v416_v41 = vrot.slane %v396_v33, 2 }
  0xe6   : > { %v407_v14 = vsel %vm339_vm0, %v406_v7, %v390_v63  ;;  %v418_v46 = vrot.slane %v397_v39, 1 }
  0xe7   : > { %v409_v26 = vsel %vm342_vm1, %v408_v12, %v407_v14  ;;  %v1086_v45 = vpop.permute.xlu0 %1085 }
  0xe8   : > { %v411_v32 = vsel %vm345_vm2, %v410_v23, %v409_v26  ;;  %v1088_v53 = vsel %vm360_vm7, %v1086_v45, 0.0 }
  0xe9   : > { %v413_v38 = vsel %vm348_vm3, %v412_v30, %v411_v32 }
  0xea   : > { %v415_v44 = vsel %vm351_vm4, %v414_v36, %v413_v38 }
  0xeb   : > { %v417_v48 = vsel %vm354_vm5, %v416_v41, %v415_v44  ;;  %v1323_v58 = vpop.permute.xlu0 %1322 }
  0xec   : > { %v419_v52 = vsel %vm357_vm6, %v418_v46, %v417_v48  ;;  %v1325_v62 = vsel %vm360_vm7, %v1323_v58, 0.0 }
  0xed   : > { %v421_v61 = vsel %vm360_vm7, %v419_v52, 0.0 }
  0xef   : > { %v1560_v23 = vpop.permute.xlu0 %1559 }
  0xf0   : > { %v1562_v32 = vsel %vm360_vm7, %v1560_v23, 0.0 }
  0xf3   : > { %v1797_v44 = vpop.permute.xlu0 %1796 }
  0xfa   : > { %v500_v27 = vpop.xlane.xlu1 %499 }
  0xfb   : > { %v501_v42 = vmul.f32 0.0625, %v500_v27 }
  0xfd   : > { %v503_v50 = vrot.slane %v501_v42, 1  ;;  %v504_v55 = vrot.slane %v501_v42, 2  ;;  %v505_v10 = vrot.slane %v501_v42, 3  ;;  %v3387_v12 = vsub.f32 %v3229_v0, %v501_v42 }
  0xfe   : > { %v968_v34 = vpop.permute.xlu1 %967  ;;  %v506_v18 = vrot.slane %v501_v42, 4  ;;  %v507_v29 = vrot.slane %v501_v42, 5  ;;  %v508_v38 = vrot.slane %v501_v42, 6  ;;  %v509_v45 = vrot.slane %v501_v42, 7 }
  0xff   : > { %v970_v37 = vsel %vm360_vm7, %v968_v34, 0.0  ;;  %v3377_v59 = vsub.f32 %v3232_v1, %v503_v50  ;;  %v3382_v63 = vsub.f32 %v3235_v2, %v504_v55  ;;  %v3393_v26 = vsub.f32 %v3238_v3, %v505_v10 }
 0x100   : > { %971 = vadd.xlane.f32.xlu1 %v970_v37  ;;  %v526_v30 = vmul.f32 %v3387_v12, %v3387_v12  ;;  %v3399_v33 = vsub.f32 %v3241_v4, %v506_v18  ;;  %v3405_v39 = vsub.f32 %v3244_v5, %v507_v29  ;;  %v1799_v50 = vsel %vm360_vm7, %v1797_v44, 0.0 }
 0x101   : > { %v527_v11 = vmul.f32 %v3377_v59, %v3377_v59  ;;  %v528_v22 = vmul.f32 %v3382_v63, %v3382_v63  ;;  %v529_v36 = vmul.f32 %v3393_v26, %v3393_v26 }
 0x102   : > { %v1205_v43 = vpop.permute.xlu1 %1204  ;;  %v530_v41 = vmul.f32 %v3399_v33, %v3399_v33  ;;  %v531_v48 = vmul.f32 %v3405_v39, %v3405_v39 }
 0x103   : > { %v1207_v47 = vsel %vm360_vm7, %v1205_v43, 0.0  ;;  %v542_v27 = vrot.slane %v527_v11, 7  ;;  %v544_v34 = vrot.slane %v528_v22, 6  ;;  %v546_v46 = vrot.slane %v529_v36, 5 }
 0x104   : > { %852 = vadd.xlane.f32.xlu1 %v851_v40  ;;  %v550_v58 = vrot.slane %v531_v48, 3 }
 0x105   : > { %v543_v37 = vsel %vm339_vm0, %v542_v27, %v526_v30 }
 0x106   : > { %v1442_v49 = vpop.permute.xlu1 %1441  ;;  %v545_v43 = vsel %vm342_vm1, %v544_v34, %v543_v37 }
 0x107   : > { %v1444_v51 = vsel %vm360_vm7, %v1442_v49, 0.0  ;;  %v547_v49 = vsel %vm345_vm2, %v546_v46, %v545_v43 }
 0x108   : > { %1445 = vadd.xlane.f32.xlu0 %v1444_v51  ;;  %1208 = vadd.xlane.f32.xlu1 %v1207_v47  ;;  %v3412_v47 = vsub.f32 %v3247_v6, %v508_v38  ;;  %v548_v51 = vrot.slane %v530_v41, 4 }
 0x10a   : > { %v1679_v7 = vpop.permute.xlu1 %1678  ;;  %v532_v42 = vmul.f32 %v3412_v47, %v3412_v47  ;;  %v549_v55 = vsel %vm348_vm3, %v548_v51, %v547_v49 }
 0x10b   : > { %v1681_v14 = vsel %vm360_vm7, %v1679_v7, 0.0  ;;  %v551_v10 = vsel %vm351_vm4, %v550_v58, %v549_v55 }
 0x10c   : > { %422 = vadd.xlane.f32.xlu0 %v421_v61  ;;  %1089 = vadd.xlane.f32.xlu1 %v1088_v53  ;;  %v3419_v53 = vsub.f32 %v3252_v9, %v509_v45  ;;  %v552_v11 = vrot.slane %v532_v42, 2 }
 0x10e   : > { %v1916_v35 = vpop.permute.xlu1 %1915  ;;  %v533_v7 = vmul.f32 %v3419_v53, %v3419_v53  ;;  %v553_v18 = vsel %vm354_vm5, %v552_v11, %v551_v10 }
 0x10f   : > { %v1918_v40 = vsel %vm360_vm7, %v1916_v35, 0.0 }
 0x110   : > { %1326 = vadd.xlane.f32.xlu1 %v1325_v62  ;;  %v2034_v62 = vpop.permute.xlu0 %2033  ;;  %v554_v22 = vrot.slane %v533_v7, 1 }
 0x112   : > { %v2153_v52 = vpop.permute.xlu1 %2152  ;;  %v555_v23 = vsel %vm357_vm6, %v554_v22, %v553_v18 }
 0x113   : > { %v2155_v61 = vsel %vm360_vm7, %v2153_v52, 0.0  ;;  %v557_v27 = vsel %vm360_vm7, %v555_v23, 0.0 }
 0x114   : > { %1682 = vadd.xlane.f32.xlu1 %v1681_v14  ;;  %v2036_v14 = vsel %vm360_vm7, %v2034_v62, 0.0 }
 0x118   : > { %1563 = vadd.xlane.f32.xlu1 %v1562_v32 }
 0x11c   : > { %1919 = vadd.xlane.f32.xlu1 %v1918_v40 }
 0x120   : > { %1800 = vadd.xlane.f32.xlu1 %v1799_v50 }
 0x124   : > { %2156 = vadd.xlane.f32.xlu1 %v2155_v61 }
 0x128   : > { %2037 = vadd.xlane.f32.xlu1 %v2036_v14 }
 0x12c   : > { %558 = vadd.xlane.f32.xlu1 %v557_v27 }
 0x16e   : > { %v616_v29 = vpop.xlane.xlu1 %615 }
 0x16f   : > { %v617_v30 = vmul.f32 0.0625, %v616_v29 }
 0x171   : > { %v619_v32 = vrot.slane %v617_v30, 1  ;;  %v620_v34 = vrot.slane %v617_v30, 2  ;;  %v621_v35 = vrot.slane %v617_v30, 3  ;;  %v622_v36 = vrot.slane %v617_v30, 4 }
 0x172   : > { %v735_v37 = vpop.xlane.xlu1 %734  ;;  %v623_v38 = vrot.slane %v617_v30, 5  ;;  %v624_v40 = vrot.slane %v617_v30, 6  ;;  %v625_v41 = vrot.slane %v617_v30, 7  ;;  %v3433_v43 = vsub.f32 %v3261_v15, %v617_v30 }
 0x173   : > { %v736_v44 = vmul.f32 0.0625, %v735_v37  ;;  %v3436_v45 = vsub.f32 %v3264_v16, %v619_v32  ;;  %v3439_v46 = vsub.f32 %v3267_v17, %v620_v34  ;;  %v3442_v48 = vsub.f32 %v3271_v19, %v621_v35 }
 0x174   : > { %v3445_v49 = vsub.f32 %v3274_v20, %v622_v36  ;;  %v3448_v50 = vsub.f32 %v3277_v21, %v623_v38  ;;  %v3451_v51 = vsub.f32 %v3282_v24, %v624_v40  ;;  %v3454_v52 = vsub.f32 %v3288_v28, %v625_v41 }
 0x175   : > { %4832 = vst [vmem:[#allocation9_spill] sm:$0xff] %v3442_v48  ;;  %v642_v42 = vmul.f32 %v3433_v43, %v3433_v43  ;;  %v643_v55 = vmul.f32 %v3436_v45, %v3436_v45  ;;  %v644_v58 = vmul.f32 %v3439_v46, %v3439_v46  ;;  %v645_v61 = vmul.f32 %v3442_v48, %v3442_v48 }
 0x176   : > { %4833 = vst [vmem:[#allocation10_spill] sm:$0xff] %v3445_v49  ;;  %4834 = vst [vmem:[#allocation11_spill] sm:$0xff] %v3448_v50  ;;  %v646_v62 = vmul.f32 %v3445_v49, %v3445_v49  ;;  %v647_v7 = vmul.f32 %v3448_v50, %v3448_v50  ;;  %v648_v10 = vmul.f32 %v3451_v51, %v3451_v51  ;;  %v738_v23 = vrot.slane %v736_v44, 1 }
 0x177   : > { %4835 = vst [vmem:[#allocation12_spill] sm:$0xff] %v3451_v51  ;;  %4836 = vst [vmem:[#allocation13_spill] sm:$0xff] %v3454_v52  ;;  %v649_v11 = vmul.f32 %v3454_v52, %v3454_v52  ;;  %v658_v14 = vrot.slane %v643_v55, 7  ;;  %v660_v18 = vrot.slane %v644_v58, 6  ;;  %v662_v22 = vrot.slane %v645_v61, 5 }
 0x178   : > { %v664_v27 = vrot.slane %v646_v62, 4  ;;  %v666_v29 = vrot.slane %v647_v7, 3  ;;  %v668_v30 = vrot.slane %v648_v10, 2  ;;  %v739_v35 = vrot.slane %v736_v44, 2 }
 0x179   : > { %v670_v32 = vrot.slane %v649_v11, 1  ;;  %v659_v34 = vsel %vm339_vm0, %v658_v14, %v642_v42  ;;  %v740_v36 = vrot.slane %v736_v44, 3  ;;  %v741_v37 = vrot.slane %v736_v44, 4 }
 0x17a   : > { %v661_v38 = vsel %vm342_vm1, %v660_v18, %v659_v34  ;;  %v742_v40 = vrot.slane %v736_v44, 5  ;;  %v743_v41 = vrot.slane %v736_v44, 6  ;;  %v744_v51 = vrot.slane %v736_v44, 7 }
 0x17b   : > { %v663_v52 = vsel %vm345_vm2, %v662_v22, %v661_v38  ;;  %v3476_v55 = vsub.f32 %v3229_v0, %v736_v44  ;;  %v3479_v58 = vsub.f32 %v3232_v1, %v738_v23  ;;  %v3482_v61 = vsub.f32 %v3235_v2, %v739_v35 }
 0x17c   : > { %v665_v42 = vsel %vm348_vm3, %v664_v27, %v663_v52  ;;  %v3486_v62 = vsub.f32 %v3238_v3, %v740_v36  ;;  %v3489_v7 = vsub.f32 %v3241_v4, %v741_v37  ;;  %v3492_v10 = vsub.f32 %v3244_v5, %v742_v40 }
 0x17d   : > { %4837 = vst [vmem:[#allocation14_spill] sm:$0xff] %v3476_v55  ;;  %4838 = vst [vmem:[#allocation15_spill] sm:$0xff] %v3479_v58  ;;  %v667_v44 = vsel %vm351_vm4, %v666_v29, %v665_v42  ;;  %v3496_v11 = vsub.f32 %v3247_v6, %v743_v41  ;;  %v3499_v14 = vsub.f32 %v3252_v9, %v744_v51 }
 0x17e   : > { %4839 = vst [vmem:[#allocation16_spill] sm:$0xff] %v3482_v61  ;;  %4840 = vst [vmem:[#allocation17_spill] sm:$0xff] %v3486_v62  ;;  %v669_v18 = vsel %vm354_vm5, %v668_v30, %v667_v44  ;;  %v762_v52 = vmul.f32 %v3479_v58, %v3479_v58  ;;  %v763_v22 = vmul.f32 %v3482_v61, %v3482_v61 }
 0x17f   : > { %4841 = vst [vmem:[#allocation18_spill] sm:$0xff] %v3489_v7  ;;  %4842 = vst [vmem:[#allocation19_spill] sm:$0xff] %v3492_v10  ;;  %v764_v23 = vmul.f32 %v3486_v62, %v3486_v62  ;;  %v671_v27 = vsel %vm357_vm6, %v670_v32, %v669_v18  ;;  %v765_v29 = vmul.f32 %v3489_v7, %v3489_v7 }
 0x180   : > { %4843 = vst [vmem:[#allocation20_spill] sm:$0xff] %v3496_v11  ;;  %4844 = vst [vmem:[#allocation21_spill] sm:$0xff] %v3499_v14  ;;  %672 = vrot.lane.b32.xlu1 %v671_v27, %s3054_s13  ;;  %v761_v51 = vmul.f32 %v3476_v55, %v3476_v55  ;;  %v766_v30 = vmul.f32 %v3492_v10, %v3492_v10  ;;  %v777_v34 = vrot.slane %v762_v52, 7  ;;  %v779_v35 = vrot.slane %v763_v22, 6 }
 0x181   : > { %v767_v36 = vmul.f32 %v3496_v11, %v3496_v11  ;;  %v768_v37 = vmul.f32 %v3499_v14, %v3499_v14  ;;  %v781_v38 = vrot.slane %v764_v23, 5  ;;  %v783_v41 = vrot.slane %v765_v29, 4 }
 0x182   : > { %v778_v32 = vsel %vm339_vm0, %v777_v34, %v761_v51  ;;  %v785_v44 = vrot.slane %v766_v30, 3 }
 0x183   : > { %v780_v40 = vsel %vm342_vm1, %v779_v35, %v778_v32  ;;  %v787_v27 = vrot.slane %v767_v36, 2  ;;  %v789_v22 = vrot.slane %v768_v37, 1 }
 0x184   : > { %v782_v42 = vsel %vm345_vm2, %v781_v38, %v780_v40 }
 0x185   : > { %v784_v18 = vsel %vm348_vm3, %v783_v41, %v782_v42 }
 0x186   : > { %v786_v52 = vsel %vm351_vm4, %v785_v44, %v784_v18 }
 0x187   : > { %v788_v11 = vsel %vm354_vm5, %v787_v27, %v786_v52 }
 0x188   : > { %v790_v10 = vsel %vm357_vm6, %v789_v22, %v788_v11 }
 0x189   : > { %791 = vrot.lane.b32.xlu0 %v790_v10, %s3054_s13 }
 0x18d   : > { %v972_v51 = vpop.xlane.xlu1 %971 }
 0x18e   : > { %v973_v23 = vmul.f32 0.0625, %v972_v51 }
 0x190   : > { %v975_v34 = vrot.slane %v973_v23, 1  ;;  %v976_v35 = vrot.slane %v973_v23, 2  ;;  %v977_v29 = vrot.slane %v973_v23, 3  ;;  %v978_v32 = vrot.slane %v973_v23, 4 }
 0x191   : > { %v853_v38 = vpop.xlane.xlu1 %852  ;;  %v979_v30 = vrot.slane %v973_v23, 5  ;;  %v980_v40 = vrot.slane %v973_v23, 6  ;;  %v981_v41 = vrot.slane %v973_v23, 7  ;;  %v3529_v36 = vsub.f32 %v3229_v0, %v973_v23 }
 0x192   : > { %v854_v37 = vmul.f32 0.0625, %v853_v38  ;;  %v3532_v42 = vsub.f32 %v3232_v1, %v975_v34  ;;  %v3535_v11 = vsub.f32 %v3235_v2, %v976_v35  ;;  %v3538_v10 = vsub.f32 %v3238_v3, %v977_v29 }
 0x193   : > { %4845 = vst [vmem:[#allocation22_spill] sm:$0xff] %v3529_v36  ;;  %v3541_v44 = vsub.f32 %v3241_v4, %v978_v32  ;;  %v3544_v18 = vsub.f32 %v3244_v5, %v979_v30  ;;  %v3547_v27 = vsub.f32 %v3247_v6, %v980_v40  ;;  %v3550_v52 = vsub.f32 %v3252_v9, %v981_v41 }
 0x194   : > { %4846 = vst [vmem:[#allocation23_spill] sm:$0xff] %v3532_v42  ;;  %4847 = vst [vmem:[#allocation24_spill] sm:$0xff] %v3535_v11  ;;  %v998_v22 = vmul.f32 %v3529_v36, %v3529_v36  ;;  %v999_v51 = vmul.f32 %v3532_v42, %v3532_v42  ;;  %v1000_v23 = vmul.f32 %v3535_v11, %v3535_v11  ;;  %v860_v49 = vrot.slane %v854_v37, 5 }
 0x195   : > { %4848 = vst [vmem:[#allocation25_spill] sm:$0xff] %v3538_v10  ;;  %4849 = vst [vmem:[#allocation26_spill] sm:$0xff] %v3541_v44  ;;  %v1001_v34 = vmul.f32 %v3538_v10, %v3538_v10  ;;  %v1209_v35 = vpop.xlane.xlu1 %1208  ;;  %v1446_v29 = vpop.xlane.xlu0 %1445  ;;  %v1002_v32 = vmul.f32 %v3541_v44, %v3541_v44  ;;  %v1003_v38 = vmul.f32 %v3544_v18, %v3544_v18  ;;  %v857_v10 = vrot.slane %v854_v37, 2 }
 0x196   : > { %4850 = vst [vmem:[#allocation27_spill] sm:$0xff] %v3544_v18  ;;  %4851 = vst [vmem:[#allocation28_spill] sm:$0xff] %v3547_v27  ;;  %v1004_v30 = vmul.f32 %v3547_v27, %v3547_v27  ;;  %v1005_v40 = vmul.f32 %v3550_v52, %v3550_v52  ;;  %v3568_v41 = vmul.f32 0.0625, %v1209_v35  ;;  %v3570_v14 = vmul.f32 0.0625, %v1446_v29 }
 0x197   : > { %4852 = vst [vmem:[#allocation29_spill] sm:$0xff] %v3550_v52  ;;  %v1014_v7 = vrot.slane %v999_v51, 7  ;;  %v1016_v62 = vrot.slane %v1000_v23, 6  ;;  %v1018_v61 = vrot.slane %v1001_v34, 5  ;;  %v1020_v58 = vrot.slane %v1002_v32, 4 }
 0x198   : > { %v1022_v55 = vrot.slane %v1003_v38, 3  ;;  %v1024_v36 = vrot.slane %v1004_v30, 2  ;;  %v1026_v50 = vrot.slane %v1005_v40, 1  ;;  %v856_v18 = vrot.slane %v854_v37, 1 }
 0x199   : > { %v1015_v44 = vsel %vm339_vm0, %v1014_v7, %v998_v22  ;;  %v1090_v11 = vpop.xlane.xlu1 %1089  ;;  %v423_v27 = vpop.xlane.xlu0 %422  ;;  %v858_v52 = vrot.slane %v854_v37, 3  ;;  %v859_v35 = vrot.slane %v854_v37, 4  ;;  %v861_v34 = vrot.slane %v854_v37, 6 }
 0x19a   : > { %v1017_v42 = vsel %vm342_vm1, %v1016_v62, %v1015_v44  ;;  %v3574_v29 = vmul.f32 0.0625, %v1090_v11  ;;  %v424_v51 = vmul.f32 0.0625, %v423_v27  ;;  %v862_v38 = vrot.slane %v854_v37, 7 }
 0x19b   : > { %v1019_v23 = vsel %vm345_vm2, %v1018_v61, %v1017_v42  ;;  %v3579_v7 = vsub.f32 %v3261_v15, %v854_v37  ;;  %v3582_v22 = vsub.f32 %v3264_v16, %v856_v18  ;;  %v3586_v44 = vsub.f32 %v3267_v17, %v857_v10 }
 0x19c   : > { %v1021_v32 = vsel %vm348_vm3, %v1020_v58, %v1019_v23  ;;  %v425_v30 = vadd.f32 1e-05, %v424_v51  ;;  %v3589_v11 = vsub.f32 %v3271_v19, %v858_v52  ;;  %v3593_v58 = vsub.f32 %v3274_v20, %v859_v35 }
 0x19d   : > { %4853 = vst [vmem:[#allocation30_spill] sm:$0xff] %v3579_v7  ;;  %4854 = vst [vmem:[#allocation31_spill] sm:$0xff] %v3582_v22  ;;  %v1023_v62 = vsel %vm351_vm4, %v1022_v55, %v1021_v32  ;;  %v1327_v61 = vpop.xlane.xlu1 %1326  ;;  %v3596_v37 = vsub.f32 %v3277_v21, %v860_v49  ;;  %v3599_v18 = vsub.f32 %v3282_v24, %v861_v34  ;;  %v1095_v48 = vrot.slane %v3574_v29, 3 }
 0x19e   : > { %4855 = vst [vmem:[#allocation32_spill] sm:$0xff] %v3586_v44  ;;  %4856 = vst [vmem:[#allocation33_spill] sm:$0xff] %v3589_v11  ;;  %v1025_v42 = vsel %vm354_vm5, %v1024_v36, %v1023_v62  ;;  %2881 = vrsqrt.f32 %v425_v30  ;;  %v3601_v55 = vmul.f32 0.0625, %v1327_v61  ;;  %v3605_v27 = vsub.f32 %v3288_v28, %v862_v38 }
 0x19f   : > { %4857 = vst [vmem:[#allocation34_spill] sm:$0xff] %v3593_v58  ;;  %4858 = vst [vmem:[#allocation35_spill] sm:$0xff] %v3596_v37  ;;  %v1027_v10 = vsel %vm357_vm6, %v1026_v50, %v1025_v42  ;;  %v879_v36 = vmul.f32 %v3579_v7, %v3579_v7  ;;  %v880_v49 = vmul.f32 %v3582_v22, %v3582_v22  ;;  %v1212_v62 = vrot.slane %v3568_v41, 1 }
 0x1a0   : > { %4859 = vst [vmem:[#allocation36_spill] sm:$0xff] %v3599_v18  ;;  %4860 = vst [vmem:[#allocation37_spill] sm:$0xff] %v3605_v27  ;;  %1028 = vrot.lane.b32.xlu1 %v1027_v10, %s3055_s22  ;;  %v881_v52 = vmul.f32 %v3586_v44, %v3586_v44  ;;  %v882_v40 = vmul.f32 %v3589_v11, %v3589_v11  ;;  %v883_v50 = vmul.f32 %v3593_v58, %v3593_v58 }
 0x1a1   : > { %v884_v35 = vmul.f32 %v3596_v37, %v3596_v37  ;;  %v885_v51 = vmul.f32 %v3599_v18, %v3599_v18  ;;  %v886_v23 = vmul.f32 %v3605_v27, %v3605_v27  ;;  %v1683_v34 = vpop.xlane.xlu1 %1682  ;;  %v895_v32 = vrot.slane %v880_v49, 7 }
 0x1a2   : > { %v897_v38 = vrot.slane %v881_v52, 6  ;;  %v899_v30 = vrot.slane %v882_v40, 5  ;;  %v3625_v61 = vmul.f32 0.0625, %v1683_v34  ;;  %v901_v42 = vrot.slane %v883_v50, 4 }
 0x1a3   : > { %v903_v10 = vrot.slane %v884_v35, 3  ;;  %v905_v58 = vrot.slane %v885_v51, 2  ;;  %v896_v11 = vsel %vm339_vm0, %v895_v32, %v879_v36  ;;  %v907_v37 = vrot.slane %v886_v23, 1 }
 0x1a4   : > { %v1213_v44 = vrot.slane %v3568_v41, 2  ;;  %v1214_v18 = vrot.slane %v3568_v41, 3  ;;  %v898_v27 = vsel %vm342_vm1, %v897_v38, %v896_v11  ;;  %v1215_v49 = vrot.slane %v3568_v41, 4 }
 0x1a5   : > { %v1216_v52 = vrot.slane %v3568_v41, 5  ;;  %v1217_v40 = vrot.slane %v3568_v41, 6  ;;  %v900_v34 = vsel %vm345_vm2, %v899_v30, %v898_v27  ;;  %v1564_v50 = vpop.xlane.xlu1 %1563  ;;  %v1218_v35 = vrot.slane %v3568_v41, 7 }
 0x1a6   : > { %v3638_v36 = vsub.f32 %v3229_v0, %v3568_v41  ;;  %v3641_v51 = vsub.f32 %v3232_v1, %v1212_v62  ;;  %v902_v11 = vsel %vm348_vm3, %v901_v42, %v900_v34  ;;  %v3644_v23 = vmul.f32 0.0625, %v1564_v50 }
 0x1a7   : > { %v3647_v32 = vsub.f32 %v3235_v2, %v1213_v44  ;;  %v3650_v38 = vsub.f32 %v3238_v3, %v1214_v18  ;;  %v904_v27 = vsel %vm351_vm4, %v903_v10, %v902_v11  ;;  %v3654_v30 = vsub.f32 %v3241_v4, %v1215_v49 }
 0x1a8   : > { %4861 = vst [vmem:[#allocation38_spill] sm:$0xff] %v3638_v36  ;;  %4862 = vst [vmem:[#allocation39_spill] sm:$0xff] %v3641_v51  ;;  %v3657_v41 = vsub.f32 %v3244_v5, %v1216_v52  ;;  %v3660_v62 = vsub.f32 %v3247_v6, %v1217_v40  ;;  %v3662_v42 = vpop.eup %2881  ;;  %v906_v34 = vsel %vm354_vm5, %v905_v58, %v904_v27 }
 0x1a9   : > { %4863 = vst [vmem:[#allocation40_spill] sm:$0xff] %v3647_v32  ;;  %4864 = vst [vmem:[#allocation41_spill] sm:$0xff] %v3650_v38  ;;  %v3666_v44 = vsub.f32 %v3252_v9, %v1218_v35  ;;  %v1235_v18 = vmul.f32 %v3638_v36, %v3638_v36  ;;  %v1236_v10 = vmul.f32 %v3641_v51, %v3641_v51  ;;  %v1920_v50 = vpop.xlane.xlu1 %1919 }
 0x1aa   : > { %4865 = vst [vmem:[#allocation42_spill] sm:$0xff] %v3654_v30  ;;  %4866 = vst [vmem:[#allocation43_spill] sm:$0xff] %v3657_v41  ;;  %v908_v49 = vsel %vm357_vm6, %v907_v37, %v906_v34  ;;  %v1237_v52 = vmul.f32 %v3647_v32, %v3647_v32  ;;  %v1238_v40 = vmul.f32 %v3650_v38, %v3650_v38  ;;  %v3686_v38 = vmul.f32 0.0625, %v1920_v50 }
 0x1ab   : > { %4867 = vst [vmem:[#allocation44_spill] sm:$0xff] %v3660_v62  ;;  %4868 = vst [vmem:[#allocation45_spill] sm:$0xff] %v3666_v44  ;;  %v1239_v58 = vmul.f32 %v3654_v30, %v3654_v30  ;;  %909 = vrot.lane.b32.xlu0 %v908_v49, %s3055_s22  ;;  %v1240_v35 = vmul.f32 %v3657_v41, %v3657_v41  ;;  %v1241_v11 = vmul.f32 %v3660_v62, %v3660_v62 }
 0x1ac   : > { %v1242_v37 = vmul.f32 %v3666_v44, %v3666_v44  ;;  %v1251_v27 = vrot.slane %v1236_v10, 7  ;;  %v1253_v34 = vrot.slane %v1237_v52, 6  ;;  %v1255_v22 = vrot.slane %v1238_v40, 5 }
 0x1ad   : > { %v1257_v7 = vrot.slane %v1239_v58, 4  ;;  %v1259_v32 = vrot.slane %v1240_v35, 3  ;;  %v1261_v51 = vrot.slane %v1241_v11, 2  ;;  %v1093_v41 = vrot.slane %v3574_v29, 1 }
 0x1ae   : > { %v1252_v30 = vsel %vm339_vm0, %v1251_v27, %v1235_v18  ;;  %v1263_v49 = vrot.slane %v1242_v37, 1  ;;  %v1094_v62 = vrot.slane %v3574_v29, 2  ;;  %v1096_v52 = vrot.slane %v3574_v29, 4 }
 0x1af   : > { %v1254_v36 = vsel %vm342_vm1, %v1253_v34, %v1252_v30  ;;  %v1097_v40 = vrot.slane %v3574_v29, 5  ;;  %v1098_v58 = vrot.slane %v3574_v29, 6  ;;  %v1099_v50 = vrot.slane %v3574_v29, 7 }
 0x1b0   : > { %v1256_v10 = vsel %vm345_vm2, %v1255_v22, %v1254_v36  ;;  %v3701_v30 = vsub.f32 %v3261_v15, %v3574_v29  ;;  %v3704_v35 = vsub.f32 %v3264_v16, %v1093_v41  ;;  %v3708_v22 = vsub.f32 %v3267_v17, %v1094_v62 }
 0x1b1   : > { %v1258_v18 = vsel %vm348_vm3, %v1257_v7, %v1256_v10  ;;  %v3711_v36 = vsub.f32 %v3271_v19, %v1095_v48  ;;  %v3714_v37 = vsub.f32 %v3274_v20, %v1096_v52  ;;  %v3718_v27 = vsub.f32 %v3277_v21, %v1097_v40 }
 0x1b2   : > { %4869 = vst [vmem:[#allocation46_spill] sm:$0xff] %v3701_v30  ;;  %4870 = vst [vmem:[#allocation47_spill] sm:$0xff] %v3704_v35  ;;  %v1260_v11 = vsel %vm351_vm4, %v1259_v32, %v1258_v18  ;;  %v3721_v29 = vsub.f32 %v3282_v24, %v1098_v58  ;;  %v3724_v41 = vsub.f32 %v3288_v28, %v1099_v50  ;;  %v1801_v32 = vpop.xlane.xlu1 %1800  ;;  %v1451_v44 = vrot.slane %v3570_v14, 3 }
 0x1b3   : > { %4871 = vst [vmem:[#allocation48_spill] sm:$0xff] %v3708_v22  ;;  %4872 = vst [vmem:[#allocation49_spill] sm:$0xff] %v3711_v36  ;;  %v1262_v7 = vsel %vm354_vm5, %v1261_v51, %v1260_v11  ;;  %v1116_v48 = vmul.f32 %v3701_v30, %v3701_v30  ;;  %v1117_v34 = vmul.f32 %v3704_v35, %v3704_v35  ;;  %v3744_v11 = vmul.f32 0.0625, %v1801_v32 }
 0x1b4   : > { %4873 = vst [vmem:[#allocation50_spill] sm:$0xff] %v3714_v37  ;;  %4874 = vst [vmem:[#allocation51_spill] sm:$0xff] %v3718_v27  ;;  %v1264_v62 = vsel %vm357_vm6, %v1263_v49, %v1262_v7  ;;  %v1118_v51 = vmul.f32 %v3708_v22, %v3708_v22  ;;  %v1119_v10 = vmul.f32 %v3711_v36, %v3711_v36  ;;  %v1449_v30 = vrot.slane %v3570_v14, 1 }
 0x1b5   : > { %4875 = vst [vmem:[#allocation52_spill] sm:$0xff] %v3721_v29  ;;  %1265 = vrot.lane.b32.xlu1 %v1264_v62, %s3056_s30  ;;  %v1120_v52 = vmul.f32 %v3714_v37, %v3714_v37  ;;  %v1121_v49 = vmul.f32 %v3718_v27, %v3718_v27  ;;  %v1122_v40 = vmul.f32 %v3721_v29, %v3721_v29  ;;  %v1132_v18 = vrot.slane %v1117_v34, 7 }
 0x1b6   : > { %v1123_v58 = vmul.f32 %v3724_v41, %v3724_v41  ;;  %v1134_v50 = vrot.slane %v1118_v51, 6  ;;  %v1136_v7 = vrot.slane %v1119_v10, 5  ;;  %v1450_v27 = vrot.slane %v3570_v14, 2 }
 0x1b7   : > { %v1138_v62 = vrot.slane %v1120_v52, 4  ;;  %v1140_v22 = vrot.slane %v1121_v49, 3  ;;  %v1142_v36 = vrot.slane %v1122_v40, 2  ;;  %v1133_v35 = vsel %vm339_vm0, %v1132_v18, %v1116_v48 }
 0x1b8   : > { %v1144_v37 = vrot.slane %v1123_v58, 1  ;;  %v1135_v29 = vsel %vm342_vm1, %v1134_v50, %v1133_v35  ;;  %v1452_v34 = vrot.slane %v3570_v14, 4  ;;  %v1453_v32 = vrot.slane %v3570_v14, 5 }
 0x1b9   : > { %v1137_v51 = vsel %vm345_vm2, %v1136_v7, %v1135_v29  ;;  %v1454_v10 = vrot.slane %v3570_v14, 6  ;;  %v1455_v52 = vrot.slane %v3570_v14, 7  ;;  %v3758_v48 = vsub.f32 %v3229_v0, %v3570_v14 }
 0x1ba   : > { %v1139_v49 = vsel %vm348_vm3, %v1138_v62, %v1137_v51  ;;  %v3762_v35 = vsub.f32 %v3232_v1, %v1449_v30  ;;  %v3765_v40 = vsub.f32 %v3235_v2, %v1450_v27  ;;  %v3768_v58 = vsub.f32 %v3238_v3, %v1451_v44  ;;  %v2157_v44 = vpop.xlane.xlu1 %2156 }
 0x1bb   : > { %4876 = vst [vmem:[#allocation53_spill] sm:$0xff] %v3758_v48  ;;  %v1141_v29 = vsel %vm351_vm4, %v1140_v22, %v1139_v49  ;;  %v3772_v18 = vsub.f32 %v3241_v4, %v1452_v34  ;;  %v3775_v50 = vsub.f32 %v3244_v5, %v1453_v32  ;;  %v3778_v0 = vsub.f32 %v3247_v6, %v1454_v10 }
 0x1bc   : > { %4877 = vst [vmem:[#allocation54_spill] sm:$0xff] %v3762_v35  ;;  %4878 = vst [vmem:[#allocation55_spill] sm:$0xff] %v3765_v40  ;;  %v1143_v1 = vsel %vm354_vm5, %v1142_v36, %v1141_v29  ;;  %v3782_v14 = vsub.f32 %v3252_v9, %v1455_v52  ;;  %v1472_v2 = vmul.f32 %v3758_v48, %v3758_v48  ;;  %v3802_v34 = vmul.f32 0.0625, %v2157_v44 }
 0x1bd   : > { %4879 = vst [vmem:[#allocation56_spill] sm:$0xff] %v3768_v58  ;;  %4880 = vst [vmem:[#allocation57_spill] sm:$0xff] %v3772_v18  ;;  %v1473_v3 = vmul.f32 %v3762_v35, %v3762_v35  ;;  %v1145_v4 = vsel %vm357_vm6, %v1144_v37, %v1143_v1  ;;  %v1474_v5 = vmul.f32 %v3765_v40, %v3765_v40  ;;  %v1330_v29 = vrot.slane %v3601_v55, 1 }
 0x1be   : > { %4881 = vst [vmem:[#allocation58_spill] sm:$0xff] %v3775_v50  ;;  %4882 = vst [vmem:[#allocation59_spill] sm:$0xff] %v3778_v0  ;;  %v1475_v6 = vmul.f32 %v3768_v58, %v3768_v58  ;;  %v1476_v30 = vmul.f32 %v3772_v18, %v3772_v18  ;;  %1146 = vrot.lane.b32.xlu1 %v1145_v4, %s3056_s30  ;;  %v1477_v9 = vmul.f32 %v3775_v50, %v3775_v50 }
 0x1bf   : > { %4883 = vst [vmem:[#allocation60_spill] sm:$0xff] %v3782_v14  ;;  %v1478_v22 = vmul.f32 %v3778_v0, %v3778_v0  ;;  %v1479_v36 = vmul.f32 %v3782_v14, %v3782_v14  ;;  %v1488_v37 = vrot.slane %v1473_v3, 7  ;;  %v1490_v27 = vrot.slane %v1474_v5, 6 }
 0x1c0   : > { %v1492_v7 = vrot.slane %v1475_v6, 5  ;;  %v1494_v62 = vrot.slane %v1476_v30, 4  ;;  %v1496_v51 = vrot.slane %v1477_v9, 3  ;;  %v1331_v1 = vrot.slane %v3601_v55, 2 }
 0x1c1   : > { %v1489_v32 = vsel %vm339_vm0, %v1488_v37, %v1472_v2  ;;  %v1498_v10 = vrot.slane %v1478_v22, 2  ;;  %v1500_v52 = vrot.slane %v1479_v36, 1  ;;  %v1332_v4 = vrot.slane %v3601_v55, 3 }
 0x1c2   : > { %v1491_v49 = vsel %vm342_vm1, %v1490_v27, %v1489_v32  ;;  %v1333_v5 = vrot.slane %v3601_v55, 4  ;;  %v1334_v44 = vrot.slane %v3601_v55, 5  ;;  %v1335_v6 = vrot.slane %v3601_v55, 6 }
 0x1c3   : > { %v1493_v3 = vsel %vm345_vm2, %v1492_v7, %v1491_v49  ;;  %v1336_v30 = vrot.slane %v3601_v55, 7  ;;  %v3817_v9 = vsub.f32 %v3261_v15, %v3601_v55  ;;  %v3820_v22 = vsub.f32 %v3264_v16, %v1330_v29  ;;  %v2038_v55 = vpop.xlane.xlu1 %2037 }
 0x1c4   : > { %v1495_v2 = vsel %vm348_vm3, %v1494_v62, %v1493_v3  ;;  %v3824_v37 = vsub.f32 %v3267_v17, %v1331_v1  ;;  %v3827_v27 = vsub.f32 %v3271_v19, %v1332_v4  ;;  %v3830_v7 = vsub.f32 %v3274_v20, %v1333_v5 }
 0x1c5   : > { %4884 = vst [vmem:[#allocation61_spill] sm:$0xff] %v3820_v22  ;;  %v1497_v36 = vsel %vm351_vm4, %v1496_v51, %v1495_v2  ;;  %v3834_v32 = vsub.f32 %v3277_v21, %v1334_v44  ;;  %v3837_v15 = vsub.f32 %v3282_v24, %v1335_v6  ;;  %v3840_v16 = vsub.f32 %v3288_v28, %v1336_v30 }
 0x1c6   : > { %4885 = vst [vmem:[#allocation62_spill] sm:$0xff] %v3824_v37  ;;  %4886 = vst [vmem:[#allocation63_spill] sm:$0xff] %v3827_v27  ;;  %v1499_v62 = vsel %vm354_vm5, %v1498_v10, %v1497_v36  ;;  %v1353_v19 = vmul.f32 %v3817_v9, %v3817_v9  ;;  %v1354_v20 = vmul.f32 %v3820_v22, %v3820_v22  ;;  %v3860_v1 = vmul.f32 0.0625, %v2038_v55 }
 0x1c7   : > { %4887 = vst [vmem:[#allocation64_spill] sm:$0xff] %v3830_v7  ;;  %4888 = vst [vmem:[#allocation65_spill] sm:$0xff] %v3834_v32  ;;  %v1501_v17 = vsel %vm357_vm6, %v1500_v52, %v1499_v62  ;;  %v1355_v51 = vmul.f32 %v3824_v37, %v3824_v37  ;;  %v1356_v21 = vmul.f32 %v3827_v27, %v3827_v27  ;;  %v1686_v30 = vrot.slane %v3625_v61, 1 }
 0x1c8   : > { %4889 = vst [vmem:[#allocation66_spill] sm:$0xff] %v3837_v15  ;;  %4890 = vst [vmem:[#allocation67_spill] sm:$0xff] %v3840_v16  ;;  %1502 = vrot.lane.b32.xlu1 %v1501_v17, %s3057_s8  ;;  %v1357_v24 = vmul.f32 %v3830_v7, %v3830_v7  ;;  %v1358_v28 = vmul.f32 %v3834_v32, %v3834_v32  ;;  %v1359_v10 = vmul.f32 %v3837_v15, %v3837_v15  ;;  %v3912_v15 = vld [vmem:[%s3222_s23 + $0xd] sm:$0x1]  ;;  %v3919_v32 = vld [vmem:[%s3222_s23 + $0xf] sm:$0x1] }
 0x1c9   : > { %v1360_v52 = vmul.f32 %v3840_v16, %v3840_v16  ;;  %v1369_v49 = vrot.slane %v1354_v20, 7  ;;  %v1371_v29 = vrot.slane %v1355_v51, 6  ;;  %v1373_v4 = vrot.slane %v1356_v21, 5  ;;  %v3900_v16 = vld [vmem:[%s3222_s23 + $0x9] sm:$0x1] }
 0x1ca   : > { %v1375_v3 = vrot.slane %v1357_v24, 4  ;;  %v1377_v5 = vrot.slane %v1358_v28, 3  ;;  %v1379_v44 = vrot.slane %v1359_v10, 2  ;;  %v1687_v36 = vrot.slane %v3625_v61, 2  ;;  %v3873_v24 = vld [vmem:[%s3222_s23 + $0x1] sm:$0x1] }
 0x1cb   : > { %v1370_v6 = vsel %vm339_vm0, %v1369_v49, %v1353_v19  ;;  %v1381_v2 = vrot.slane %v1360_v52, 1  ;;  %v1688_v55 = vrot.slane %v3625_v61, 3  ;;  %v1689_v17 = vrot.slane %v3625_v61, 4  ;;  %v3881_v52 = vld [vmem:[%s3222_s23 + $0x3] sm:$0x1] }
 0x1cc   : > { %v1372_v62 = vsel %vm342_vm1, %v1371_v29, %v1370_v6  ;;  %v1690_v20 = vrot.slane %v3625_v61, 5  ;;  %v1691_v19 = vrot.slane %v3625_v61, 6  ;;  %v1692_v21 = vrot.slane %v3625_v61, 7  ;;  %v3887_v29 = vld [vmem:[%s3222_s23 + $0x5] sm:$0x1] }
 0x1cd   : > { %v1374_v51 = vsel %vm345_vm2, %v1373_v4, %v1372_v62  ;;  %v3877_v28 = vsub.f32 %v3873_v24, %v3625_v61  ;;  %v3884_v49 = vsub.f32 %v3881_v52, %v1686_v30  ;;  %v3890_v4 = vsub.f32 %v3887_v29, %v1687_v36  ;;  %v3893_v6 = vld [vmem:[%s3222_s23 + $0x7] sm:$0x1] }
 0x1ce   : > { %v1376_v10 = vsel %vm348_vm3, %v1375_v3, %v1374_v51  ;;  %v3896_v62 = vsub.f32 %v3893_v6, %v1688_v55  ;;  %v3903_v3 = vsub.f32 %v3900_v16, %v1689_v17  ;;  %v3906_v51 = vld [vmem:[%s3222_s23 + $0xb] sm:$0x1]  ;;  %v3915_v36 = vsub.f32 %v3912_v15, %v1691_v19 }
 0x1cf   : > { %4891 = vst [vmem:[#allocation68_spill] sm:$0xff] %v3877_v28  ;;  %4892 = vst [vmem:[#allocation69_spill] sm:$0xff] %v3884_v49  ;;  %v1378_v61 = vsel %vm351_vm4, %v1377_v5, %v1376_v10  ;;  %v3909_v30 = vsub.f32 %v3906_v51, %v1690_v20  ;;  %v3922_v5 = vsub.f32 %v3919_v32, %v1692_v21  ;;  %v559_v20 = vpop.xlane.xlu1 %558  ;;  %v1927_v48 = vrot.slane %v3686_v38, 5 }
 0x1d0   : > { %4893 = vst [vmem:[#allocation70_spill] sm:$0xff] %v3890_v4  ;;  %4894 = vst [vmem:[#allocation71_spill] sm:$0xff] %v3896_v62  ;;  %v1380_v55 = vsel %vm354_vm5, %v1379_v44, %v1378_v61  ;;  %v1709_v17 = vmul.f32 %v3877_v28, %v3877_v28  ;;  %v1710_v10 = vmul.f32 %v3884_v49, %v3884_v49  ;;  %v560_v49 = vmul.f32 0.0625, %v559_v20 }
 0x1d1   : > { %4895 = vst [vmem:[#allocation72_spill] sm:$0xff] %v3903_v3  ;;  %4896 = vst [vmem:[#allocation73_spill] sm:$0xff] %v3909_v30  ;;  %v1382_v7 = vsel %vm357_vm6, %v1381_v2, %v1380_v55  ;;  %v1711_v19 = vmul.f32 %v3890_v4, %v3890_v4  ;;  %v1712_v44 = vmul.f32 %v3896_v62, %v3896_v62  ;;  %v1569_v20 = vrot.slane %v3644_v23, 3 }
 0x1d2   : > { %4897 = vst [vmem:[#allocation74_spill] sm:$0xff] %v3915_v36  ;;  %4898 = vst [vmem:[#allocation75_spill] sm:$0xff] %v3922_v5  ;;  %v1713_v61 = vmul.f32 %v3903_v3, %v3903_v3  ;;  %1383 = vrot.lane.b32.xlu1 %v1382_v7, %s3057_s8  ;;  %v1714_v21 = vmul.f32 %v3909_v30, %v3909_v30  ;;  %v1715_v27 = vmul.f32 %v3915_v36, %v3915_v36  ;;  %s2668_s8 = scalar_lea.sflag [#allocation5], %s3218_s20 }
 0x1d3   : > { %v1716_v2 = vmul.f32 %v3922_v5, %v3922_v5  ;;  %v1725_v55 = vrot.slane %v1710_v10, 7  ;;  %v1727_v37 = vrot.slane %v1711_v19, 6  ;;  %v1729_v22 = vrot.slane %v1712_v44, 5  ;;  %v3962_v44 = vld [vmem:[%s3222_s23 + $0x2] sm:$0x1] }
 0x1d4   : > { %v1731_v4 = vrot.slane %v1713_v61, 4  ;;  %v1733_v28 = vrot.slane %v1714_v21, 3  ;;  %v1735_v3 = vrot.slane %v1715_v27, 2  ;;  %v561_v14 = vadd.f32 1e-05, %v560_v49 }
 0x1d5   : > { %v1726_v62 = vsel %vm339_vm0, %v1725_v55, %v1709_v17  ;;  %v1737_v7 = vrot.slane %v1716_v2, 1  ;;  %v1567_v36 = vrot.slane %v3644_v23, 1  ;;  %v1568_v5 = vrot.slane %v3644_v23, 2  ;;  %v3981_v55 = vld [vmem:[%s3222_s23 + $0x8] sm:$0x1] }
 0x1d6   : > { %v1728_v30 = vsel %vm342_vm1, %v1727_v37, %v1726_v62  ;;  %v1570_v17 = vrot.slane %v3644_v23, 4  ;;  %v1571_v27 = vrot.slane %v3644_v23, 5  ;;  %2883 = vrsqrt.f32 %v561_v14  ;;  %v3968_v14 = vld [vmem:[%s3222_s23 + $0x4] sm:$0x1] }
 0x1d7   : > { %v1730_v10 = vsel %vm345_vm2, %v1729_v22, %v1728_v30  ;;  %v1572_v37 = vrot.slane %v3644_v23, 6  ;;  %v1573_v49 = vrot.slane %v3644_v23, 7  ;;  %v3955_v22 = vld [vmem:[%s3222_s23] sm:$0x1]  ;;  %v3971_v61 = vsub.f32 %v3968_v14, %v1568_v5 }
 0x1d8   : > { %v1732_v19 = vsel %vm348_vm3, %v1731_v4, %v1730_v10  ;;  %v3959_v30 = vsub.f32 %v3955_v22, %v3644_v23  ;;  %v3965_v4 = vsub.f32 %v3962_v44, %v1567_v36  ;;  %v3984_v23 = vsub.f32 %v3981_v55, %v1570_v17  ;;  %v3987_v10 = vld [vmem:[%s3222_s23 + $0xa] sm:$0x1] }
 0x1d9   : > { %v1734_v62 = vsel %vm351_vm4, %v1733_v28, %v1732_v19  ;;  %4901 = vst [vmem:[#allocation78_spill] sm:$0xff] %v3971_v61  ;;  %v3975_v28 = vld [vmem:[%s3222_s23 + $0x6] sm:$0x1]  ;;  %v3990_v36 = vsub.f32 %v3987_v10, %v1571_v27  ;;  %v3994_v19 = vld [vmem:[%s3222_s23 + $0xc] sm:$0x1] }
 0x1da   : > { %4899 = vst [vmem:[#allocation76_spill] sm:$0xff] %v3959_v30  ;;  %4900 = vst [vmem:[#allocation77_spill] sm:$0xff] %v3965_v4  ;;  %v1736_v21 = vsel %vm354_vm5, %v1735_v3, %v1734_v62  ;;  %v3978_v2 = vsub.f32 %v3975_v28, %v1569_v20  ;;  %v3997_v3 = vsub.f32 %v3994_v19, %v1572_v37  ;;  %v4000_v62 = vld [vmem:[%s3222_s23 + $0xe] sm:$0x1] }
 0x1db   : > { %4903 = vst [vmem:[#allocation80_spill] sm:$0xff] %v3984_v23  ;;  %4904 = vst [vmem:[#allocation81_spill] sm:$0xff] %v3990_v36  ;;  %v1738_v5 = vsel %vm357_vm6, %v1737_v7, %v1736_v21  ;;  %v4003_v20 = vsub.f32 %v4000_v62, %v1573_v49  ;;  %v1590_v17 = vmul.f32 %v3959_v30, %v3959_v30 }
 0x1dc   : > { %4902 = vst [vmem:[#allocation79_spill] sm:$0xff] %v3978_v2  ;;  %4905 = vst [vmem:[#allocation82_spill] sm:$0xff] %v3997_v3  ;;  %1739 = vrot.lane.b32.xlu1 %v1738_v5, %s3058_s10  ;;  %v1591_v27 = vmul.f32 %v3965_v4, %v3965_v4  ;;  %v1592_v7 = vmul.f32 %v3971_v61, %v3971_v61  ;;  %v1593_v37 = vmul.f32 %v3978_v2, %v3978_v2 }
 0x1dd   : > { %4906 = vst [vmem:[#allocation83_spill] sm:$0xff] %v4003_v20  ;;  %v1594_v21 = vmul.f32 %v3984_v23, %v3984_v23  ;;  %v1595_v49 = vmul.f32 %v3990_v36, %v3990_v36  ;;  %v1596_v30 = vmul.f32 %v3997_v3, %v3997_v3  ;;  %v1597_v5 = vmul.f32 %v4003_v20, %v4003_v20 }
 0x1de   : > { %v1923_v4 = vrot.slane %v3686_v38, 1  ;;  %v1606_v0 = vrot.slane %v1591_v27, 7  ;;  %v1608_v50 = vrot.slane %v1592_v7, 6  ;;  %v1610_v61 = vrot.slane %v1593_v37, 5 }
 0x1df   : > { %v1612_v18 = vrot.slane %v1594_v21, 4  ;;  %v1614_v58 = vrot.slane %v1595_v49, 3  ;;  %v1616_v2 = vrot.slane %v1596_v30, 2  ;;  %v1618_v40 = vrot.slane %v1597_v5, 1 }
 0x1e0   : > { %v1924_v23 = vrot.slane %v3686_v38, 2  ;;  %v1607_v35 = vsel %vm339_vm0, %v1606_v0, %v1590_v17  ;;  %v1925_v36 = vrot.slane %v3686_v38, 3  ;;  %v1926_v3 = vrot.slane %v3686_v38, 4  ;;  %v4035_v37 = vpop.eup %2883 }
 0x1e1   : > { %v1609_v20 = vsel %vm342_vm1, %v1608_v50, %v1607_v35  ;;  %v1928_v27 = vrot.slane %v3686_v38, 6  ;;  %v1929_v7 = vrot.slane %v3686_v38, 7  ;;  %v4033_v30 = vsub.f32 %v3873_v24, %v3686_v38 }
 0x1e2   : > { %v1611_v0 = vsel %vm345_vm2, %v1610_v61, %v1609_v20  ;;  %v4039_v17 = vsub.f32 %v3881_v52, %v1923_v4  ;;  %v4042_v21 = vsub.f32 %v3887_v29, %v1924_v23  ;;  %v4045_v35 = vsub.f32 %v3893_v6, %v1925_v36 }
 0x1e3   : > { %4907 = vst [vmem:[#allocation84_spill] sm:$0xff] %v4033_v30  ;;  %v1613_v50 = vsel %vm348_vm3, %v1612_v18, %v1611_v0  ;;  %v4049_v49 = vsub.f32 %v3900_v16, %v1926_v3  ;;  %v4052_v38 = vsub.f32 %v3906_v51, %v1927_v48  ;;  %v4055_v5 = vsub.f32 %v3912_v15, %v1928_v27 }
 0x1e4   : > { %4908 = vst [vmem:[#allocation85_spill] sm:$0xff] %v4039_v17  ;;  %4909 = vst [vmem:[#allocation86_spill] sm:$0xff] %v4042_v21  ;;  %v1615_v4 = vsel %vm351_vm4, %v1614_v58, %v1613_v50  ;;  %v4059_v61 = vsub.f32 %v3919_v32, %v1929_v7  ;;  %v1946_v23 = vmul.f32 %v4033_v30, %v4033_v30  ;;  %v2163_v30 = vrot.slane %v3802_v34, 4 }
 0x1e5   : > { %4910 = vst [vmem:[#allocation87_spill] sm:$0xff] %v4045_v35  ;;  %4911 = vst [vmem:[#allocation88_spill] sm:$0xff] %v4049_v49  ;;  %v1947_v18 = vmul.f32 %v4039_v17, %v4039_v17  ;;  %v1617_v36 = vsel %vm354_vm5, %v1616_v2, %v1615_v4  ;;  %v1948_v48 = vmul.f32 %v4042_v21, %v4042_v21 }
 0x1e6   : > { %4912 = vst [vmem:[#allocation89_spill] sm:$0xff] %v4052_v38  ;;  %4913 = vst [vmem:[#allocation90_spill] sm:$0xff] %v4055_v5  ;;  %v1949_v3 = vmul.f32 %v4045_v35, %v4045_v35  ;;  %v1950_v58 = vmul.f32 %v4049_v49, %v4049_v49  ;;  %v1619_v20 = vsel %vm357_vm6, %v1618_v40, %v1617_v36  ;;  %v2160_v40 = vrot.slane %v3802_v34, 1 }
 0x1e7   : > { %4914 = vst [vmem:[#allocation91_spill] sm:$0xff] %v4059_v61  ;;  %v1951_v27 = vmul.f32 %v4052_v38, %v4052_v38  ;;  %v1952_v7 = vmul.f32 %v4055_v5, %v4055_v5  ;;  %v1953_v2 = vmul.f32 %v4059_v61, %v4059_v61  ;;  %1620 = vrot.lane.b32.xlu1 %v1619_v20, %s3058_s10  ;;  %v1962_v0 = vrot.slane %v1947_v18, 7 }
 0x1e8   : > { %v1964_v50 = vrot.slane %v1948_v48, 6  ;;  %v1966_v4 = vrot.slane %v1949_v3, 5  ;;  %v1968_v35 = vrot.slane %v1950_v58, 4  ;;  %v2161_v38 = vrot.slane %v3802_v34, 2 }
 0x1e9   : > { %v1970_v21 = vrot.slane %v1951_v27, 3  ;;  %v1972_v17 = vrot.slane %v1952_v7, 2  ;;  %v1974_v49 = vrot.slane %v1953_v2, 1  ;;  %v1963_v36 = vsel %vm339_vm0, %v1962_v0, %v1946_v23 }
 0x1ea   : > { %v2162_v5 = vrot.slane %v3802_v34, 3  ;;  %v1965_v61 = vsel %vm342_vm1, %v1964_v50, %v1963_v36  ;;  %v2164_v18 = vrot.slane %v3802_v34, 5  ;;  %v2165_v48 = vrot.slane %v3802_v34, 6 }
 0x1eb   : > { %v2166_v3 = vrot.slane %v3802_v34, 7  ;;  %v1967_v58 = vsel %vm345_vm2, %v1966_v4, %v1965_v61  ;;  %v4092_v20 = vsub.f32 %v3873_v24, %v3802_v34  ;;  %v4095_v23 = vsub.f32 %v3881_v52, %v2160_v40 }
 0x1ec   : > { %v4098_v27 = vsub.f32 %v3887_v29, %v2161_v38  ;;  %v1969_v7 = vsel %vm348_vm3, %v1968_v35, %v1967_v58  ;;  %v4102_v2 = vsub.f32 %v3893_v6, %v2162_v5  ;;  %v4105_v0 = vsub.f32 %v3900_v16, %v2163_v30 }
 0x1ed   : > { %v4108_v61 = vsub.f32 %v3906_v51, %v2164_v18  ;;  %v1971_v34 = vsel %vm351_vm4, %v1970_v21, %v1969_v7  ;;  %v4112_v24 = vsub.f32 %v3912_v15, %v2165_v48  ;;  %v4115_v52 = vsub.f32 %v3919_v32, %v2166_v3 }
 0x1ee   : > { %v2183_v29 = vmul.f32 %v4092_v20, %v4092_v20  ;;  %v1973_v6 = vsel %vm354_vm5, %v1972_v17, %v1971_v34  ;;  %v2184_v16 = vmul.f32 %v4095_v23, %v4095_v23  ;;  %v2185_v51 = vmul.f32 %v4098_v27, %v4098_v27 }
 0x1ef   : > { %v2186_v30 = vmul.f32 %v4102_v2, %v4102_v2  ;;  %v1975_v15 = vsel %vm357_vm6, %v1974_v49, %v1973_v6  ;;  %v2187_v32 = vmul.f32 %v4105_v0, %v4105_v0  ;;  %v2188_v21 = vmul.f32 %v4108_v61, %v4108_v61 }
 0x1f0   : > { %v2189_v17 = vmul.f32 %v4112_v24, %v4112_v24  ;;  %1976 = vrot.lane.b32.xlu1 %v1975_v15, %s3059_s18  ;;  %v2190_v35 = vmul.f32 %v4115_v52, %v4115_v52  ;;  %v2199_v38 = vrot.slane %v2184_v16, 7  ;;  %v2201_v5 = vrot.slane %v2185_v51, 6 }
 0x1f1   : > { %v2203_v50 = vrot.slane %v2186_v30, 5  ;;  %v2205_v4 = vrot.slane %v2187_v32, 4  ;;  %v2207_v40 = vrot.slane %v2188_v21, 3  ;;  %v1804_v36 = vrot.slane %v3744_v11, 1 }
 0x1f2   : > { %v2209_v49 = vrot.slane %v2189_v17, 2  ;;  %v2200_v18 = vsel %vm339_vm0, %v2199_v38, %v2183_v29  ;;  %v2211_v48 = vrot.slane %v2190_v35, 1  ;;  %v1805_v3 = vrot.slane %v3744_v11, 2 }
 0x1f3   : > { %v1806_v58 = vrot.slane %v3744_v11, 3  ;;  %v2202_v7 = vsel %vm342_vm1, %v2201_v5, %v2200_v18  ;;  %v1807_v34 = vrot.slane %v3744_v11, 4  ;;  %v1808_v6 = vrot.slane %v3744_v11, 5 }
 0x1f4   : > { %v1809_v16 = vrot.slane %v3744_v11, 6  ;;  %v2204_v51 = vsel %vm345_vm2, %v2203_v50, %v2202_v7  ;;  %v1810_v30 = vrot.slane %v3744_v11, 7  ;;  %v4148_v29 = vsub.f32 %v3955_v22, %v3744_v11 }
 0x1f5   : > { %v4151_v15 = vsub.f32 %v3962_v44, %v1804_v36  ;;  %v2206_v32 = vsel %vm348_vm3, %v2205_v4, %v2204_v51  ;;  %v4155_v21 = vsub.f32 %v3968_v14, %v1805_v3  ;;  %v4158_v17 = vsub.f32 %v3975_v28, %v1806_v58 }
 0x1f6   : > { %4915 = vst [vmem:[#allocation92_spill] sm:$0xff] %v4148_v29  ;;  %v4161_v35 = vsub.f32 %v3981_v55, %v1807_v34  ;;  %v2208_v38 = vsel %vm351_vm4, %v2207_v40, %v2206_v32  ;;  %v4165_v5 = vsub.f32 %v3987_v10, %v1808_v6  ;;  %v4168_v11 = vsub.f32 %v3994_v19, %v1809_v16 }
 0x1f7   : > { %4916 = vst [vmem:[#allocation93_spill] sm:$0xff] %v4158_v17  ;;  %v4171_v50 = vsub.f32 %v4000_v62, %v1810_v30  ;;  %v2210_v4 = vsel %vm354_vm5, %v2209_v49, %v2208_v38  ;;  %v1827_v36 = vmul.f32 %v4148_v29, %v4148_v29  ;;  %v1828_v18 = vmul.f32 %v4151_v15, %v4151_v15 }
 0x1f8   : > { %4917 = vst [vmem:[#allocation94_spill] sm:$0xff] %v4161_v35  ;;  %4918 = vst [vmem:[#allocation95_spill] sm:$0xff] %v4165_v5  ;;  %v1829_v40 = vmul.f32 %v4155_v21, %v4155_v21  ;;  %v2212_v3 = vsel %vm357_vm6, %v2211_v48, %v2210_v4  ;;  %v1830_v58 = vmul.f32 %v4158_v17, %v4158_v17  ;;  %v2041_v38 = vrot.slane %v3860_v1, 1 }
 0x1f9   : > { %4919 = vst [vmem:[#allocation96_spill] sm:$0xff] %v4168_v11  ;;  %v1831_v7 = vmul.f32 %v4161_v35, %v4161_v35  ;;  %v1832_v49 = vmul.f32 %v4165_v5, %v4165_v5  ;;  %2213 = vrot.lane.b32.xlu0 %v2212_v3, %s3060_s19  ;;  %v1833_v34 = vmul.f32 %v4168_v11, %v4168_v11  ;;  %v1843_v16 = vrot.slane %v1828_v18, 7 }
 0x1fa   : > { %v1834_v6 = vmul.f32 %v4171_v50, %v4171_v50  ;;  %v1845_v51 = vrot.slane %v1829_v40, 6  ;;  %v1847_v48 = vrot.slane %v1830_v58, 5  ;;  %v2042_v5 = vrot.slane %v3860_v1, 2 }
 0x1fb   : > { %v1849_v30 = vrot.slane %v1831_v7, 4  ;;  %v1851_v32 = vrot.slane %v1832_v49, 3  ;;  %v1844_v4 = vsel %vm339_vm0, %v1843_v16, %v1827_v36  ;;  %v1853_v29 = vrot.slane %v1833_v34, 2 }
 0x1fc   : > { %v1855_v35 = vrot.slane %v1834_v6, 1  ;;  %v1846_v3 = vsel %vm342_vm1, %v1845_v51, %v1844_v4  ;;  %v2043_v11 = vrot.slane %v3860_v1, 3  ;;  %v2044_v17 = vrot.slane %v3860_v1, 4 }
 0x1fd   : > { %v2045_v18 = vrot.slane %v3860_v1, 5  ;;  %v1848_v40 = vsel %vm345_vm2, %v1847_v48, %v1846_v3  ;;  %v2046_v58 = vrot.slane %v3860_v1, 6  ;;  %v2047_v7 = vrot.slane %v3860_v1, 7 }
 0x1fe   : > { %v4204_v36 = vsub.f32 %v3955_v22, %v3860_v1  ;;  %v1850_v49 = vsel %vm348_vm3, %v1849_v30, %v1848_v40  ;;  %v4208_v34 = vsub.f32 %v3962_v44, %v2041_v38  ;;  %v4211_v6 = vsub.f32 %v3968_v14, %v2042_v5 }
 0x1ff   : > { %v4214_v16 = vsub.f32 %v3975_v28, %v2043_v11  ;;  %v1852_v51 = vsel %vm351_vm4, %v1851_v32, %v1850_v49  ;;  %v4218_v48 = vsub.f32 %v3981_v55, %v2044_v17  ;;  %v4221_v4 = vsub.f32 %v3987_v10, %v2045_v18 }
 0x200   : > { %v4224_v1 = vsub.f32 %v3994_v19, %v2046_v58  ;;  %v1854_v22 = vsel %vm354_vm5, %v1853_v29, %v1852_v51  ;;  %v4228_v44 = vsub.f32 %v4000_v62, %v2047_v7  ;;  %v2065_v14 = vmul.f32 %v4208_v34, %v4208_v34 }
 0x201   : > { %v1856_v28 = vsel %vm357_vm6, %v1855_v35, %v1854_v22  ;;  %v2066_v55 = vmul.f32 %v4211_v6, %v4211_v6  ;;  %v2067_v10 = vmul.f32 %v4214_v16, %v4214_v16  ;;  %v2068_v19 = vmul.f32 %v4218_v48, %v4218_v48 }
 0x202   : > { %1857 = vrot.lane.b32.xlu1 %v1856_v28, %s3059_s18  ;;  %v2064_v62 = vmul.f32 %v4204_v36, %v4204_v36  ;;  %v2069_v29 = vmul.f32 %v4221_v4, %v4221_v4  ;;  %v2070_v17 = vmul.f32 %v4224_v1, %v4224_v1  ;;  %v2080_v35 = vrot.slane %v2065_v14, 7 }
 0x203   : > { %v2071_v5 = vmul.f32 %v4228_v44, %v4228_v44  ;;  %v2082_v11 = vrot.slane %v2066_v55, 6  ;;  %v2084_v32 = vrot.slane %v2067_v10, 5  ;;  %v2086_v38 = vrot.slane %v2068_v19, 4 }
 0x204   : > { %v2081_v30 = vsel %vm339_vm0, %v2080_v35, %v2064_v62  ;;  %v2088_v3 = vrot.slane %v2069_v29, 3  ;;  %v2090_v40 = vrot.slane %v2070_v17, 2  ;;  %v564_v58 = vrot.slane %v4035_v37, 1 }
 0x205   : > { %v2083_v18 = vsel %vm342_vm1, %v2082_v11, %v2081_v30  ;;  %v565_v7 = vrot.slane %v4035_v37, 2  ;;  %v566_v51 = vrot.slane %v4035_v37, 3  ;;  %v567_v22 = vrot.slane %v4035_v37, 4 }
 0x206   : > { %v2085_v49 = vsel %vm345_vm2, %v2084_v32, %v2083_v18  ;;  %v568_v14 = vrot.slane %v4035_v37, 5  ;;  %v2092_v55 = vrot.slane %v2071_v5, 1  ;;  %v569_v10 = vrot.slane %v4035_v37, 6 }
 0x207   : > { %v2087_v28 = vsel %vm348_vm3, %v2086_v38, %v2085_v49  ;;  %v570_v19 = vrot.slane %v4035_v37, 7  ;;  %v580_v29 = vmul.f32 %v564_v58, %v3377_v59  ;;  %v581_v17 = vmul.f32 %v565_v7, %v3382_v63 }
 0x208   : > { %v2089_v62 = vsel %vm351_vm4, %v2088_v3, %v2087_v28  ;;  %v582_v35 = vmul.f32 %v566_v51, %v3393_v26  ;;  %v579_v30 = vmul.f32 %v4035_v37, %v3387_v12  ;;  %v583_v32 = vmul.f32 %v567_v22, %v3399_v33 }
 0x209   : > { %v2091_v11 = vsel %vm354_vm5, %v2090_v40, %v2089_v62  ;;  %v584_v5 = vmul.f32 %v568_v14, %v3405_v39  ;;  %v585_v18 = vmul.f32 %v569_v10, %v3412_v47  ;;  %v595_v3 = vrot.slane %v580_v29, 7 }
 0x20a   : > { %v2093_v38 = vsel %vm357_vm6, %v2092_v55, %v2091_v11  ;;  %v597_v49 = vrot.slane %v581_v17, 6  ;;  %v586_v59 = vmul.f32 %v570_v19, %v3419_v53  ;;  %v599_v63 = vrot.slane %v582_v35, 5 }
 0x20b   : > { %2094 = vrot.lane.b32.xlu1 %v2093_v38, %s3060_s19  ;;  %v601_v26 = vrot.slane %v583_v32, 4  ;;  %v596_v40 = vsel %vm339_vm0, %v595_v3, %v579_v30  ;;  %v603_v58 = vrot.slane %v584_v5, 3  ;;  %v428_v12 = vrot.slane %v3662_v42, 1  ;;  %v673_v38 = vpop.permute.xlu1 %672  ;;  %s3064_s19 = smov [#allocation6]  }
 0x20c   : > { %v429_v33 = vrot.slane %v3662_v42, 2  ;;  %v598_v39 = vsel %vm342_vm1, %v597_v49, %v596_v40  ;;  %v430_v37 = vrot.slane %v3662_v42, 3  ;;  %v431_v47 = vrot.slane %v3662_v42, 4  ;;  %s2971_s12 = sshll.u32 %s3064_s19, 4  ;;  %s2972_s12 = int_to_ptr.vmem [resolvable:$false] %s2971_s12 }
 0x20d   : > { %v432_v7 = vrot.slane %v3662_v42, 5  ;;  %v600_v51 = vsel %vm345_vm2, %v599_v63, %v598_v39  ;;  %v605_v53 = vrot.slane %v585_v18, 2  ;;  %v433_v22 = vrot.slane %v3662_v42, 6  ;;  %v792_v39 = vpop.permute.xlu0 %791  ;;  %s2973_s11 = scalar_lea.vmem %s2972_s12, 256 }
 0x20e   : > { %v434_v14 = vrot.slane %v3662_v42, 7  ;;  %v602_v28 = vsel %vm348_vm3, %v601_v26, %v600_v51  ;;  %v444_v55 = vmul.f32 %v428_v12, %v3325_v54  ;;  %v445_v10 = vmul.f32 %v429_v33, %v3328_v56 }
 0x20f   : > { %v446_v19 = vmul.f32 %v430_v37, %v3336_v60  ;;  %v604_v62 = vsel %vm351_vm4, %v603_v58, %v602_v28  ;;  %v607_v29 = vrot.slane %v586_v59, 1  ;;  %v443_v17 = vmul.f32 %v3662_v42, %v3331_v57 }
 0x210   : > { %v447_v35 = vmul.f32 %v431_v47, %v3343_v8  ;;  %v606_v11 = vsel %vm354_vm5, %v605_v53, %v604_v62  ;;  %v448_v30 = vmul.f32 %v432_v7, %v3348_v13  ;;  %v459_v32 = vrot.slane %v444_v55, 7 }
 0x211   : > { %v461_v5 = vrot.slane %v445_v10, 6  ;;  %v608_v54 = vsel %vm357_vm6, %v607_v29, %v606_v11  ;;  %v449_v56 = vmul.f32 %v433_v22, %v3354_v25  ;;  %v450_v60 = vmul.f32 %v434_v14, %v3360_v31 }
 0x212   : > { %610 = vst.msk [vmem:[#allocation2 + $0x8] sm:$0xff] %vm360_vm7, %v608_v54  ;;  %v460_v18 = vsel %vm339_vm0, %v459_v32, %v443_v17  ;;  %v463_v57 = vrot.slane %v446_v19, 5  ;;  %v465_v42 = vrot.slane %v447_v35, 4  ;;  %v675_v3 = vsel %vm360_vm7, %v673_v38, 0.0  ;;  %v1029_v59 = vpop.permute.xlu1 %1028 }
 0x213   : > { %v462_v8 = vsel %vm342_vm1, %v461_v5, %v460_v18  ;;  %v467_v49 = vrot.slane %v448_v30, 3  ;;  %v469_v26 = vrot.slane %v449_v56, 2  ;;  %v471_v40 = vrot.slane %v450_v60, 1 }
 0x214   : > { %v464_v13 = vsel %vm345_vm2, %v463_v57, %v462_v8  ;;  %v1031_v58 = vsel %vm360_vm7, %v1029_v59, 0.0  ;;  %v794_v47 = vsel %vm360_vm7, %v792_v39, 0.0  ;;  %v2388_v59 = vld [vmem:[%s4731_s4] sm:$0xff] }
 0x215   : > { %v466_v63 = vsel %vm348_vm3, %v465_v42, %v464_v13  ;;  %v4824_v13 = vmov 0.0  }
 0x216   : > { %v468_v25 = vsel %vm351_vm4, %v467_v49, %v466_v63  ;;  %2462 = vmatprep.mubr.f32.mxu1 %v4824_v13  ;;  %2356 = vmatprep.mubr.f32.mxu0 %v4824_v13 }
 0x217   : > { %v470_v31 = vsel %vm354_vm5, %v469_v26, %v468_v25 }
 0x218   : > { %676 = vadd.xlane.f32.xlu0 %v675_v3  ;;  %v472_v12 = vsel %vm357_vm6, %v471_v40, %v470_v31  ;;  %v3062_v31 = vmov 0  }
 0x219   : > { %474 = vst.msk [vmem:[#allocation2] sm:$0xff] %vm360_vm7, %v472_v12  ;;  %2880 = vset.pattern.permute.xlu0 %v3062_v31  ;;  %2879 = vset.pattern.permute.xlu1 %v3062_v31  ;;  %v4930_v31 = vld [vmem:[#allocation28_spill] sm:$0xff] }
 0x21c   : > { %1032 = vadd.xlane.f32.xlu0 %v1031_v58 }
 0x21d   : > { %v910_v7 = vpop.permute.xlu0 %909 }
 0x21e   : > { %v912_v51 = vsel %vm360_vm7, %v910_v7, 0.0 }
 0x227   : > { %v1266_v33 = vpop.permute.xlu1 %1265 }
 0x228   : > { %v1268_v37 = vsel %vm360_vm7, %v1266_v33, 0.0 }
 0x229   : > { %1269 = vadd.xlane.f32.xlu0 %v1268_v37 }
 0x22f   : > { %795 = vadd.xlane.f32.xlu1 %v794_v47 }
 0x230   : > { %v1147_v53 = vpop.permute.xlu1 %1146 }
 0x231   : > { %v1149_v22 = vsel %vm360_vm7, %v1147_v53, 0.0 }
 0x233   : > { %913 = vadd.xlane.f32.xlu1 %v912_v51 }
 0x237   : > { %1150 = vadd.xlane.f32.xlu1 %v1149_v22  ;;  %v4920_v22 = vld [vmem:[#allocation9_spill] sm:$0xff] }
 0x23a   : > { %v1503_v14 = vpop.permute.xlu1 %1502 }
 0x23b   : > { %v1505_v10 = vsel %vm360_vm7, %v1503_v14, 0.0 }
 0x244   : > { %v1384_v28 = vpop.permute.xlu1 %1383 }
 0x245   : > { %v1386_v55 = vsel %vm360_vm7, %v1384_v28, 0.0  ;;  %v4921_v28 = vld [vmem:[#allocation10_spill] sm:$0xff] }
 0x246   : > { %1387 = vadd.xlane.f32.xlu1 %v1386_v55 }
 0x24a   : > { %1506 = vadd.xlane.f32.xlu1 %v1505_v10 }
 0x24e   : > { %v1740_v19 = vpop.permute.xlu1 %1739 }
 0x24f   : > { %v1742_v62 = vsel %vm360_vm7, %v1740_v19, 0.0 }
 0x250   : > { %1743 = vadd.xlane.f32.xlu1 %v1742_v62 }
 0x259   : > { %v1621_v29 = vpop.permute.xlu1 %1620 }
 0x25a   : > { %v1623_v17 = vsel %vm360_vm7, %v1621_v29, 0.0 }
 0x25b   : > { %1624 = vadd.xlane.f32.xlu0 %v1623_v17 }
 0x262   : > { %v1977_v35 = vpop.permute.xlu1 %1976 }
 0x263   : > { %v1979_v11 = vsel %vm360_vm7, %v1977_v35, 0.0 }
 0x264   : > { %1980 = vadd.xlane.f32.xlu1 %v1979_v11 }
 0x26b   : > { %v2214_v30 = vpop.permute.xlu0 %2213 }
 0x26c   : > { %v2216_v32 = vsel %vm360_vm7, %v2214_v30, 0.0 }
 0x26d   : > { %2217 = vadd.xlane.f32.xlu1 %v2216_v32  ;;  %v4922_v32 = vld [vmem:[#allocation23_spill] sm:$0xff] }
 0x274   : > { %v1858_v5 = vpop.permute.xlu1 %1857 }
 0x275   : > { %v1860_v38 = vsel %vm360_vm7, %v1858_v5, 0.0  ;;  %v4923_v5 = vld [vmem:[#allocation24_spill] sm:$0xff] }
 0x276   : > { %1861 = vadd.xlane.f32.xlu0 %v1860_v38  ;;  %v4924_v38 = vld [vmem:[#allocation25_spill] sm:$0xff] }
 0x27d   : > { %v2095_v54 = vpop.permute.xlu1 %2094 }
 0x27e   : > { %v2097_v56 = vsel %vm360_vm7, %v2095_v54, 0.0 }
 0x27f   : > { %2098 = vadd.xlane.f32.xlu0 %v2097_v56  ;;  %v4925_v56 = vld [vmem:[#allocation11_spill] sm:$0xff] }
 0x295   : > { %2391 = vperm.xlu0 %2880, %v2388_v59  }
 0x2a5   : > { %v677_v60 = vpop.xlane.xlu0 %676 }
 0x2a6   : > { %v678_v18 = vmul.f32 0.0625, %v677_v60 }
 0x2a8   : > { %v679_v57 = vadd.f32 1e-05, %v678_v18  ;;  %v4926_v18 = vld [vmem:[#allocation26_spill] sm:$0xff] }
 0x2a9   : > { %v1033_v8 = vpop.xlane.xlu0 %1032 }
 0x2aa   : > { %2885 = vrsqrt.f32 %v679_v57  ;;  %v1034_v42 = vmul.f32 0.0625, %v1033_v8  ;;  %v4927_v8 = vld [vmem:[#allocation27_spill] sm:$0xff] }
 0x2ac   : > { %v1035_v3 = vadd.f32 1e-05, %v1034_v42 }
 0x2ae   : > { %2887 = vrsqrt.f32 %v1035_v3  ;;  %v4928_v3 = vld [vmem:[#allocation12_spill] sm:$0xff] }
 0x2b4   : > { %v2886_v49 = vpop.eup %2885 }
 0x2b5   : > { %v682_v63 = vrot.slane %v2886_v49, 1  ;;  %v683_v26 = vrot.slane %v2886_v49, 2  ;;  %v684_v25 = vrot.slane %v2886_v49, 3  ;;  %v685_v40 = vrot.slane %v2886_v49, 4 }
 0x2b6   : > { %v686_v58 = vrot.slane %v2886_v49, 5  ;;  %v1270_v12 = vpop.xlane.xlu0 %1269  ;;  %v687_v33 = vrot.slane %v2886_v49, 6  ;;  %v688_v39 = vrot.slane %v2886_v49, 7  ;;  %v697_v37 = vmul.f32 %v2886_v49, %v3433_v43 }
 0x2b7   : > { %v698_v47 = vmul.f32 %v682_v63, %v3436_v45  ;;  %v1271_v51 = vmul.f32 0.0625, %v1270_v12  ;;  %v699_v53 = vmul.f32 %v683_v26, %v3439_v46  ;;  %v700_v14 = vmul.f32 %v684_v25, %v4920_v22  ;;  %v4929_v63 = vld [vmem:[#allocation22_spill] sm:$0xff] }
 0x2b8   : > { %v2888_v7 = vpop.eup %2887  ;;  %v701_v55 = vmul.f32 %v685_v40, %v4921_v28  ;;  %v702_v46 = vmul.f32 %v686_v58, %v4925_v56  ;;  %v703_v49 = vmul.f32 %v687_v33, %v4928_v3 }
 0x2b9   : > { %v1038_v10 = vrot.slane %v2888_v7, 1  ;;  %v1039_v19 = vrot.slane %v2888_v7, 2  ;;  %v1040_v62 = vrot.slane %v2888_v7, 3  ;;  %v1041_v29 = vrot.slane %v2888_v7, 4 }
 0x2ba   : > { %v1272_v17 = vadd.f32 1e-05, %v1271_v51  ;;  %v1042_v35 = vrot.slane %v2888_v7, 5  ;;  %v1043_v11 = vrot.slane %v2888_v7, 6  ;;  %v1044_v30 = vrot.slane %v2888_v7, 7  ;;  %v4931_v51 = vld [vmem:[#allocation29_spill] sm:$0xff] }
 0x2bb   : > { %v1054_v43 = vmul.f32 %v1038_v10, %v4922_v32  ;;  %v1055_v45 = vmul.f32 %v1039_v19, %v4923_v5  ;;  %v1056_v54 = vmul.f32 %v1040_v62, %v4924_v38  ;;  %v1057_v57 = vmul.f32 %v1041_v29, %v4926_v18  ;;  %v4932_v10 = vld [vmem:[#allocation13_spill] sm:$0xff] }
 0x2bc   : > { %v796_v60 = vpop.xlane.xlu1 %795  ;;  %2889 = vrsqrt.f32 %v1272_v17  ;;  %v1058_v42 = vmul.f32 %v1042_v35, %v4927_v8  ;;  %v1053_v26 = vmul.f32 %v2888_v7, %v4929_v63  ;;  %v1059_v12 = vmul.f32 %v1043_v11, %v4930_v31 }
 0x2bd   : > { %v797_v59 = vmul.f32 0.0625, %v796_v60  ;;  %v1069_v25 = vrot.slane %v1054_v43, 7  ;;  %v1071_v40 = vrot.slane %v1055_v45, 6  ;;  %v1060_v22 = vmul.f32 %v1044_v30, %v4931_v51 }
 0x2be   : > { %v1073_v28 = vrot.slane %v1056_v54, 5  ;;  %v704_v58 = vmul.f32 %v688_v39, %v4932_v10  ;;  %v1075_v29 = vrot.slane %v1057_v57, 4  ;;  %v713_v17 = vrot.slane %v698_v47, 7 }
 0x2bf   : > { %v798_v19 = vadd.f32 1e-05, %v797_v59  ;;  %v1070_v62 = vsel %vm339_vm0, %v1069_v25, %v1053_v26  ;;  %v1077_v32 = vrot.slane %v1058_v42, 3  ;;  %v715_v5 = vrot.slane %v699_v53, 6 }
 0x2c0   : > { %v914_v35 = vpop.xlane.xlu1 %913  ;;  %v1072_v33 = vsel %vm342_vm1, %v1071_v40, %v1070_v62  ;;  %v717_v7 = vrot.slane %v700_v14, 5  ;;  %v714_v30 = vsel %vm339_vm0, %v713_v17, %v697_v37  ;;  %v1079_v39 = vrot.slane %v1059_v12, 2 }
 0x2c1   : > { %2891 = vrsqrt.f32 %v798_v19  ;;  %v915_v43 = vmul.f32 0.0625, %v914_v35  ;;  %v1074_v11 = vsel %vm345_vm2, %v1073_v28, %v1072_v33  ;;  %v716_v38 = vsel %vm342_vm1, %v715_v5, %v714_v30  ;;  %v4933_v28 = vld [vmem:[#allocation38_spill] sm:$0xff]  ;;  %v4934_v19 = vld [vmem:[#allocation39_spill] sm:$0xff]  ;;  %v4936_v35 = vld [vmem:[#allocation41_spill] sm:$0xff] }
 0x2c2   : > { %v1076_v45 = vsel %vm348_vm3, %v1075_v29, %v1074_v11  ;;  %v719_v54 = vrot.slane %v701_v55, 4  ;;  %v718_v60 = vsel %vm345_vm2, %v717_v7, %v716_v38  ;;  %v721_v18 = vrot.slane %v702_v46, 3  ;;  %v4935_v29 = vld [vmem:[#allocation40_spill] sm:$0xff] }
 0x2c3   : > { %v916_v56 = vadd.f32 1e-05, %v915_v43  ;;  %v1078_v47 = vsel %vm351_vm4, %v1077_v32, %v1076_v45  ;;  %v1081_v57 = vrot.slane %v1060_v22, 1  ;;  %v723_v42 = vrot.slane %v703_v49, 2  ;;  %v4937_v32 = vld [vmem:[#allocation42_spill] sm:$0xff]  ;;  %v4939_v43 = vld [vmem:[#allocation44_spill] sm:$0xff] }
 0x2c4   : > { %v1151_v53 = vpop.xlane.xlu1 %1150  ;;  %v1080_v14 = vsel %vm354_vm5, %v1079_v39, %v1078_v47  ;;  %v720_v8 = vsel %vm348_vm3, %v719_v54, %v718_v60  ;;  %v725_v26 = vrot.slane %v704_v58, 1  ;;  %v4938_v58 = vld [vmem:[#allocation43_spill] sm:$0xff]  ;;  %v4940_v45 = vld [vmem:[#allocation45_spill] sm:$0xff] }
 0x2c5   : > { %v1152_v37 = vmul.f32 0.0625, %v1151_v53  ;;  %v722_v3 = vsel %vm351_vm4, %v721_v18, %v720_v8  ;;  %2893 = vrsqrt.f32 %v916_v56  ;;  %v4351_v55 = vsel %vm357_vm6, %v1081_v57, %v1080_v14 }
 0x2c6   : > { %v2890_v59 = vpop.eup %2889  ;;  %v724_v63 = vsel %vm354_vm5, %v723_v42, %v722_v3  ;;  %v4941_v42 = vld [vmem:[#allocation14_spill] sm:$0xff]  ;;  %v4942_v3 = vld [vmem:[#allocation15_spill] sm:$0xff] }
 0x2c7   : > { %v1153_v46 = vadd.f32 1e-05, %v1152_v37  ;;  %v1275_v25 = vrot.slane %v2890_v59, 1  ;;  %v1276_v40 = vrot.slane %v2890_v59, 2  ;;  %v1277_v31 = vrot.slane %v2890_v59, 3 }
 0x2c8   : > { %v1278_v12 = vrot.slane %v2890_v59, 4  ;;  %v1279_v51 = vrot.slane %v2890_v59, 5  ;;  %v1280_v22 = vrot.slane %v2890_v59, 6  ;;  %v1281_v49 = vrot.slane %v2890_v59, 7 }
 0x2c9   : > { %2895 = vrsqrt.f32 %v1153_v46  ;;  %v1290_v10 = vmul.f32 %v2890_v59, %v4933_v28  ;;  %v1291_v62 = vmul.f32 %v1275_v25, %v4934_v19  ;;  %v1292_v17 = vmul.f32 %v1276_v40, %v4935_v29  ;;  %v4943_v46 = vld [vmem:[#allocation16_spill] sm:$0xff]  ;;  %v4944_v40 = vld [vmem:[#allocation17_spill] sm:$0xff] }
 0x2ca   : > { %v1293_v33 = vmul.f32 %v1277_v31, %v4936_v35  ;;  %v1294_v5 = vmul.f32 %v1278_v12, %v4937_v32  ;;  %v1295_v7 = vmul.f32 %v1279_v51, %v4938_v58  ;;  %v1296_v11 = vmul.f32 %v1280_v22, %v4939_v43  ;;  %v4945_v12 = vld [vmem:[#allocation18_spill] sm:$0xff]  ;;  %v4947_v22 = vld [vmem:[#allocation20_spill] sm:$0xff]  ;;  %v4948_v28 = vld [vmem:[#allocation21_spill] sm:$0xff] }
 0x2cb   : > { %v2892_v30 = vpop.eup %2891  ;;  %v1297_v39 = vmul.f32 %v1281_v49, %v4940_v45  ;;  %v1306_v38 = vrot.slane %v1291_v62, 7  ;;  %v1308_v54 = vrot.slane %v1292_v17, 6  ;;  %v726_v56 = vsel %vm357_vm6, %v725_v26, %v724_v63  ;;  %v4946_v63 = vld [vmem:[#allocation19_spill] sm:$0xff] }
 0x2cc   : > { %v801_v47 = vrot.slane %v2892_v30, 1  ;;  %v802_v60 = vrot.slane %v2892_v30, 2  ;;  %v803_v18 = vrot.slane %v2892_v30, 3  ;;  %v804_v53 = vrot.slane %v2892_v30, 4  ;;  %729 = vst.msk [vmem:[#allocation2] sm:$0xff] %vm728_vm8, %v726_v56 }
 0x2cd   : > { %v805_v14 = vrot.slane %v2892_v30, 5  ;;  %v806_v57 = vrot.slane %v2892_v30, 6  ;;  %v807_v8 = vrot.slane %v2892_v30, 7  ;;  %v816_v37 = vmul.f32 %v2892_v30, %v4941_v42 }
 0x2ce   : > { %v817_v59 = vmul.f32 %v801_v47, %v4942_v3  ;;  %v818_v25 = vmul.f32 %v802_v60, %v4943_v46  ;;  %v819_v31 = vmul.f32 %v803_v18, %v4944_v40  ;;  %v820_v51 = vmul.f32 %v804_v53, %v4945_v12 }
 0x2cf   : > { %v821_v26 = vmul.f32 %v805_v14, %v4946_v63  ;;  %v822_v49 = vmul.f32 %v806_v57, %v4947_v22  ;;  %v823_v19 = vmul.f32 %v807_v8, %v4948_v28  ;;  %v1307_v62 = vsel %vm339_vm0, %v1306_v38, %v1290_v10  ;;  %v2894_v29 = vpop.eup %2893  ;;  %v4949_v28 = vld [vmem:[#allocation30_spill] sm:$0xff] }
 0x2d0   : > { %v832_v17 = vrot.slane %v817_v59, 7  ;;  %v834_v35 = vrot.slane %v818_v25, 6  ;;  %v836_v32 = vrot.slane %v819_v31, 5  ;;  %v838_v58 = vrot.slane %v820_v51, 4 }
 0x2d1   : > { %v840_v43 = vrot.slane %v821_v26, 3  ;;  %v842_v30 = vrot.slane %v822_v49, 2  ;;  %v844_v45 = vrot.slane %v823_v19, 1  ;;  %v1309_v56 = vsel %vm342_vm1, %v1308_v54, %v1307_v62  ;;  %v4950_v62 = vld [vmem:[#allocation31_spill] sm:$0xff] }
 0x2d2   : > { %v833_v47 = vsel %vm339_vm0, %v832_v17, %v816_v37  ;;  %v1310_v60 = vrot.slane %v1293_v33, 5  ;;  %v1312_v18 = vrot.slane %v1294_v5, 4  ;;  %v1314_v53 = vrot.slane %v1295_v7, 3 }
 0x2d3   : > { %v4375_v14 = vpop.eup %2895  ;;  %v835_v10 = vsel %vm342_vm1, %v834_v35, %v833_v47  ;;  %v1316_v38 = vrot.slane %v1296_v11, 2  ;;  %v1318_v57 = vrot.slane %v1297_v39, 1  ;;  %v919_v8 = vrot.slane %v2894_v29, 1  ;;  %v1388_v42 = vpop.xlane.xlu1 %1387 }
 0x2d4   : > { %v837_v3 = vsel %vm345_vm2, %v836_v32, %v835_v10  ;;  %v1311_v59 = vsel %vm345_vm2, %v1310_v60, %v1309_v56  ;;  %v920_v46 = vrot.slane %v2894_v29, 2  ;;  %v921_v25 = vrot.slane %v2894_v29, 3  ;;  %v4951_v32 = vld [vmem:[#allocation32_spill] sm:$0xff]  ;;  %v4953_v56 = vld [vmem:[#allocation34_spill] sm:$0xff] }
 0x2d5   : > { %v1389_v54 = vmul.f32 0.0625, %v1388_v42  ;;  %v839_v37 = vsel %vm348_vm3, %v838_v58, %v837_v3  ;;  %v1313_v33 = vsel %vm348_vm3, %v1312_v18, %v1311_v59  ;;  %v922_v5 = vrot.slane %v2894_v29, 4  ;;  %v4955_v18 = vld [vmem:[#allocation36_spill] sm:$0xff] }
 0x2d6   : > { %v841_v7 = vsel %vm351_vm4, %v840_v43, %v839_v37  ;;  %v1315_v40 = vsel %vm351_vm4, %v1314_v53, %v1313_v33  ;;  %v923_v11 = vrot.slane %v2894_v29, 5  ;;  %v924_v39 = vrot.slane %v2894_v29, 6  ;;  %v4952_v43 = vld [vmem:[#allocation33_spill] sm:$0xff] }
 0x2d7   : > { %v1390_v31 = vadd.f32 1e-05, %v1389_v54  ;;  %v843_v12 = vsel %vm354_vm5, %v842_v30, %v841_v7  ;;  %v1317_v51 = vsel %vm354_vm5, %v1316_v38, %v1315_v40  ;;  %v925_v63 = vrot.slane %v2894_v29, 7  ;;  %v1507_v26 = vpop.xlane.xlu1 %1506 }
 0x2d8   : > { %v845_v22 = vsel %vm357_vm6, %v844_v45, %v843_v12  ;;  %v1319_v49 = vsel %vm357_vm6, %v1318_v57, %v1317_v51  ;;  %v934_v19 = vmul.f32 %v2894_v29, %v4949_v28  ;;  %v935_v17 = vmul.f32 %v919_v8, %v4950_v62  ;;  %v4954_v45 = vld [vmem:[#allocation35_spill] sm:$0xff]  ;;  %v4956_v29 = vld [vmem:[#allocation37_spill] sm:$0xff] }
 0x2d9   : > { %2897 = vrsqrt.f32 %v1390_v31  ;;  %v1508_v35 = vmul.f32 0.0625, %v1507_v26  ;;  %847 = vst.msk [vmem:[#allocation2 + $0x8] sm:$0xff] %vm728_vm8, %v845_v22  ;;  %v936_v58 = vmul.f32 %v920_v46, %v4951_v32  ;;  %v937_v30 = vmul.f32 %v921_v25, %v4952_v43  ;;  %v4957_v22 = vld [vmem:[#allocation46_spill] sm:$0xff]  ;;  %v4958_v28 = vld [vmem:[#allocation47_spill] sm:$0xff]  ;;  %v4960_v32 = vld [vmem:[#allocation49_spill] sm:$0xff] }
 0x2da   : > { %1084 = vst.msk [vmem:[#allocation2 + $0x8] sm:$0xff] %vm965_vm9, %v4351_v55  ;;  %v938_v47 = vmul.f32 %v922_v5, %v4953_v56  ;;  %v939_v60 = vmul.f32 %v923_v11, %v4954_v45  ;;  %v940_v53 = vmul.f32 %v924_v39, %v4955_v18  ;;  %v941_v10 = vmul.f32 %v925_v63, %v4956_v29  ;;  %v4961_v43 = vld [vmem:[#allocation50_spill] sm:$0xff] }
 0x2db   : > { %v1509_v38 = vadd.f32 1e-05, %v1508_v35  ;;  %1321 = vst.msk [vmem:[#allocation2 + $0x8] sm:$0xff] %vm1202_vm10, %v1319_v49  ;;  %v950_v57 = vrot.slane %v935_v17, 7  ;;  %v952_v8 = vrot.slane %v936_v58, 6  ;;  %v954_v42 = vrot.slane %v937_v30, 5 }
 0x2dc   : > { %v956_v3 = vrot.slane %v938_v47, 4  ;;  %v958_v59 = vrot.slane %v939_v60, 3  ;;  %v960_v46 = vrot.slane %v940_v53, 2  ;;  %v962_v25 = vrot.slane %v941_v10, 1  ;;  %v4959_v17 = vld [vmem:[#allocation48_spill] sm:$0xff]  ;;  %v4962_v47 = vld [vmem:[#allocation51_spill] sm:$0xff] }
 0x2dd   : > { %2899 = vrsqrt.f32 %v1509_v38  ;;  %v1744_v55 = vpop.xlane.xlu1 %1743  ;;  %v951_v54 = vsel %vm339_vm0, %v950_v57, %v934_v19  ;;  %v1156_v37 = vrot.slane %v4375_v14, 1  ;;  %v1157_v33 = vrot.slane %v4375_v14, 2  ;;  %v4963_v60 = vld [vmem:[#allocation52_spill] sm:$0xff] }
 0x2de   : > { %v1745_v5 = vmul.f32 0.0625, %v1744_v55  ;;  %v953_v7 = vsel %vm342_vm1, %v952_v8, %v951_v54  ;;  %v1158_v40 = vrot.slane %v4375_v14, 3  ;;  %v1159_v11 = vrot.slane %v4375_v14, 4 }
 0x2df   : > { %v955_v39 = vsel %vm345_vm2, %v954_v42, %v953_v7  ;;  %v1160_v31 = vrot.slane %v4375_v14, 5  ;;  %v1161_v12 = vrot.slane %v4375_v14, 6  ;;  %v1162_v51 = vrot.slane %v4375_v14, 7 }
 0x2e0   : > { %v1746_v63 = vadd.f32 1e-05, %v1745_v5  ;;  %v957_v26 = vsel %vm348_vm3, %v956_v3, %v955_v39  ;;  %v1171_v49 = vmul.f32 %v4375_v14, %v4957_v22  ;;  %v1172_v19 = vmul.f32 %v1156_v37, %v4958_v28 }
 0x2e1   : > { %v959_v62 = vsel %vm351_vm4, %v958_v59, %v957_v26  ;;  %v1173_v35 = vmul.f32 %v1157_v33, %v4959_v17  ;;  %v1174_v58 = vmul.f32 %v1158_v40, %v4960_v32  ;;  %v4418_v30 = vmul.f32 %v1159_v11, %v4961_v43 }
 0x2e2   : > { %2901 = vrsqrt.f32 %v1746_v63  ;;  %v961_v56 = vsel %vm354_vm5, %v960_v46, %v959_v62  ;;  %v4422_v45 = vmul.f32 %v1160_v31, %v4962_v47  ;;  %v4425_v18 = vmul.f32 %v1161_v12, %v4963_v60  ;;  %v4964_v62 = vld [vmem:[#allocation53_spill] sm:$0xff]  ;;  %v4979_v46 = vld [vmem:[#allocation75_spill] sm:$0xff] }
 0x2e3   : > { %v4427_v14 = vpop.eup %2897  ;;  %v963_v53 = vsel %vm357_vm6, %v962_v25, %v961_v56  ;;  %v4431_v29 = vmul.f32 %v1162_v51, %v3724_v41  ;;  %v1187_v10 = vrot.slane %v1172_v19, 7  ;;  %v1189_v38 = vrot.slane %v1173_v35, 6  ;;  %v4965_v35 = vld [vmem:[#allocation54_spill] sm:$0xff]  ;;  %v4967_v56 = vld [vmem:[#allocation56_spill] sm:$0xff] }
 0x2e4   : > { %966 = vst.msk [vmem:[#allocation2] sm:$0xff] %vm965_vm9, %v963_v53  ;;  %v1191_v57 = vrot.slane %v1174_v58, 5  ;;  %v1193_v8 = vrot.slane %v4418_v30, 4  ;;  %v1195_v42 = vrot.slane %v4422_v45, 3  ;;  %v1197_v3 = vrot.slane %v4425_v18, 2  ;;  %v4966_v58 = vld [vmem:[#allocation55_spill] sm:$0xff] }
 0x2e5   : > { %v1188_v59 = vsel %vm339_vm0, %v1187_v10, %v1171_v49  ;;  %v1393_v25 = vrot.slane %v4427_v14, 1  ;;  %v1394_v41 = vrot.slane %v4427_v14, 2  ;;  %v1395_v54 = vrot.slane %v4427_v14, 3  ;;  %v4969_v10 = vld [vmem:[#allocation58_spill] sm:$0xff] }
 0x2e6   : > { %v1190_v55 = vsel %vm342_vm1, %v1189_v38, %v1188_v59  ;;  %v4452_v39 = vmul.f32 %v4427_v14, %v3817_v9  ;;  %v4968_v9 = vld [vmem:[#allocation57_spill] sm:$0xff] }
 0x2e7   : > { %v2900_v5 = vpop.eup %2899  ;;  %v4446_v7 = vsel %vm345_vm2, %v1191_v57, %v1190_v55  ;;  %v4970_v57 = vld [vmem:[#allocation59_spill] sm:$0xff] }
 0x2e8   : > { %v1625_v31 = vpop.xlane.xlu0 %1624  ;;  %v1512_v12 = vrot.slane %v2900_v5, 1  ;;  %v1513_v51 = vrot.slane %v2900_v5, 2  ;;  %v1514_v63 = vrot.slane %v2900_v5, 3  ;;  %v1515_v26 = vrot.slane %v2900_v5, 4 }
 0x2e9   : > { %v1626_v22 = vmul.f32 0.0625, %v1625_v31  ;;  %v1516_v49 = vrot.slane %v2900_v5, 5  ;;  %v1517_v28 = vrot.slane %v2900_v5, 6  ;;  %v1518_v19 = vrot.slane %v2900_v5, 7  ;;  %v4971_v31 = vld [vmem:[#allocation60_spill] sm:$0xff] }
 0x2ea   : > { %v1527_v17 = vmul.f32 %v2900_v5, %v4964_v62  ;;  %v1528_v32 = vmul.f32 %v1512_v12, %v4965_v35  ;;  %v1529_v43 = vmul.f32 %v1513_v51, %v4966_v58  ;;  %v1530_v47 = vmul.f32 %v1514_v63, %v4967_v56 }
 0x2eb   : > { %v1627_v60 = vadd.f32 1e-05, %v1626_v22  ;;  %v1531_v53 = vmul.f32 %v1515_v26, %v4968_v9  ;;  %v1532_v38 = vmul.f32 %v1516_v49, %v4969_v10  ;;  %v1533_v59 = vmul.f32 %v1517_v28, %v4970_v57  ;;  %v4973_v10 = vld [vmem:[#allocation69_spill] sm:$0xff] }
 0x2ec   : > { %v2902_v55 = vpop.eup %2901  ;;  %v1534_v13 = vmul.f32 %v1518_v19, %v4971_v31  ;;  %v1543_v11 = vrot.slane %v1528_v32, 7  ;;  %v1545_v40 = vrot.slane %v1529_v43, 6  ;;  %v1547_v5 = vrot.slane %v1530_v47, 5  ;;  %v4972_v43 = vld [vmem:[#allocation68_spill] sm:$0xff] }
 0x2ed   : > { %2903 = vrsqrt.f32 %v1627_v60  ;;  %v1549_v12 = vrot.slane %v1531_v53, 4  ;;  %v1551_v62 = vrot.slane %v1532_v38, 3  ;;  %v1553_v51 = vrot.slane %v1533_v59, 2  ;;  %v4975_v38 = vld [vmem:[#allocation71_spill] sm:$0xff]  ;;  %v4976_v31 = vld [vmem:[#allocation72_spill] sm:$0xff] }
 0x2ee   : > { %v1544_v63 = vsel %vm339_vm0, %v1543_v11, %v1527_v17  ;;  %v1555_v22 = vrot.slane %v1534_v13, 1  ;;  %v1749_v35 = vrot.slane %v2902_v55, 1  ;;  %v1750_v26 = vrot.slane %v2902_v55, 2  ;;  %v4974_v13 = vld [vmem:[#allocation70_spill] sm:$0xff] }
 0x2ef   : > { %v1546_v49 = vsel %vm342_vm1, %v1545_v40, %v1544_v63  ;;  %v1751_v58 = vrot.slane %v2902_v55, 3  ;;  %v1752_v28 = vrot.slane %v2902_v55, 4  ;;  %v1753_v56 = vrot.slane %v2902_v55, 5 }
 0x2f0   : > { %v1548_v9 = vsel %vm345_vm2, %v1547_v5, %v1546_v49  ;;  %v1754_v19 = vrot.slane %v2902_v55, 6  ;;  %v1755_v32 = vrot.slane %v2902_v55, 7  ;;  %v1764_v47 = vmul.f32 %v2902_v55, %v4972_v43  ;;  %v4977_v5 = vld [vmem:[#allocation73_spill] sm:$0xff]  ;;  %v4978_v55 = vld [vmem:[#allocation74_spill] sm:$0xff] }
 0x2f1   : > { %v1981_v60 = vpop.xlane.xlu1 %1980  ;;  %v1550_v53 = vsel %vm348_vm3, %v1549_v12, %v1548_v9  ;;  %v1765_v11 = vmul.f32 %v1749_v35, %v4973_v10  ;;  %v1766_v17 = vmul.f32 %v1750_v26, %v4974_v13  ;;  %v1767_v57 = vmul.f32 %v1751_v58, %v4975_v38  ;;  %v4986_v38 = vld [vmem:[#allocation65_spill] sm:$0xff] }
 0x2f2   : > { %v1982_v40 = vmul.f32 0.0625, %v1981_v60  ;;  %v1552_v59 = vsel %vm351_vm4, %v1551_v62, %v1550_v53  ;;  %v1768_v63 = vmul.f32 %v1752_v28, %v4976_v31  ;;  %v1769_v49 = vmul.f32 %v1753_v56, %v4977_v5 }
 0x2f3   : > { %v1554_v33 = vsel %vm354_vm5, %v1553_v51, %v1552_v59  ;;  %v1770_v43 = vmul.f32 %v1754_v19, %v4978_v55  ;;  %v1771_v12 = vmul.f32 %v1755_v32, %v4979_v46  ;;  %v1780_v9 = vrot.slane %v1765_v11, 7  ;;  %v4980_v32 = vld [vmem:[#allocation61_spill] sm:$0xff]  ;;  %v4983_v11 = vld [vmem:[#allocation64_spill] sm:$0xff] }
 0x2f4   : > { %v1983_v37 = vadd.f32 1e-05, %v1982_v40  ;;  %v1556_v35 = vsel %vm357_vm6, %v1555_v22, %v1554_v33  ;;  %v1782_v26 = vrot.slane %v1766_v17, 6  ;;  %v1784_v10 = vrot.slane %v1767_v57, 5  ;;  %v4988_v40 = vld [vmem:[#allocation66_spill] sm:$0xff] }
 0x2f5   : > { %1558 = vst.msk [vmem:[#allocation2 + $0x8] sm:$0xff] %vm1439_vm11, %v1556_v35  ;;  %v1781_v62 = vsel %vm339_vm0, %v1780_v9, %v1764_v47  ;;  %v1786_v58 = vrot.slane %v1768_v63, 4  ;;  %v1788_v28 = vrot.slane %v1769_v49, 3  ;;  %v1790_v60 = vrot.slane %v1770_v43, 2  ;;  %v4981_v47 = vld [vmem:[#allocation62_spill] sm:$0xff]  ;;  %v4990_v63 = vld [vmem:[#allocation67_spill] sm:$0xff] }
 0x2f6   : > { %2905 = vrsqrt.f32 %v1983_v37  ;;  %v1783_v51 = vsel %vm342_vm1, %v1782_v26, %v1781_v62  ;;  %v1792_v56 = vrot.slane %v1771_v12, 1  ;;  %v1194_v46 = vsel %vm348_vm3, %v1193_v8, %v4446_v7  ;;  %v4982_v7 = vld [vmem:[#allocation63_spill] sm:$0xff] }
 0x2f7   : > { %v4484_v19 = vpop.eup %2903  ;;  %v1785_v33 = vsel %vm345_vm2, %v1784_v10, %v1783_v51  ;;  %v1196_v22 = vsel %vm351_vm4, %v1195_v42, %v1194_v46  ;;  %v1409_v37 = vmul.f32 %v1393_v25, %v4980_v32  ;;  %v1410_v53 = vmul.f32 %v1394_v41, %v4981_v47 }
 0x2f8   : > { %v1787_v30 = vsel %vm348_vm3, %v1786_v58, %v1785_v33  ;;  %v1198_v8 = vsel %vm354_vm5, %v1197_v3, %v1196_v22  ;;  %v1411_v45 = vmul.f32 %v1395_v54, %v4982_v7  ;;  %v4984_v42 = vrot.slane %v4427_v14, 4  ;;  %v4993_v7 = vld [vmem:[#allocation77_spill] sm:$0xff] }
 0x2f9   : > { %v1789_v25 = vsel %vm351_vm4, %v1788_v28, %v1787_v30  ;;  %v4985_v17 = vrot.slane %v4431_v29, 1  ;;  %v4987_v57 = vrot.slane %v4427_v14, 5  ;;  %v4989_v3 = vrot.slane %v4427_v14, 6  ;;  %v4992_v30 = vld [vmem:[#allocation76_spill] sm:$0xff] }
 0x2fa   : > { %v1412_v13 = vmul.f32 %v4984_v42, %v4983_v11  ;;  %v2218_v31 = vpop.xlane.xlu1 %2217  ;;  %v1791_v54 = vsel %vm354_vm5, %v1790_v60, %v1789_v25  ;;  %v4991_v5 = vrot.slane %v4427_v14, 7  ;;  %v1424_v29 = vrot.slane %v1409_v37, 7  ;;  %v4994_v11 = vld [vmem:[#allocation78_spill] sm:$0xff] }
 0x2fb   : > { %v1200_v41 = vsel %vm357_vm6, %v4985_v17, %v1198_v8  ;;  %v1413_v18 = vmul.f32 %v4987_v57, %v4986_v38  ;;  %v1414_v59 = vmul.f32 %v4989_v3, %v4988_v40  ;;  %v1426_v55 = vrot.slane %v1410_v53, 6  ;;  %v4995_v40 = vld [vmem:[#allocation84_spill] sm:$0xff] }
 0x2fc   : > { %1203 = vst.msk [vmem:[#allocation2] sm:$0xff] %vm1202_vm10, %v1200_v41  ;;  %v4521_v49 = vmul.f32 %v4991_v5, %v4990_v63  ;;  %v2219_v43 = vmul.f32 0.0625, %v2218_v31  ;;  %v1793_v12 = vsel %vm357_vm6, %v1792_v56, %v1791_v54  ;;  %v1428_v9 = vrot.slane %v1411_v45, 5  ;;  %v4996_v31 = vld [vmem:[#allocation85_spill] sm:$0xff]  ;;  %v4997_v54 = vld [vmem:[#allocation86_spill] sm:$0xff]  ;;  %v4998_v5 = vld [vmem:[#allocation87_spill] sm:$0xff] }
 0x2fd   : > { %v1430_v35 = vrot.slane %v1412_v13, 4  ;;  %1795 = vst.msk [vmem:[#allocation2 + $0x8] sm:$0xff] %vm1676_vm12, %v1793_v12  ;;  %v1425_v26 = vsel %vm339_vm0, %v1424_v29, %v4452_v39  ;;  %v1432_v10 = vrot.slane %v1413_v18, 3  ;;  %v1434_v62 = vrot.slane %v1414_v59, 2  ;;  %v4999_v29 = vld [vmem:[#allocation88_spill] sm:$0xff]  ;;  %v5000_v12 = vld [vmem:[#allocation89_spill] sm:$0xff] }
 0x2fe   : > { %v1436_v58 = vrot.slane %v4521_v49, 1  ;;  %v2220_v28 = vadd.f32 1e-05, %v2219_v43  ;;  %v1427_v14 = vsel %vm342_vm1, %v1426_v55, %v1425_v26  ;;  %v1630_v60 = vrot.slane %v4484_v19, 1 }
 0x2ff   : > { %v1631_v51 = vrot.slane %v4484_v19, 2  ;;  %v1429_v56 = vsel %vm345_vm2, %v1428_v9, %v1427_v14  ;;  %v1632_v46 = vrot.slane %v4484_v19, 3  ;;  %v1633_v33 = vrot.slane %v4484_v19, 4 }
 0x300   : > { %v1634_v22 = vrot.slane %v4484_v19, 5  ;;  %2907 = vrsqrt.f32 %v2220_v28  ;;  %v1431_v39 = vsel %vm348_vm3, %v1430_v35, %v1429_v56  ;;  %v1635_v32 = vrot.slane %v4484_v19, 6  ;;  %v2906_v47 = vpop.eup %2905  ;;  %v5001_v35 = vld [vmem:[#allocation90_spill] sm:$0xff] }
 0x301   : > { %v1636_v37 = vrot.slane %v4484_v19, 7  ;;  %v1433_v53 = vsel %vm351_vm4, %v1432_v10, %v1431_v39  ;;  %v4541_v8 = vmul.f32 %v4484_v19, %v4992_v30  ;;  %v4544_v45 = vmul.f32 %v1630_v60, %v4993_v7  ;;  %v5002_v10 = vld [vmem:[#allocation91_spill] sm:$0xff] }
 0x302   : > { %v4547_v42 = vmul.f32 %v1631_v51, %v4994_v11  ;;  %v1986_v13 = vrot.slane %v2906_v47, 1  ;;  %v1987_v25 = vrot.slane %v2906_v47, 2  ;;  %v1988_v17 = vrot.slane %v2906_v47, 3 }
 0x303   : > { %v1989_v41 = vrot.slane %v2906_v47, 4  ;;  %v1990_v38 = vrot.slane %v2906_v47, 5  ;;  %v1991_v57 = vrot.slane %v2906_v47, 6  ;;  %v1992_v18 = vrot.slane %v2906_v47, 7  ;;  %v1862_v59 = vpop.xlane.xlu0 %1861 }
 0x304   : > { %v2001_v3 = vmul.f32 %v2906_v47, %v4995_v40  ;;  %v2002_v19 = vmul.f32 %v1986_v13, %v4996_v31  ;;  %v2003_v63 = vmul.f32 %v1987_v25, %v4997_v54  ;;  %v2004_v49 = vmul.f32 %v1988_v17, %v4998_v5  ;;  %v5003_v25 = vld [vmem:[#allocation79_spill] sm:$0xff]  ;;  %v5005_v40 = vld [vmem:[#allocation81_spill] sm:$0xff]  ;;  %v5006_v54 = vld [vmem:[#allocation82_spill] sm:$0xff] }
 0x305   : > { %v2005_v55 = vmul.f32 %v1989_v41, %v4999_v29  ;;  %v1863_v43 = vmul.f32 0.0625, %v1862_v59  ;;  %v2006_v9 = vmul.f32 %v1990_v38, %v5000_v12  ;;  %v2007_v26 = vmul.f32 %v1991_v57, %v5001_v35  ;;  %v5004_v41 = vld [vmem:[#allocation80_spill] sm:$0xff] }
 0x306   : > { %v2008_v28 = vmul.f32 %v1992_v18, %v5002_v10  ;;  %v2017_v14 = vrot.slane %v2002_v19, 7  ;;  %v2019_v60 = vrot.slane %v2003_v63, 6  ;;  %v2021_v51 = vrot.slane %v2004_v49, 5  ;;  %v5007_v63 = vld [vmem:[#allocation83_spill] sm:$0xff] }
 0x307   : > { %v2023_v56 = vrot.slane %v2005_v55, 4  ;;  %v1864_v39 = vadd.f32 1e-05, %v1863_v43  ;;  %v2025_v47 = vrot.slane %v2006_v9, 3  ;;  %v2027_v30 = vrot.slane %v2007_v26, 2 }
 0x308   : > { %v2029_v7 = vrot.slane %v2008_v28, 1  ;;  %v2018_v11 = vsel %vm339_vm0, %v2017_v14, %v2001_v3  ;;  %v1435_v13 = vsel %vm354_vm5, %v1434_v62, %v1433_v53  ;;  %v1648_v17 = vmul.f32 %v1632_v46, %v5003_v25 }
 0x309   : > { %v1649_v38 = vmul.f32 %v1633_v33, %v5004_v41  ;;  %2909 = vrsqrt.f32 %v1864_v39  ;;  %v2020_v57 = vsel %vm342_vm1, %v2019_v60, %v2018_v11  ;;  %v1437_v18 = vsel %vm357_vm6, %v1436_v58, %v1435_v13 }
 0x30a   : > { %v1650_v59 = vmul.f32 %v1634_v22, %v5005_v40  ;;  %v2908_v31 = vpop.eup %2907  ;;  %v2022_v19 = vsel %vm345_vm2, %v2021_v51, %v2020_v57  ;;  %1440 = vst.msk [vmem:[#allocation2] sm:$0xff] %vm1439_vm11, %v1437_v18  ;;  %v1651_v3 = vmul.f32 %v1635_v32, %v5006_v54  ;;  %v4568_v62 = vmul.f32 %v1636_v37, %v5007_v63 }
 0x30b   : > { %v1661_v46 = vrot.slane %v4544_v45, 7  ;;  %v2024_v33 = vsel %vm348_vm3, %v2023_v56, %v2022_v19  ;;  %v2223_v53 = vrot.slane %v2908_v31, 1  ;;  %v2224_v5 = vrot.slane %v2908_v31, 2 }
 0x30c   : > { %v2225_v49 = vrot.slane %v2908_v31, 3  ;;  %v2026_v58 = vsel %vm351_vm4, %v2025_v47, %v2024_v33  ;;  %v2226_v22 = vrot.slane %v2908_v31, 4  ;;  %v2227_v29 = vrot.slane %v2908_v31, 5  ;;  %v2099_v43 = vpop.xlane.xlu0 %2098 }
 0x30d   : > { %v2228_v55 = vrot.slane %v2908_v31, 6  ;;  %v2028_v12 = vsel %vm354_vm5, %v2027_v30, %v2026_v58  ;;  %v2229_v9 = vrot.slane %v2908_v31, 7  ;;  %v2238_v32 = vmul.f32 %v2908_v31, %v4092_v20 }
 0x30e   : > { %v2239_v37 = vmul.f32 %v2223_v53, %v4095_v23  ;;  %v2100_v35 = vmul.f32 0.0625, %v2099_v43  ;;  %v2030_v45 = vsel %vm357_vm6, %v2029_v7, %v2028_v12  ;;  %v2240_v26 = vmul.f32 %v2224_v5, %v4098_v27  ;;  %v5009_v43 = vld [vmem:[#allocation94_spill] sm:$0xff] }
 0x30f   : > { %v2241_v10 = vmul.f32 %v2225_v49, %v4102_v2  ;;  %2032 = vst.msk [vmem:[#allocation2 + $0x8] sm:$0xff] %vm1913_vm13, %v2030_v45  ;;  %v2242_v28 = vmul.f32 %v2226_v22, %v4105_v0  ;;  %v2243_v14 = vmul.f32 %v2227_v29, %v4108_v61  ;;  %v2244_v60 = vmul.f32 %v2228_v55, %v4112_v24  ;;  %v5008_v29 = vld [vmem:[#allocation93_spill] sm:$0xff]  ;;  %v5012_v45 = vld [vmem:[#allocation92_spill] sm:$0xff] }
 0x310   : > { %v2245_v20 = vmul.f32 %v2229_v9, %v4115_v52  ;;  %v2101_v51 = vadd.f32 1e-05, %v2100_v35  ;;  %v2254_v23 = vrot.slane %v2239_v37, 7  ;;  %v2256_v56 = vrot.slane %v2240_v26, 6  ;;  %v5010_v9 = vld [vmem:[#allocation95_spill] sm:$0xff]  ;;  %v5011_v37 = vld [vmem:[#allocation96_spill] sm:$0xff] }
 0x311   : > { %v2258_v39 = vrot.slane %v2241_v10, 5  ;;  %v2260_v47 = vrot.slane %v2242_v28, 4  ;;  %v2262_v30 = vrot.slane %v2243_v14, 3  ;;  %v2264_v7 = vrot.slane %v2244_v60, 2 }
 0x312   : > { %v2266_v27 = vrot.slane %v2245_v20, 1  ;;  %2911 = vrsqrt.f32 %v2101_v51  ;;  %v2255_v2 = vsel %vm339_vm0, %v2254_v23, %v2238_v32  ;;  %v1662_v0 = vsel %vm339_vm0, %v1661_v46, %v4541_v8 }
 0x313   : > { %v1663_v61 = vrot.slane %v4547_v42, 6  ;;  %v2910_v11 = vpop.eup %2909  ;;  %v2257_v24 = vsel %vm342_vm1, %v2256_v56, %v2255_v2  ;;  %v1665_v52 = vrot.slane %v1648_v17, 5  ;;  %v1667_v13 = vrot.slane %v1649_v38, 4 }
 0x314   : > { %v1669_v25 = vrot.slane %v1650_v59, 3  ;;  %v2259_v41 = vsel %vm345_vm2, %v2258_v39, %v2257_v24  ;;  %v1671_v18 = vrot.slane %v1651_v3, 2  ;;  %v1673_v40 = vrot.slane %v4568_v62, 1 }
 0x315   : > { %v1664_v57 = vsel %vm342_vm1, %v1663_v61, %v1662_v0  ;;  %v2261_v31 = vsel %vm348_vm3, %v2260_v47, %v2259_v41  ;;  %v1867_v8 = vrot.slane %v2910_v11, 1  ;;  %v1868_v54 = vrot.slane %v2910_v11, 2 }
 0x316   : > { %v1666_v19 = vsel %vm345_vm2, %v1665_v52, %v1664_v57  ;;  %v2263_v42 = vsel %vm351_vm4, %v2262_v30, %v2261_v31  ;;  %v1869_v17 = vrot.slane %v2910_v11, 3  ;;  %v1870_v38 = vrot.slane %v2910_v11, 4 }
 0x317   : > { %v1668_v63 = vsel %vm348_vm3, %v1667_v13, %v1666_v19  ;;  %v2265_v59 = vsel %vm354_vm5, %v2264_v7, %v2263_v42  ;;  %v1871_v33 = vrot.slane %v2910_v11, 5  ;;  %v1872_v3 = vrot.slane %v2910_v11, 6 }
 0x318   : > { %v1670_v46 = vsel %vm351_vm4, %v1669_v25, %v1668_v63  ;;  %v2267_v62 = vsel %vm357_vm6, %v2266_v27, %v2265_v59  ;;  %v1873_v5 = vrot.slane %v2910_v11, 7  ;;  %v1883_v58 = vmul.f32 %v1867_v8, %v4151_v15 }
 0x319   : > { %v1672_v53 = vsel %vm354_vm5, %v1671_v18, %v1670_v46  ;;  %2269 = vst.msk [vmem:[#allocation2 + $0x8] sm:$0xff] %vm2150_vm14, %v2267_v62  ;;  %v1884_v22 = vmul.f32 %v1868_v54, %v4155_v21  ;;  %v1885_v55 = vmul.f32 %v1869_v17, %v5008_v29  ;;  %v1886_v12 = vmul.f32 %v1870_v38, %v5009_v43  ;;  %v2392_v29 = vpop.permute.xlu0 %2391 }
 0x31a   : > { %v1674_v49 = vsel %vm357_vm6, %v1673_v40, %v1672_v53  ;;  %v1887_v32 = vmul.f32 %v1871_v33, %v5010_v9  ;;  %v1888_v35 = vmul.f32 %v1872_v3, %v5011_v37  ;;  %v1882_v26 = vmul.f32 %v2910_v11, %v5012_v45  ;;  %v2471_v37 = vld [vmem:[%s4732_s5] sm:$0xf] }
 0x31b   : > { %1677 = vst.msk [vmem:[#allocation2] sm:$0xff] %vm1676_vm12, %v1674_v49  ;;  %v1889_v10 = vmul.f32 %v1873_v5, %v4171_v50  ;;  %v1898_v28 = vrot.slane %v1883_v58, 7  ;;  %v1900_v14 = vrot.slane %v1884_v22, 6  ;;  %v1902_v15 = vrot.slane %v1885_v55, 5  ;;  %v2272_v49 = vld [vmem:[%s4728_s1] sm:$0xf] }
 0x31c   : > { %v2912_v60 = vpop.eup %2911  ;;  %v1904_v21 = vrot.slane %v1886_v12, 4  ;;  %v1906_v20 = vrot.slane %v1887_v32, 3  ;;  %v1908_v30 = vrot.slane %v1888_v35, 2  ;;  %v5013_v5 = vmov 0.0   ;;  %v2273_v58 = vld [vmem:[%s4729_s2] sm:$0xf] }
 0x31d   : > { %v1899_v51 = vsel %vm339_vm0, %v1898_v28, %v1882_v26  ;;  %v2104_v23 = vrot.slane %v2912_v60, 1  ;;  %v2105_v56 = vrot.slane %v2912_v60, 2  ;;  %v2106_v39 = vrot.slane %v2912_v60, 3  ;;  %2276 = vperm.xlu1 %2879, %v2273_v58   ;;  %v2472_v22 = vld [vmem:[%s4733_s6] sm:$0xf] }
 0x31e   : > { %v1901_v47 = vsel %vm342_vm1, %v1900_v14, %v1899_v51  ;;  %v2107_v7 = vrot.slane %v2912_v60, 4  ;;  %v2108_v27 = vrot.slane %v2912_v60, 5  ;;  %v1910_v50 = vrot.slane %v1889_v10, 1 }
 0x31f   : > { %v1903_v2 = vsel %vm345_vm2, %v1902_v15, %v1901_v47  ;;  %v2109_v0 = vrot.slane %v2912_v60, 6  ;;  %v2120_v61 = vmul.f32 %v2104_v23, %v4208_v34  ;;  %v2110_v52 = vrot.slane %v2912_v60, 7 }
 0x320   : > { %v2271_v11 = vld [vmem:[#allocation2 + $0x8] sm:$0xff]  ;;  %v1905_v24 = vsel %vm348_vm3, %v1904_v21, %v1903_v2  ;;  %v2121_v13 = vmul.f32 %v2105_v56, %v4211_v6  ;;  %v2122_v25 = vmul.f32 %v2106_v39, %v4214_v16  ;;  %v2119_v18 = vmul.f32 %v2912_v60, %v4204_v36  ;;  %v2929_v39 = vld [vmem:[%s3222_s23 + $0x1] sm:$0x1] }
 0x321   : > { %2398 = vmatprep.subr.mxu1 %v2271_v11  ;;  %v2282_v41 = vrot.slane %v2271_v11, 4  ;;  %v1907_v57 = vsel %vm351_vm4, %v1906_v20, %v1905_v24  ;;  %v2123_v40 = vmul.f32 %v2107_v7, %v4218_v48  ;;  %v2124_v34 = vmul.f32 %v2108_v27, %v4221_v4  ;;  %2560 = vperm.xlu1 %2879, %v2472_v22   ;;  %v2930_v7 = vld [vmem:[%s3222_s23] sm:$0x1]  ;;  %v2933_v24 = vld [vmem:[%s3222_s23 + $0x7] sm:$0x1] }
 0x322   : > { %v1909_v31 = vsel %vm354_vm5, %v1908_v30, %v1907_v57  ;;  %v2135_v19 = vrot.slane %v2120_v61, 7  ;;  %v2137_v8 = vrot.slane %v2121_v13, 6  ;;  %v2125_v16 = vmul.f32 %v2109_v0, %v4224_v1  ;;  %v2932_v61 = vld [vmem:[%s3222_s23 + $0x5] sm:$0x1] }
 0x323   : > { %2777 = vmatprep.subr.msk.mxu0 %vm2287_vm15, %v2282_v41  ;;  %v1911_v6 = vsel %vm357_vm6, %v1910_v50, %v1909_v31  ;;  %v2126_v54 = vmul.f32 %v2110_v52, %v4228_v44  ;;  %v2139_v42 = vrot.slane %v2122_v25, 5  ;;  %v2141_v63 = vrot.slane %v2123_v40, 4  ;;  %v2387_v44 = vld [vmem:[%s4730_s3] sm:$0xff] }
 0x324   : > { %1914 = vst.msk [vmem:[#allocation2] sm:$0xff] %vm1913_vm13, %v1911_v6  ;;  %v2136_v36 = vsel %vm339_vm0, %v2135_v19, %v2119_v18  ;;  %v2143_v17 = vrot.slane %v2124_v34, 3  ;;  %v2145_v59 = vrot.slane %v2125_v16, 2  ;;  %vm2394_vm0 = vcmask 64512   ;;  %v2931_v50 = vld [vmem:[%s3222_s23 + $0x3] sm:$0x1] }
 0x325   : > { %v2138_v48 = vsel %vm342_vm1, %v2137_v8, %v2136_v36  ;;  %v2147_v33 = vrot.slane %v2126_v54, 1  ;;  %vm2283_vm1 = vcmask 31744   ;;  %v2934_v41 = vld [vmem:[%s3222_s23 + $0x2] sm:$0x1]  ;;  %v2935_v18 = vld [vmem:[%s3222_s23 + $0x4] sm:$0x1] }
 0x326   : > { %v2140_v4 = vsel %vm345_vm2, %v2139_v42, %v2138_v48  ;;  %vm3063_vm2 = vmmov 0   ;;  %v2936_v31 = vld [vmem:[%s3222_s23 + $0x6] sm:$0x1]  ;;  %s313_s23 = scalar_lea.vmem [#allocation6], %s2776_s21 }
 0x327   : > { %v2142_v38 = vsel %vm348_vm3, %v2141_v63, %v2140_v4  ;;  %s2682_s13 = sshll.u32 %s313_s23, 4  ;;  %s4676_s13 = int_to_ptr.vmem [resolvable:$true] %s2682_s13 }
 0x328   : > { %v2144_v46 = vsel %vm351_vm4, %v2143_v17, %v2142_v38  ;;  %s2967_s10 = scalar_lea.vmem %s4676_s13, 128  ;;  %p2974_p6 = scmp.lt.s32.totalorder %s4676_s13, %s2972_s12 }
 0x329   : > { %v2146_v1 = vsel %vm354_vm5, %v2145_v59, %v2144_v46  ;;  %p2968_p8 = scmp.ne.s32.totalorder %s4676_s13, %s2967_s10  ;;  %p2975_p13 = scmp.lt.s32.totalorder %s2973_s11, %s2967_s10 }
 0x32a   : > { %v2148_v3 = vsel %vm357_vm6, %v2147_v33, %v2146_v1 }
 0x32b   : > { %2151 = vst.msk [vmem:[#allocation2] sm:$0xff] %vm2150_vm14, %v2148_v3  ;;  %p2969_p11 = pnand %p2968_p8, %p5014_p9  ;;  %p2976_p2 = por %p2975_p13, %p2974_p6 }
 0x32d   : > { %p2970_p0 = pneg %p2969_p11 }
 0x32f   : > { %p2977_p5 = pnand %p2976_p2, %p2970_p0 }
 0x332   : > { %v2270_v62 = vld [vmem:[#allocation2] sm:$0xff] }
 0x333   : > { %2399 = vmatpush1.msra.mxu1 %v2270_v62  ;;  %v2281_v53 = vrot.slane %v2270_v62, 4 }
 0x334   : > { %2780 = vmatmul.mubr.msk.f32.vlgmr.msra.gmra.mrb[0].mxu1 %vm2394_vm0, %v2387_v44  ;;  %2799 = vmatprep.subr.mxu1 %v5013_v5 }
 0x335   : > { %2778 = vmatpush1.msk.msra.mxu0 %vm2287_vm15, %v2281_v53  ;;  %2801 = vmatprep.mubr.msk.f32.mxu1 %vm3063_vm2, %v5013_v5 }
 0x336   : > { %2794 = vmatprep.subr.mxu0 %v5013_v5  ;;  %2779 = vmatmul.mubr.msk.f32.vlgmr.msra.gmra.mrb[0].mxu0 %vm2283_vm1, %v2272_v49 }
 0x337   : > { %2796 = vmatprep.mubr.msk.f32.mxu0 %vm3063_vm2, %v5013_v5 }
 0x39c   : > { %v2277_v10 = vpop.permute.xlu1 %2276 }
 0x3a0   : > { %v2561_v20 = vpop.permute.xlu1 %2560 }
 0x3a1   : > { %v2562_v30 = vrot.slane %v2561_v20, 1  ;;  %v2563_v2 = vrot.slane %v2561_v20, 2  ;;  %v2564_v13 = vrot.slane %v2561_v20, 3 }
 0x407   : > { %v2464_v55 = vpop.f32.mrb[0].mxu1 }
 0x408   : > { %v2465_v43 = vadd.f32 %v2464_v55, %v2392_v29  ;;  %v2466_v12 = vpop.f32.mrb[1].mxu1 }
 0x409   : > { %v2467_v9 = vadd.f32 %v2466_v12, %v2392_v29  ;;  %v2358_v45 = vpop.f32.mrb[0].mxu0 }
 0x40a   : > { %v2470_v32 = vmul.f32 %v2465_v43, %v2271_v11  ;;  %v2360_v26 = vpop.f32.mrb[1].mxu0  ;;  %v2359_v14 = vadd.f32 %v2358_v45, %v2277_v10 }
 0x40b   : > { %v2469_v35 = vmul.f32 %v2467_v9, %v2270_v62  ;;  %v2361_v28 = vadd.f32 %v2360_v26, %v2277_v10 }
 0x40c   : > { %2800 = vmatpush3.msra.mxu1 %v2470_v32  ;;  %v2364_v51 = vrot.slane %v2359_v14, 1  ;;  %v2365_v23 = vrot.slane %v2359_v14, 2  ;;  %v2366_v56 = vrot.slane %v2359_v14, 3  ;;  %v2371_v27 = vmul.f32 %v2930_v7, %v2359_v14 }
 0x40d   : > { %2795 = vmatpush3.msra.mxu0 %v2469_v35  ;;  %2802 = vmatmul.mubr.msk.f32.vlgmr.msra.gmra.mrb[2].mxu1 %vm2394_vm0, %v2471_v37  ;;  %v2376_v60 = vrot.slane %v2361_v28, 1  ;;  %v2377_v15 = vrot.slane %v2361_v28, 2  ;;  %v2378_v21 = vrot.slane %v2361_v28, 3  ;;  %v2383_v47 = vmul.f32 %v2929_v39, %v2361_v28 }
 0x40e   : > { %2797 = vmatmul.mubr.msk.f32.vlgmr.msra.gmra.mrb[2].mxu0 %vm2394_vm0, %v2471_v37  ;;  %v2372_v57 = vmul.f32 %v2934_v41, %v2364_v51  ;;  %v2373_v40 = vmul.f32 %v2935_v18, %v2365_v23  ;;  %v2374_v34 = vmul.f32 %v2936_v31, %v2366_v56 }
 0x40f   : > { %v2384_v0 = vmul.f32 %v2931_v50, %v2376_v60  ;;  %v2385_v11 = vmul.f32 %v2932_v61, %v2377_v15  ;;  %v2386_v52 = vmul.f32 %v2933_v24, %v2378_v21 }
 0x4e0   : > { %v2643_v25 = vpop.f32.mrb[2].mxu1 }
 0x4e1   : > { %v2648_v19 = vrot.slane %v2643_v25, 1  ;;  %v2649_v8 = vrot.slane %v2643_v25, 2  ;;  %v2650_v6 = vrot.slane %v2643_v25, 3  ;;  %v2655_v16 = vadd.f32 %v2643_v25, %v2383_v47  ;;  %v2542_v54 = vpop.f32.mrb[2].mxu0  ;;  %v2803_v36 = vpop.f32.mrb[3].mxu1 }
 0x4e2   : > { %v2547_v42 = vrot.slane %v2542_v54, 1  ;;  %v2548_v48 = vrot.slane %v2542_v54, 2  ;;  %v2549_v63 = vrot.slane %v2542_v54, 3  ;;  %v2554_v4 = vadd.f32 %v2542_v54, %v2371_v27  ;;  %v2798_v17 = vpop.f32.mrb[3].mxu0 }
 0x4e3   : > { %v2656_v38 = vadd.f32 %v2648_v19, %v2384_v0  ;;  %v2657_v59 = vadd.f32 %v2649_v8, %v2385_v11  ;;  %v2658_v46 = vadd.f32 %v2650_v6, %v2386_v52  ;;  %v2659_v33 = vadd.f32 %v2655_v16, %v2561_v20 }
 0x4e4   : > { %v2555_v1 = vadd.f32 %v2547_v42, %v2372_v57  ;;  %v2556_v3 = vadd.f32 %v2548_v48, %v2373_v40  ;;  %v2557_v44 = vadd.f32 %v2549_v63, %v2374_v34  ;;  %v2569_v62 = vadd.f32 %v2561_v20, %v2554_v4 }
 0x4e5   : > { %v2660_v53 = vadd.f32 %v2656_v38, %v2562_v30  ;;  %v2661_v5 = vadd.f32 %v2657_v59, %v2563_v2  ;;  %v2662_v49 = vadd.f32 %v2658_v46, %v2564_v13  ;;  %2663 = vst [vmem:[%s313_s23 + $0x1] sm:$0x1] %v2659_v33 }
 0x4e6   : > { %v2570_v58 = vadd.f32 %v2562_v30, %v2555_v1  ;;  %v2571_v22 = vadd.f32 %v2563_v2, %v2556_v3  ;;  %v2572_v29 = vadd.f32 %v2564_v13, %v2557_v44  ;;  %2573 = vst [vmem:[%s313_s23] sm:$0x1] %v2569_v62 }
 0x4e7   : > { %2664 = vst [vmem:[%s313_s23 + $0x3] sm:$0x1] %v2660_v53  ;;  %2665 = vst [vmem:[%s313_s23 + $0x5] sm:$0x1] %v2661_v5 }
 0x4e8   : > { %2666 = vst [vmem:[%s313_s23 + $0x7] sm:$0x1] %v2662_v49  ;;  %2574 = vst [vmem:[%s313_s23 + $0x2] sm:$0x1] %v2570_v58 }
 0x4e9   : > { %2575 = vst [vmem:[%s313_s23 + $0x4] sm:$0x1] %v2571_v22  ;;  %2576 = vst [vmem:[%s313_s23 + $0x6] sm:$0x1] %v2572_v29 }
 0x4ea   : > { %2980 = shalt.err (!%p2977_p5)
}
 0x4eb   : > { %s2981_s21 = scalar_lea.hbm %s4674_s27, 128  ;;  %s2985_s22 = scalar_lea.hbm %s4734_s7, 256 }
 0x4ec   : > { %p2982_p4 = scmp.ne.s32.totalorder %s4674_s27, %s2981_s21  ;;  %p2986_p12 = scmp.lt.u32.totalorder %s4674_s27, %s4734_s7 }
 0x4ed   : > { %p2987_p1 = scmp.lt.u32.totalorder %s2985_s22, %s2981_s21  ;;  %p2989_p8 = scmp.lt.u32.totalorder %s2981_s21, %s4674_s27 }
 0x4ee   : > { %p2983_p7 = pnand %p2982_p4, %p5014_p9 }
 0x4ef   : > { %p2988_p3 = por %p2987_p1, %p2986_p12 }
 0x4f0   : > { %p2984_p10 = pneg %p2983_p7 }
 0x4f1   : > { %p2990_p11 = por %p2989_p8, %p2988_p3 }
 0x4f3   : > { %p2991_p0 = pnand %p2990_p11, %p2984_p10 }
 0x4f5   : > { %2994 = shalt.err (!%p2991_p0)
}
 0x4f6   : > { %s3065_s10 = smov 2  }
 0x4f7   : > { %2806 = dma.vmem_to_hbm [thread:$0]  (%p5014_p9), %s4676_s13, 128, %s4674_s27, %s2668_s8, %s3059_s18, %s3059_s18, %s3065_s10  }
 0x4f8 PF: > { %s2697_s12 = sand.u32 1, %s3029_s24   ;;  %p5015_p6 = scmp.ne.s32.totalorder %s4829_s16, 0 }
 0x4f9   : > { %p5016_p13 = scmp.ge.s32.totalorder %s3049_s29, 2  ;;  %s2698_s11 = scalar_lea.sflag [#allocation5], %s2697_s12 }
 0x4fb   : > { %p2813_p2 = pnand %p5016_p13, %p5015_p6 }
 0x4fd   : > { %3024 = dma.done.wait (!%p2813_p2), %s2698_s11, 128  }
 0x4fe   : > { %3026 = vsyncadd (!%p2813_p2), %s2698_s11, 4294967168  ;;  %s23_s29 = sadd.s32 1, %s3049_s29   ;;  %s5017_s24 = smov %s3033_s25 }
 0x4ff   : > { %p20_p5 = scmp.ge.s32.totalorder %s23_s29, 4   ;;  %s5018_s25 = smov %s3037_s26 }
 0x500   : > { %s5019_s26 = smov %s3162_s15  ;;  %s5020_s27 = smov %s3045_s28 }
 0x501   : > { %s5021_s28 = smov %s5023_s9  ;;  %22 = sbr.rel (!%p20_p5) target bundleno = 6 (0x6), region = 93 }
 0x508   :  { %2703 = vsyncpa [#allocation4], 1 }
 0x509   :  { %2705 = vsyncpa [#allocation4 + $0x1], 1 }
 0x50a   :  { %2706 = vsyncpa [#allocation5], 1 }
 0x50b   :  { %2708 = vsyncpa [#allocation5 + $0x1], 1 }

</bundles_post_ra>
